<compile_context>
chip_gen: v7x
topology: tpu7x:2x2x1
jax: 0.10.0
libtpu: 0.0.40
codegen_flags: <defaults>
</compile_context>

<pallas_src>
import math
import jax
import jax.numpy as jnp
from jax import lax
from jax.experimental import pallas as pl
from jax.experimental.pallas import tpu as pltpu

EPS = 1e-5  # nn.LayerNorm default


def _gelu(x):
    # nn.GELU() default: exact erf-based gelu (computed in f32)
    return 0.5 * x * (1.0 + lax.erf(x * (1.0 / math.sqrt(2.0))))


def _layernorm(x, gamma, beta):
    # x: (R, H) f32; fused single-pass statistics with a clamp on the variance
    # (E[x^2]-mean^2 can go slightly negative from f32 cancellation).
    h = x.shape[-1]
    s = jnp.sum(x, axis=-1, keepdims=True)
    ss = jnp.sum(x * x, axis=-1, keepdims=True)
    mean = s * (1.0 / h)
    var = jnp.maximum(ss * (1.0 / h) - mean * mean, 0.0)
    return (x - mean) * lax.rsqrt(var + EPS) * gamma + beta


def mixer_kernel(x_ref,
                 ln1_g_ref, ln1_b_ref,
                 w1_ref, b1_ref, w2_ref, b2_ref,
                 ln2_g_ref, ln2_b_ref,
                 w3t_ref, b3_ref, w4t_ref, b4_ref,
                 o_ref,
                 xn_tm_ref, x1_ref):
    bt, p, h = x_ref.shape                                        # (Bt, P, H)

    # ---- layer_norm over hidden dim on the whole (Bt*P, H) slab ----
    x2d = x_ref[...].reshape(bt * p, h).astype(jnp.float32)       # free reshape
    xn = _layernorm(x2d, ln1_g_ref[...], ln1_b_ref[...])          # (Bt*P, H) f32
    xn_bf = xn.astype(jnp.bfloat16)                               # hoisted cast

    # ---- relayout LN output to the token-mix view (P, Bt*H) via VMEM scratch.
    # Contiguous (P, H) block copies only: no matmuls, no concatenate.
    for b in range(bt):                                           # static unroll
        xn_tm_ref[:, b * h:(b + 1) * h] = xn_bf[b * p:(b + 1) * p, :]

    # ---- token mixing: two wide matmuls with N = Bt*H (batch folded in) ----
    t = jnp.dot(w1_ref[...], xn_tm_ref[...],
                preferred_element_type=jnp.float32) + b1_ref[...]   # (Tm, Bt*H)
    t = _gelu(t).astype(jnp.bfloat16)
    z = jnp.dot(w2_ref[...], t,
                preferred_element_type=jnp.float32) + b2_ref[...]   # (P, Bt*H)

    # ---- relayout back to the (Bt*P, H) rows view and add the residual ----
    for b in range(bt):                                           # static unroll
        x1_ref[b * p:(b + 1) * p, :] = (xn[b * p:(b + 1) * p, :]
                                        + z[:, b * h:(b + 1) * h])
    x1 = x1_ref[...]                                              # (Bt*P, H) f32

    # ---- channel mixing: LN + MLP along H on the full slab ----
    x1n = _layernorm(x1, ln2_g_ref[...], ln2_b_ref[...])          # (Bt*P, H)
    c = jnp.dot(x1n.astype(jnp.bfloat16), w3t_ref[...],
                preferred_element_type=jnp.float32) + b3_ref[...]    # (Bt*P, Cm)
    c = _gelu(c).astype(jnp.bfloat16)
    c = jnp.dot(c, w4t_ref[...],
                preferred_element_type=jnp.float32) + b4_ref[...]    # (Bt*P, H)

    o_ref[...] = (x1 + c).reshape(bt, p, h).astype(o_ref.dtype)   # residual


def mlp_mixer_layer(x, params, *, block_b=None,
                    vmem_limit_bytes=48 * 1024 * 1024):
    """x: (B, P, H) float. params: dict from init_params (f32 canonical weights)."""
    B, P, H = x.shape
    Tm = params["w1"].shape[0]
    Cm = params["w3t"].shape[1]

    if block_b is None:
        # Prefer >= 512 channel-mix rows (block_b*P) per step to amortize MXU
        # fill/drain and per-step overhead, while keeping >= 2 grid steps so
        # the software pipeline has something to prefetch.
        cands = [d for d in range(1, B + 1) if B % d == 0 and B // d >= 2] or [B]
        block_b = next((d for d in cands if d * P >= 512), cands[-1])
    assert B % block_b == 0, "batch must be divisible by block_b"
    grid_b = B // block_b

    # bf16 matmul operands (f32 accumulation inside the kernel); LN params f32.
    w1 = params["w1"].astype(jnp.bfloat16)     # (Tm, P)
    w2 = params["w2"].astype(jnp.bfloat16)     # (P, Tm)
    w3t = params["w3t"].astype(jnp.bfloat16)   # (H, Cm)
    w4t = params["w4t"].astype(jnp.bfloat16)   # (Cm, H)

    def full(shape):
        zeros = tuple(0 for _ in shape)
        return pl.BlockSpec(shape, lambda i: zeros)   # constant block -> fetched once

    # Advisory cost estimate for XLA scheduling around the custom call.
    flops = 4 * B * P * H * (Tm + Cm)
    transcendentals = B * (Tm * H + P * Cm)                        # erf calls
    weight_bytes = 2 * (w1.size + w2.size + w3t.size + w4t.size)   # bf16
    bias_bytes = 4 * (Tm + P + Cm + H + 4 * H)
    io_bytes = 2 * B * P * H * x.dtype.itemsize

    return pl.pallas_call(
        mixer_kernel,
        out_shape=jax.ShapeDtypeStruct((B, P, H), x.dtype),
        grid_spec=pltpu.PrefetchScalarGridSpec(
            num_scalar_prefetch=0,
            grid=(grid_b,),
            in_specs=[
                pl.BlockSpec((block_b, P, H), lambda i: (i, 0, 0)),   # x
                full((1, H)), full((1, H)),                           # ln1 gamma/beta
                full((Tm, P)), full((Tm, 1)),                         # token-mix W1, b1 (col)
                full((P, Tm)), full((P, 1)),                          # token-mix W2, b2 (col)
                full((1, H)), full((1, H)),                           # ln2 gamma/beta
                full((H, Cm)), full((1, Cm)),                         # channel-mix W3^T, b3
                full((Cm, H)), full((1, H)),                          # channel-mix W4^T, b4
            ],
            out_specs=pl.BlockSpec((block_b, P, H), lambda i: (i, 0, 0)),
            scratch_shapes=[
                pltpu.VMEM((P, block_b * H), jnp.bfloat16),   # token-mix view of LN1 out
                pltpu.VMEM((block_b * P, H), jnp.float32),    # token-mix residual (rows)
            ]),
        compiler_params=pltpu.CompilerParams(
            dimension_semantics=("parallel",),
            vmem_limit_bytes=vmem_limit_bytes),
        cost_estimate=pl.CostEstimate(
            flops=flops,
            transcendentals=transcendentals,
            bytes_accessed=io_bytes + weight_bytes + bias_bytes),
    )(x,
      params["ln1_g"], params["ln1_b"],
      w1, params["b1"], w2, params["b2"],
      params["ln2_g"], params["ln2_b"],
      w3t, params["b3"], w4t, params["b4"])


def init_params(key, patch_num, hidden_dim, token_mixing_dim, channel_mixing_dim):
    ks = jax.random.split(key, 4)

    def linear(k, fan_in, fan_out):
        # torch.nn.Linear default init: U(-1/sqrt(fan_in), 1/sqrt(fan_in))
        bound = 1.0 / math.sqrt(fan_in)
        kw, kb = jax.random.split(k)
        w = jax.random.uniform(kw, (fan_out, fan_in), jnp.float32, -bound, bound)
        b = jax.random.uniform(kb, (fan_out,), jnp.float32, -bound, bound)
        return w, b

    w1, b1 = linear(ks[0], patch_num, token_mixing_dim)        # (Tm, P)
    w2, b2 = linear(ks[1], token_mixing_dim, patch_num)        # (P, Tm)
    w3, b3 = linear(ks[2], hidden_dim, channel_mixing_dim)     # (Cm, H)
    w4, b4 = linear(ks[3], channel_mixing_dim, hidden_dim)     # (H, Cm)

    return {
        "ln1_g": jnp.ones((1, hidden_dim), jnp.float32),
        "ln1_b": jnp.zeros((1, hidden_dim), jnp.float32),
        "ln2_g": jnp.ones((1, hidden_dim), jnp.float32),
        "ln2_b": jnp.zeros((1, hidden_dim), jnp.float32),
        # token-mix weights kept in native PyTorch layout (left-mult form needs
        # no transposition); biases stored as column vectors.
        "w1": w1, "b1": b1.reshape(-1, 1),
        "w2": w2, "b2": b2.reshape(-1, 1),
        # channel-mix weights pre-transposed for row-major right-multiplication.
        "w3t": w3.T, "b3": b3.reshape(1, -1),
        "w4t": w4.T, "b4": b4.reshape(1, -1),
    }


def reference(x, p):
    # pure-JAX f32 replica of the PyTorch forward for verification
    def ln(v, g, b):
        m = jnp.mean(v, -1, keepdims=True)
        s = jnp.mean((v - m) ** 2, -1, keepdims=True)
        return (v - m) * lax.rsqrt(s + EPS) * g + b

    gelu = lambda v: 0.5 * v * (1.0 + lax.erf(v / math.sqrt(2.0)))
    xn = ln(x, p["ln1_g"], p["ln1_b"])
    u = jnp.swapaxes(xn, 1, 2)                                      # (B, H, P)
    t = gelu(u @ p["w1"].T + p["b1"].T) @ p["w2"].T + p["b2"].T     # (B, H, P)
    x1 = xn + jnp.swapaxes(t, 1, 2)
    c = gelu(ln(x1, p["ln2_g"], p["ln2_b"]) @ p["w3t"] + p["b3"]) @ p["w4t"] + p["b4"]
    return x1 + c


if __name__ == "__main__":
    # Small, lane-aligned shapes: H, Cm multiples of 128; P a multiple of 8.
    B, P, H = 64, 16, 128         # batch, patch_num, hidden_dim
    Tm, Cm = 32, 256              # token_mixing_dim, channel_mixing_dim

    key = jax.random.PRNGKey(0)
    kx, kp = jax.random.split(key)
    x = jax.random.normal(kx, (B, P, H), jnp.float32)
    params = init_params(kp, P, H, Tm, Cm)

    # block_b=16 -> channel-mix M = 256 rows/step, token-mix N = 2048 lanes,
    # and a 4-step "parallel" grid (>= 2 steps per v7x TensorCore).
    out = mlp_mixer_layer(x, params, block_b=16)
    out = jax.block_until_ready(out)

    ref = reference(x, params)
    err = jnp.max(jnp.abs(out - ref))
    # bf16 matmul operands with f32 accumulation vs f32 reference -> ~1e-2 tolerance
    assert jnp.allclose(out, ref, atol=3e-2, rtol=3e-2), \
        f"mismatch: max abs err {err}"

    print("KERNEL_OK")
</pallas_src>

<mosaic_0001>
module attributes {stable_mosaic.version = 11 : i64} {
  func.func @mixer_kernel(%arg0: i32, %arg1: memref<16x16x128xf32, #tpu.memory_space<vmem>>, %arg2: memref<1x128xf32, #tpu.memory_space<vmem>>, %arg3: memref<1x128xf32, #tpu.memory_space<vmem>>, %arg4: memref<32x16xbf16, #tpu.memory_space<vmem>>, %arg5: memref<32x1xf32, #tpu.memory_space<vmem>>, %arg6: memref<16x32xbf16, #tpu.memory_space<vmem>>, %arg7: memref<16x1xf32, #tpu.memory_space<vmem>>, %arg8: memref<1x128xf32, #tpu.memory_space<vmem>>, %arg9: memref<1x128xf32, #tpu.memory_space<vmem>>, %arg10: memref<128x256xbf16, #tpu.memory_space<vmem>>, %arg11: memref<1x256xf32, #tpu.memory_space<vmem>>, %arg12: memref<256x128xbf16, #tpu.memory_space<vmem>>, %arg13: memref<1x128xf32, #tpu.memory_space<vmem>>, %arg14: memref<16x16x128xf32, #tpu.memory_space<vmem>>, %arg15: memref<16x2048xbf16, #tpu.memory_space<vmem>>, %arg16: memref<256x128xf32, #tpu.memory_space<vmem>>) attributes {dimension_semantics = [#tpu.dimension_semantics<parallel>], iteration_bounds = array<i64: 4>, scalar_prefetch = 0 : i64, scratch_operands = 2 : i64, tpu.core_type = #tpu.core_type<tc>, window_params = [{transform_indices = @transform_0, window_bounds = array<i64: 16, 16, 128>}, {pipeline_mode = #tpu.pipeline_mode<synchronous>, transform_indices = @transform_1, window_bounds = array<i64: 1, 128>}, {pipeline_mode = #tpu.pipeline_mode<synchronous>, transform_indices = @transform_2, window_bounds = array<i64: 1, 128>}, {pipeline_mode = #tpu.pipeline_mode<synchronous>, transform_indices = @transform_3, window_bounds = array<i64: 32, 16>}, {pipeline_mode = #tpu.pipeline_mode<synchronous>, transform_indices = @transform_4, window_bounds = array<i64: 32, 1>}, {pipeline_mode = #tpu.pipeline_mode<synchronous>, transform_indices = @transform_5, window_bounds = array<i64: 16, 32>}, {pipeline_mode = #tpu.pipeline_mode<synchronous>, transform_indices = @transform_6, window_bounds = array<i64: 16, 1>}, {pipeline_mode = #tpu.pipeline_mode<synchronous>, transform_indices = @transform_7, window_bounds = array<i64: 1, 128>}, {pipeline_mode = #tpu.pipeline_mode<synchronous>, transform_indices = @transform_8, window_bounds = array<i64: 1, 128>}, {pipeline_mode = #tpu.pipeline_mode<synchronous>, transform_indices = @transform_9, window_bounds = array<i64: 128, 256>}, {pipeline_mode = #tpu.pipeline_mode<synchronous>, transform_indices = @transform_10, window_bounds = array<i64: 1, 256>}, {pipeline_mode = #tpu.pipeline_mode<synchronous>, transform_indices = @transform_11, window_bounds = array<i64: 256, 128>}, {pipeline_mode = #tpu.pipeline_mode<synchronous>, transform_indices = @transform_12, window_bounds = array<i64: 1, 128>}, {transform_indices = @transform_13, window_bounds = array<i64: 16, 16, 128>}]} {
    %c0 = arith.constant 0 : index
    %c0_0 = arith.constant 0 : index
    %c0_1 = arith.constant 0 : index
    %0 = vector.load %arg1[%c0, %c0_0, %c0_1] : memref<16x16x128xf32, #tpu.memory_space<vmem>>, vector<16x16x128xf32>
    %1 = vector.shape_cast %0 : vector<16x16x128xf32> to vector<256x128xf32>
    %c0_2 = arith.constant 0 : index
    %c0_3 = arith.constant 0 : index
    %2 = vector.load %arg2[%c0_2, %c0_3] : memref<1x128xf32, #tpu.memory_space<vmem>>, vector<1x128xf32>
    %c0_4 = arith.constant 0 : index
    %c0_5 = arith.constant 0 : index
    %3 = vector.load %arg3[%c0_4, %c0_5] : memref<1x128xf32, #tpu.memory_space<vmem>>, vector<1x128xf32>
    %cst = arith.constant dense<0.000000e+00> : vector<256xf32>
    %4 = vector.multi_reduction <add>, %1, %cst [1] : vector<256x128xf32> to vector<256xf32>
    %5 = vector.shape_cast %4 : vector<256xf32> to vector<256x1xf32>
    %6 = arith.mulf %1, %1 : vector<256x128xf32>
    %cst_6 = arith.constant dense<0.000000e+00> : vector<256xf32>
    %7 = vector.multi_reduction <add>, %6, %cst_6 [1] : vector<256x128xf32> to vector<256xf32>
    %8 = vector.shape_cast %7 : vector<256xf32> to vector<256x1xf32>
    %cst_7 = arith.constant 7.812500e-03 : f32
    %9 = vector.broadcast %cst_7 : f32 to vector<256x1xf32>
    %10 = arith.mulf %5, %9 : vector<256x1xf32>
    %cst_8 = arith.constant 7.812500e-03 : f32
    %11 = vector.broadcast %cst_8 : f32 to vector<256x1xf32>
    %12 = arith.mulf %8, %11 : vector<256x1xf32>
    %13 = arith.mulf %10, %10 : vector<256x1xf32>
    %14 = arith.subf %12, %13 : vector<256x1xf32>
    %cst_9 = arith.constant 0.000000e+00 : f32
    %15 = vector.broadcast %cst_9 : f32 to vector<256x1xf32>
    %16 = arith.maximumf %14, %15 : vector<256x1xf32>
    %17 = vector.broadcast %10 : vector<256x1xf32> to vector<256x128xf32>
    %18 = arith.subf %1, %17 : vector<256x128xf32>
    %cst_10 = arith.constant 9.99999974E-6 : f32
    %19 = vector.broadcast %cst_10 : f32 to vector<256x1xf32>
    %20 = arith.addf %16, %19 : vector<256x1xf32>
    %21 = math.rsqrt %20 : vector<256x1xf32>
    %22 = vector.broadcast %21 : vector<256x1xf32> to vector<256x128xf32>
    %23 = arith.mulf %18, %22 : vector<256x128xf32>
    %24 = vector.broadcast %2 : vector<1x128xf32> to vector<256x128xf32>
    %25 = arith.mulf %23, %24 : vector<256x128xf32>
    %26 = vector.broadcast %3 : vector<1x128xf32> to vector<256x128xf32>
    %27 = arith.addf %25, %26 : vector<256x128xf32>
    %28 = arith.truncf %27 : vector<256x128xf32> to vector<256x128xbf16>
    %29 = vector.extract_strided_slice %28 {offsets = [0, 0], sizes = [16, 128], strides = [1, 1]} : vector<256x128xbf16> to vector<16x128xbf16>
    %c0_11 = arith.constant 0 : index
    %c0_12 = arith.constant 0 : index
    %30 = vector.load %arg15[%c0_11, %c0_12] : memref<16x2048xbf16, #tpu.memory_space<vmem>>, vector<16x128xbf16>
    tpu.vector_store %arg15[%c0_11, %c0_12], %29 {strides = array<i32>} : memref<16x2048xbf16, #tpu.memory_space<vmem>>, vector<16x128xbf16>,
    %31 = vector.extract_strided_slice %28 {offsets = [16, 0], sizes = [16, 128], strides = [1, 1]} : vector<256x128xbf16> to vector<16x128xbf16>
    %c0_13 = arith.constant 0 : index
    %c128 = arith.constant 128 : index
    %32 = vector.load %arg15[%c0_13, %c128] : memref<16x2048xbf16, #tpu.memory_space<vmem>>, vector<16x128xbf16>
    tpu.vector_store %arg15[%c0_13, %c128], %31 {strides = array<i32>} : memref<16x2048xbf16, #tpu.memory_space<vmem>>, vector<16x128xbf16>,
    %33 = vector.extract_strided_slice %28 {offsets = [32, 0], sizes = [16, 128], strides = [1, 1]} : vector<256x128xbf16> to vector<16x128xbf16>
    %c0_14 = arith.constant 0 : index
    %c256 = arith.constant 256 : index
    %34 = vector.load %arg15[%c0_14, %c256] : memref<16x2048xbf16, #tpu.memory_space<vmem>>, vector<16x128xbf16>
    tpu.vector_store %arg15[%c0_14, %c256], %33 {strides = array<i32>} : memref<16x2048xbf16, #tpu.memory_space<vmem>>, vector<16x128xbf16>,
    %35 = vector.extract_strided_slice %28 {offsets = [48, 0], sizes = [16, 128], strides = [1, 1]} : vector<256x128xbf16> to vector<16x128xbf16>
    %c0_15 = arith.constant 0 : index
    %c384 = arith.constant 384 : index
    %36 = vector.load %arg15[%c0_15, %c384] : memref<16x2048xbf16, #tpu.memory_space<vmem>>, vector<16x128xbf16>
    tpu.vector_store %arg15[%c0_15, %c384], %35 {strides = array<i32>} : memref<16x2048xbf16, #tpu.memory_space<vmem>>, vector<16x128xbf16>,
    %37 = vector.extract_strided_slice %28 {offsets = [64, 0], sizes = [16, 128], strides = [1, 1]} : vector<256x128xbf16> to vector<16x128xbf16>
    %c0_16 = arith.constant 0 : index
    %c512 = arith.constant 512 : index
    %38 = vector.load %arg15[%c0_16, %c512] : memref<16x2048xbf16, #tpu.memory_space<vmem>>, vector<16x128xbf16>
    tpu.vector_store %arg15[%c0_16, %c512], %37 {strides = array<i32>} : memref<16x2048xbf16, #tpu.memory_space<vmem>>, vector<16x128xbf16>,
    %39 = vector.extract_strided_slice %28 {offsets = [80, 0], sizes = [16, 128], strides = [1, 1]} : vector<256x128xbf16> to vector<16x128xbf16>
    %c0_17 = arith.constant 0 : index
    %c640 = arith.constant 640 : index
    %40 = vector.load %arg15[%c0_17, %c640] : memref<16x2048xbf16, #tpu.memory_space<vmem>>, vector<16x128xbf16>
    tpu.vector_store %arg15[%c0_17, %c640], %39 {strides = array<i32>} : memref<16x2048xbf16, #tpu.memory_space<vmem>>, vector<16x128xbf16>,
    %41 = vector.extract_strided_slice %28 {offsets = [96, 0], sizes = [16, 128], strides = [1, 1]} : vector<256x128xbf16> to vector<16x128xbf16>
    %c0_18 = arith.constant 0 : index
    %c768 = arith.constant 768 : index
    %42 = vector.load %arg15[%c0_18, %c768] : memref<16x2048xbf16, #tpu.memory_space<vmem>>, vector<16x128xbf16>
    tpu.vector_store %arg15[%c0_18, %c768], %41 {strides = array<i32>} : memref<16x2048xbf16, #tpu.memory_space<vmem>>, vector<16x128xbf16>,
    %43 = vector.extract_strided_slice %28 {offsets = [112, 0], sizes = [16, 128], strides = [1, 1]} : vector<256x128xbf16> to vector<16x128xbf16>
    %c0_19 = arith.constant 0 : index
    %c896 = arith.constant 896 : index
    %44 = vector.load %arg15[%c0_19, %c896] : memref<16x2048xbf16, #tpu.memory_space<vmem>>, vector<16x128xbf16>
    tpu.vector_store %arg15[%c0_19, %c896], %43 {strides = array<i32>} : memref<16x2048xbf16, #tpu.memory_space<vmem>>, vector<16x128xbf16>,
    %45 = vector.extract_strided_slice %28 {offsets = [128, 0], sizes = [16, 128], strides = [1, 1]} : vector<256x128xbf16> to vector<16x128xbf16>
    %c0_20 = arith.constant 0 : index
    %c1024 = arith.constant 1024 : index
    %46 = vector.load %arg15[%c0_20, %c1024] : memref<16x2048xbf16, #tpu.memory_space<vmem>>, vector<16x128xbf16>
    tpu.vector_store %arg15[%c0_20, %c1024], %45 {strides = array<i32>} : memref<16x2048xbf16, #tpu.memory_space<vmem>>, vector<16x128xbf16>,
    %47 = vector.extract_strided_slice %28 {offsets = [144, 0], sizes = [16, 128], strides = [1, 1]} : vector<256x128xbf16> to vector<16x128xbf16>
    %c0_21 = arith.constant 0 : index
    %c1152 = arith.constant 1152 : index
    %48 = vector.load %arg15[%c0_21, %c1152] : memref<16x2048xbf16, #tpu.memory_space<vmem>>, vector<16x128xbf16>
    tpu.vector_store %arg15[%c0_21, %c1152], %47 {strides = array<i32>} : memref<16x2048xbf16, #tpu.memory_space<vmem>>, vector<16x128xbf16>,
    %49 = vector.extract_strided_slice %28 {offsets = [160, 0], sizes = [16, 128], strides = [1, 1]} : vector<256x128xbf16> to vector<16x128xbf16>
    %c0_22 = arith.constant 0 : index
    %c1280 = arith.constant 1280 : index
    %50 = vector.load %arg15[%c0_22, %c1280] : memref<16x2048xbf16, #tpu.memory_space<vmem>>, vector<16x128xbf16>
    tpu.vector_store %arg15[%c0_22, %c1280], %49 {strides = array<i32>} : memref<16x2048xbf16, #tpu.memory_space<vmem>>, vector<16x128xbf16>,
    %51 = vector.extract_strided_slice %28 {offsets = [176, 0], sizes = [16, 128], strides = [1, 1]} : vector<256x128xbf16> to vector<16x128xbf16>
    %c0_23 = arith.constant 0 : index
    %c1408 = arith.constant 1408 : index
    %52 = vector.load %arg15[%c0_23, %c1408] : memref<16x2048xbf16, #tpu.memory_space<vmem>>, vector<16x128xbf16>
    tpu.vector_store %arg15[%c0_23, %c1408], %51 {strides = array<i32>} : memref<16x2048xbf16, #tpu.memory_space<vmem>>, vector<16x128xbf16>,
    %53 = vector.extract_strided_slice %28 {offsets = [192, 0], sizes = [16, 128], strides = [1, 1]} : vector<256x128xbf16> to vector<16x128xbf16>
    %c0_24 = arith.constant 0 : index
    %c1536 = arith.constant 1536 : index
    %54 = vector.load %arg15[%c0_24, %c1536] : memref<16x2048xbf16, #tpu.memory_space<vmem>>, vector<16x128xbf16>
    tpu.vector_store %arg15[%c0_24, %c1536], %53 {strides = array<i32>} : memref<16x2048xbf16, #tpu.memory_space<vmem>>, vector<16x128xbf16>,
    %55 = vector.extract_strided_slice %28 {offsets = [208, 0], sizes = [16, 128], strides = [1, 1]} : vector<256x128xbf16> to vector<16x128xbf16>
    %c0_25 = arith.constant 0 : index
    %c1664 = arith.constant 1664 : index
    %56 = vector.load %arg15[%c0_25, %c1664] : memref<16x2048xbf16, #tpu.memory_space<vmem>>, vector<16x128xbf16>
    tpu.vector_store %arg15[%c0_25, %c1664], %55 {strides = array<i32>} : memref<16x2048xbf16, #tpu.memory_space<vmem>>, vector<16x128xbf16>,
    %57 = vector.extract_strided_slice %28 {offsets = [224, 0], sizes = [16, 128], strides = [1, 1]} : vector<256x128xbf16> to vector<16x128xbf16>
    %c0_26 = arith.constant 0 : index
    %c1792 = arith.constant 1792 : index
    %58 = vector.load %arg15[%c0_26, %c1792] : memref<16x2048xbf16, #tpu.memory_space<vmem>>, vector<16x128xbf16>
    tpu.vector_store %arg15[%c0_26, %c1792], %57 {strides = array<i32>} : memref<16x2048xbf16, #tpu.memory_space<vmem>>, vector<16x128xbf16>,
    %59 = vector.extract_strided_slice %28 {offsets = [240, 0], sizes = [16, 128], strides = [1, 1]} : vector<256x128xbf16> to vector<16x128xbf16>
    %c0_27 = arith.constant 0 : index
    %c1920 = arith.constant 1920 : index
    %60 = vector.load %arg15[%c0_27, %c1920] : memref<16x2048xbf16, #tpu.memory_space<vmem>>, vector<16x128xbf16>
    tpu.vector_store %arg15[%c0_27, %c1920], %59 {strides = array<i32>} : memref<16x2048xbf16, #tpu.memory_space<vmem>>, vector<16x128xbf16>,
    %c0_28 = arith.constant 0 : index
    %c0_29 = arith.constant 0 : index
    %61 = vector.load %arg4[%c0_28, %c0_29] : memref<32x16xbf16, #tpu.memory_space<vmem>>, vector<32x16xbf16>
    %c0_30 = arith.constant 0 : index
    %c0_31 = arith.constant 0 : index
    %62 = vector.load %arg15[%c0_30, %c0_31] : memref<16x2048xbf16, #tpu.memory_space<vmem>>, vector<16x2048xbf16>
    %cst_32 = arith.constant dense<0.000000e+00> : vector<32x2048xf32>
    %63 = tpu.matmul %61, %62, %cst_32 {dimension_numbers = #tpu.dot_dimension_numbers<[1], [0], [0], [1], [0, 0, 1, 1], [], []>} : vector<32x16xbf16>, vector<16x2048xbf16>, vector<32x2048xf32> -> vector<32x2048xf32>
    %c0_33 = arith.constant 0 : index
    %c0_34 = arith.constant 0 : index
    %64 = vector.load %arg5[%c0_33, %c0_34] : memref<32x1xf32, #tpu.memory_space<vmem>>, vector<32x1xf32>
    %65 = vector.broadcast %64 : vector<32x1xf32> to vector<32x2048xf32>
    %66 = arith.addf %63, %65 : vector<32x2048xf32>
    %cst_35 = arith.constant 5.000000e-01 : f32
    %67 = vector.broadcast %cst_35 : f32 to vector<32x2048xf32>
    %68 = arith.mulf %67, %66 : vector<32x2048xf32>
    %cst_36 = arith.constant 0.707106769 : f32
    %69 = vector.broadcast %cst_36 : f32 to vector<32x2048xf32>
    %70 = arith.mulf %66, %69 : vector<32x2048xf32>
    %71 = math.erf %70 : vector<32x2048xf32>
    %cst_37 = arith.constant 1.000000e+00 : f32
    %72 = vector.broadcast %cst_37 : f32 to vector<32x2048xf32>
    %73 = arith.addf %72, %71 : vector<32x2048xf32>
    %74 = arith.mulf %68, %73 : vector<32x2048xf32>
    %75 = arith.truncf %74 : vector<32x2048xf32> to vector<32x2048xbf16>
    %c0_38 = arith.constant 0 : index
    %c0_39 = arith.constant 0 : index
    %76 = vector.load %arg6[%c0_38, %c0_39] : memref<16x32xbf16, #tpu.memory_space<vmem>>, vector<16x32xbf16>
    %cst_40 = arith.constant dense<0.000000e+00> : vector<16x2048xf32>
    %77 = tpu.matmul %76, %75, %cst_40 {dimension_numbers = #tpu.dot_dimension_numbers<[1], [0], [0], [1], [0, 0, 1, 1], [], []>} : vector<16x32xbf16>, vector<32x2048xbf16>, vector<16x2048xf32> -> vector<16x2048xf32>
    %c0_41 = arith.constant 0 : index
    %c0_42 = arith.constant 0 : index
    %78 = vector.load %arg7[%c0_41, %c0_42] : memref<16x1xf32, #tpu.memory_space<vmem>>, vector<16x1xf32>
    %79 = vector.broadcast %78 : vector<16x1xf32> to vector<16x2048xf32>
    %80 = arith.addf %77, %79 : vector<16x2048xf32>
    %81 = vector.extract_strided_slice %27 {offsets = [0, 0], sizes = [16, 128], strides = [1, 1]} : vector<256x128xf32> to vector<16x128xf32>
    %82 = vector.extract_strided_slice %80 {offsets = [0, 0], sizes = [16, 128], strides = [1, 1]} : vector<16x2048xf32> to vector<16x128xf32>
    %83 = arith.addf %81, %82 : vector<16x128xf32>
    %c0_43 = arith.constant 0 : index
    %c0_44 = arith.constant 0 : index
    %84 = vector.load %arg16[%c0_43, %c0_44] : memref<256x128xf32, #tpu.memory_space<vmem>>, vector<16x128xf32>
    tpu.vector_store %arg16[%c0_43, %c0_44], %83 {strides = array<i32>} : memref<256x128xf32, #tpu.memory_space<vmem>>, vector<16x128xf32>,
    %85 = vector.extract_strided_slice %27 {offsets = [16, 0], sizes = [16, 128], strides = [1, 1]} : vector<256x128xf32> to vector<16x128xf32>
    %86 = vector.extract_strided_slice %80 {offsets = [0, 128], sizes = [16, 128], strides = [1, 1]} : vector<16x2048xf32> to vector<16x128xf32>
    %87 = arith.addf %85, %86 : vector<16x128xf32>
    %c16 = arith.constant 16 : index
    %c0_45 = arith.constant 0 : index
    %88 = vector.load %arg16[%c16, %c0_45] : memref<256x128xf32, #tpu.memory_space<vmem>>, vector<16x128xf32>
    tpu.vector_store %arg16[%c16, %c0_45], %87 {strides = array<i32>} : memref<256x128xf32, #tpu.memory_space<vmem>>, vector<16x128xf32>,
    %89 = vector.extract_strided_slice %27 {offsets = [32, 0], sizes = [16, 128], strides = [1, 1]} : vector<256x128xf32> to vector<16x128xf32>
    %90 = vector.extract_strided_slice %80 {offsets = [0, 256], sizes = [16, 128], strides = [1, 1]} : vector<16x2048xf32> to vector<16x128xf32>
    %91 = arith.addf %89, %90 : vector<16x128xf32>
    %c32 = arith.constant 32 : index
    %c0_46 = arith.constant 0 : index
    %92 = vector.load %arg16[%c32, %c0_46] : memref<256x128xf32, #tpu.memory_space<vmem>>, vector<16x128xf32>
    tpu.vector_store %arg16[%c32, %c0_46], %91 {strides = array<i32>} : memref<256x128xf32, #tpu.memory_space<vmem>>, vector<16x128xf32>,
    %93 = vector.extract_strided_slice %27 {offsets = [48, 0], sizes = [16, 128], strides = [1, 1]} : vector<256x128xf32> to vector<16x128xf32>
    %94 = vector.extract_strided_slice %80 {offsets = [0, 384], sizes = [16, 128], strides = [1, 1]} : vector<16x2048xf32> to vector<16x128xf32>
    %95 = arith.addf %93, %94 : vector<16x128xf32>
    %c48 = arith.constant 48 : index
    %c0_47 = arith.constant 0 : index
    %96 = vector.load %arg16[%c48, %c0_47] : memref<256x128xf32, #tpu.memory_space<vmem>>, vector<16x128xf32>
    tpu.vector_store %arg16[%c48, %c0_47], %95 {strides = array<i32>} : memref<256x128xf32, #tpu.memory_space<vmem>>, vector<16x128xf32>,
    %97 = vector.extract_strided_slice %27 {offsets = [64, 0], sizes = [16, 128], strides = [1, 1]} : vector<256x128xf32> to vector<16x128xf32>
    %98 = vector.extract_strided_slice %80 {offsets = [0, 512], sizes = [16, 128], strides = [1, 1]} : vector<16x2048xf32> to vector<16x128xf32>
    %99 = arith.addf %97, %98 : vector<16x128xf32>
    %c64 = arith.constant 64 : index
    %c0_48 = arith.constant 0 : index
    %100 = vector.load %arg16[%c64, %c0_48] : memref<256x128xf32, #tpu.memory_space<vmem>>, vector<16x128xf32>
    tpu.vector_store %arg16[%c64, %c0_48], %99 {strides = array<i32>} : memref<256x128xf32, #tpu.memory_space<vmem>>, vector<16x128xf32>,
    %101 = vector.extract_strided_slice %27 {offsets = [80, 0], sizes = [16, 128], strides = [1, 1]} : vector<256x128xf32> to vector<16x128xf32>
    %102 = vector.extract_strided_slice %80 {offsets = [0, 640], sizes = [16, 128], strides = [1, 1]} : vector<16x2048xf32> to vector<16x128xf32>
    %103 = arith.addf %101, %102 : vector<16x128xf32>
    %c80 = arith.constant 80 : index
    %c0_49 = arith.constant 0 : index
    %104 = vector.load %arg16[%c80, %c0_49] : memref<256x128xf32, #tpu.memory_space<vmem>>, vector<16x128xf32>
    tpu.vector_store %arg16[%c80, %c0_49], %103 {strides = array<i32>} : memref<256x128xf32, #tpu.memory_space<vmem>>, vector<16x128xf32>,
    %105 = vector.extract_strided_slice %27 {offsets = [96, 0], sizes = [16, 128], strides = [1, 1]} : vector<256x128xf32> to vector<16x128xf32>
    %106 = vector.extract_strided_slice %80 {offsets = [0, 768], sizes = [16, 128], strides = [1, 1]} : vector<16x2048xf32> to vector<16x128xf32>
    %107 = arith.addf %105, %106 : vector<16x128xf32>
    %c96 = arith.constant 96 : index
    %c0_50 = arith.constant 0 : index
    %108 = vector.load %arg16[%c96, %c0_50] : memref<256x128xf32, #tpu.memory_space<vmem>>, vector<16x128xf32>
    tpu.vector_store %arg16[%c96, %c0_50], %107 {strides = array<i32>} : memref<256x128xf32, #tpu.memory_space<vmem>>, vector<16x128xf32>,
    %109 = vector.extract_strided_slice %27 {offsets = [112, 0], sizes = [16, 128], strides = [1, 1]} : vector<256x128xf32> to vector<16x128xf32>
    %110 = vector.extract_strided_slice %80 {offsets = [0, 896], sizes = [16, 128], strides = [1, 1]} : vector<16x2048xf32> to vector<16x128xf32>
    %111 = arith.addf %109, %110 : vector<16x128xf32>
    %c112 = arith.constant 112 : index
    %c0_51 = arith.constant 0 : index
    %112 = vector.load %arg16[%c112, %c0_51] : memref<256x128xf32, #tpu.memory_space<vmem>>, vector<16x128xf32>
    tpu.vector_store %arg16[%c112, %c0_51], %111 {strides = array<i32>} : memref<256x128xf32, #tpu.memory_space<vmem>>, vector<16x128xf32>,
    %113 = vector.extract_strided_slice %27 {offsets = [128, 0], sizes = [16, 128], strides = [1, 1]} : vector<256x128xf32> to vector<16x128xf32>
    %114 = vector.extract_strided_slice %80 {offsets = [0, 1024], sizes = [16, 128], strides = [1, 1]} : vector<16x2048xf32> to vector<16x128xf32>
    %115 = arith.addf %113, %114 : vector<16x128xf32>
    %c128_52 = arith.constant 128 : index
    %c0_53 = arith.constant 0 : index
    %116 = vector.load %arg16[%c128_52, %c0_53] : memref<256x128xf32, #tpu.memory_space<vmem>>, vector<16x128xf32>
    tpu.vector_store %arg16[%c128_52, %c0_53], %115 {strides = array<i32>} : memref<256x128xf32, #tpu.memory_space<vmem>>, vector<16x128xf32>,
    %117 = vector.extract_strided_slice %27 {offsets = [144, 0], sizes = [16, 128], strides = [1, 1]} : vector<256x128xf32> to vector<16x128xf32>
    %118 = vector.extract_strided_slice %80 {offsets = [0, 1152], sizes = [16, 128], strides = [1, 1]} : vector<16x2048xf32> to vector<16x128xf32>
    %119 = arith.addf %117, %118 : vector<16x128xf32>
    %c144 = arith.constant 144 : index
    %c0_54 = arith.constant 0 : index
    %120 = vector.load %arg16[%c144, %c0_54] : memref<256x128xf32, #tpu.memory_space<vmem>>, vector<16x128xf32>
    tpu.vector_store %arg16[%c144, %c0_54], %119 {strides = array<i32>} : memref<256x128xf32, #tpu.memory_space<vmem>>, vector<16x128xf32>,
    %121 = vector.extract_strided_slice %27 {offsets = [160, 0], sizes = [16, 128], strides = [1, 1]} : vector<256x128xf32> to vector<16x128xf32>
    %122 = vector.extract_strided_slice %80 {offsets = [0, 1280], sizes = [16, 128], strides = [1, 1]} : vector<16x2048xf32> to vector<16x128xf32>
    %123 = arith.addf %121, %122 : vector<16x128xf32>
    %c160 = arith.constant 160 : index
    %c0_55 = arith.constant 0 : index
    %124 = vector.load %arg16[%c160, %c0_55] : memref<256x128xf32, #tpu.memory_space<vmem>>, vector<16x128xf32>
    tpu.vector_store %arg16[%c160, %c0_55], %123 {strides = array<i32>} : memref<256x128xf32, #tpu.memory_space<vmem>>, vector<16x128xf32>,
    %125 = vector.extract_strided_slice %27 {offsets = [176, 0], sizes = [16, 128], strides = [1, 1]} : vector<256x128xf32> to vector<16x128xf32>
    %126 = vector.extract_strided_slice %80 {offsets = [0, 1408], sizes = [16, 128], strides = [1, 1]} : vector<16x2048xf32> to vector<16x128xf32>
    %127 = arith.addf %125, %126 : vector<16x128xf32>
    %c176 = arith.constant 176 : index
    %c0_56 = arith.constant 0 : index
    %128 = vector.load %arg16[%c176, %c0_56] : memref<256x128xf32, #tpu.memory_space<vmem>>, vector<16x128xf32>
    tpu.vector_store %arg16[%c176, %c0_56], %127 {strides = array<i32>} : memref<256x128xf32, #tpu.memory_space<vmem>>, vector<16x128xf32>,
    %129 = vector.extract_strided_slice %27 {offsets = [192, 0], sizes = [16, 128], strides = [1, 1]} : vector<256x128xf32> to vector<16x128xf32>
    %130 = vector.extract_strided_slice %80 {offsets = [0, 1536], sizes = [16, 128], strides = [1, 1]} : vector<16x2048xf32> to vector<16x128xf32>
    %131 = arith.addf %129, %130 : vector<16x128xf32>
    %c192 = arith.constant 192 : index
    %c0_57 = arith.constant 0 : index
    %132 = vector.load %arg16[%c192, %c0_57] : memref<256x128xf32, #tpu.memory_space<vmem>>, vector<16x128xf32>
    tpu.vector_store %arg16[%c192, %c0_57], %131 {strides = array<i32>} : memref<256x128xf32, #tpu.memory_space<vmem>>, vector<16x128xf32>,
    %133 = vector.extract_strided_slice %27 {offsets = [208, 0], sizes = [16, 128], strides = [1, 1]} : vector<256x128xf32> to vector<16x128xf32>
    %134 = vector.extract_strided_slice %80 {offsets = [0, 1664], sizes = [16, 128], strides = [1, 1]} : vector<16x2048xf32> to vector<16x128xf32>
    %135 = arith.addf %133, %134 : vector<16x128xf32>
    %c208 = arith.constant 208 : index
    %c0_58 = arith.constant 0 : index
    %136 = vector.load %arg16[%c208, %c0_58] : memref<256x128xf32, #tpu.memory_space<vmem>>, vector<16x128xf32>
    tpu.vector_store %arg16[%c208, %c0_58], %135 {strides = array<i32>} : memref<256x128xf32, #tpu.memory_space<vmem>>, vector<16x128xf32>,
    %137 = vector.extract_strided_slice %27 {offsets = [224, 0], sizes = [16, 128], strides = [1, 1]} : vector<256x128xf32> to vector<16x128xf32>
    %138 = vector.extract_strided_slice %80 {offsets = [0, 1792], sizes = [16, 128], strides = [1, 1]} : vector<16x2048xf32> to vector<16x128xf32>
    %139 = arith.addf %137, %138 : vector<16x128xf32>
    %c224 = arith.constant 224 : index
    %c0_59 = arith.constant 0 : index
    %140 = vector.load %arg16[%c224, %c0_59] : memref<256x128xf32, #tpu.memory_space<vmem>>, vector<16x128xf32>
    tpu.vector_store %arg16[%c224, %c0_59], %139 {strides = array<i32>} : memref<256x128xf32, #tpu.memory_space<vmem>>, vector<16x128xf32>,
    %141 = vector.extract_strided_slice %27 {offsets = [240, 0], sizes = [16, 128], strides = [1, 1]} : vector<256x128xf32> to vector<16x128xf32>
    %142 = vector.extract_strided_slice %80 {offsets = [0, 1920], sizes = [16, 128], strides = [1, 1]} : vector<16x2048xf32> to vector<16x128xf32>
    %143 = arith.addf %141, %142 : vector<16x128xf32>
    %c240 = arith.constant 240 : index
    %c0_60 = arith.constant 0 : index
    %144 = vector.load %arg16[%c240, %c0_60] : memref<256x128xf32, #tpu.memory_space<vmem>>, vector<16x128xf32>
    tpu.vector_store %arg16[%c240, %c0_60], %143 {strides = array<i32>} : memref<256x128xf32, #tpu.memory_space<vmem>>, vector<16x128xf32>,
    %c0_61 = arith.constant 0 : index
    %c0_62 = arith.constant 0 : index
    %145 = vector.load %arg16[%c0_61, %c0_62] : memref<256x128xf32, #tpu.memory_space<vmem>>, vector<256x128xf32>
    %c0_63 = arith.constant 0 : index
    %c0_64 = arith.constant 0 : index
    %146 = vector.load %arg8[%c0_63, %c0_64] : memref<1x128xf32, #tpu.memory_space<vmem>>, vector<1x128xf32>
    %c0_65 = arith.constant 0 : index
    %c0_66 = arith.constant 0 : index
    %147 = vector.load %arg9[%c0_65, %c0_66] : memref<1x128xf32, #tpu.memory_space<vmem>>, vector<1x128xf32>
    %cst_67 = arith.constant dense<0.000000e+00> : vector<256xf32>
    %148 = vector.multi_reduction <add>, %145, %cst_67 [1] : vector<256x128xf32> to vector<256xf32>
    %149 = vector.shape_cast %148 : vector<256xf32> to vector<256x1xf32>
    %150 = arith.mulf %145, %145 : vector<256x128xf32>
    %cst_68 = arith.constant dense<0.000000e+00> : vector<256xf32>
    %151 = vector.multi_reduction <add>, %150, %cst_68 [1] : vector<256x128xf32> to vector<256xf32>
    %152 = vector.shape_cast %151 : vector<256xf32> to vector<256x1xf32>
    %cst_69 = arith.constant 7.812500e-03 : f32
    %153 = vector.broadcast %cst_69 : f32 to vector<256x1xf32>
    %154 = arith.mulf %149, %153 : vector<256x1xf32>
    %cst_70 = arith.constant 7.812500e-03 : f32
    %155 = vector.broadcast %cst_70 : f32 to vector<256x1xf32>
    %156 = arith.mulf %152, %155 : vector<256x1xf32>
    %157 = arith.mulf %154, %154 : vector<256x1xf32>
    %158 = arith.subf %156, %157 : vector<256x1xf32>
    %cst_71 = arith.constant 0.000000e+00 : f32
    %159 = vector.broadcast %cst_71 : f32 to vector<256x1xf32>
    %160 = arith.maximumf %158, %159 : vector<256x1xf32>
    %161 = vector.broadcast %154 : vector<256x1xf32> to vector<256x128xf32>
    %162 = arith.subf %145, %161 : vector<256x128xf32>
    %cst_72 = arith.constant 9.99999974E-6 : f32
    %163 = vector.broadcast %cst_72 : f32 to vector<256x1xf32>
    %164 = arith.addf %160, %163 : vector<256x1xf32>
    %165 = math.rsqrt %164 : vector<256x1xf32>
    %166 = vector.broadcast %165 : vector<256x1xf32> to vector<256x128xf32>
    %167 = arith.mulf %162, %166 : vector<256x128xf32>
    %168 = vector.broadcast %146 : vector<1x128xf32> to vector<256x128xf32>
    %169 = arith.mulf %167, %168 : vector<256x128xf32>
    %170 = vector.broadcast %147 : vector<1x128xf32> to vector<256x128xf32>
    %171 = arith.addf %169, %170 : vector<256x128xf32>
    %172 = arith.truncf %171 : vector<256x128xf32> to vector<256x128xbf16>
    %c0_73 = arith.constant 0 : index
    %c0_74 = arith.constant 0 : index
    %173 = vector.load %arg10[%c0_73, %c0_74] : memref<128x256xbf16, #tpu.memory_space<vmem>>, vector<128x256xbf16>
    %cst_75 = arith.constant dense<0.000000e+00> : vector<256x256xf32>
    %174 = tpu.matmul %172, %173, %cst_75 {dimension_numbers = #tpu.dot_dimension_numbers<[1], [0], [0], [1], [0, 0, 1, 1], [], []>} : vector<256x128xbf16>, vector<128x256xbf16>, vector<256x256xf32> -> vector<256x256xf32>
    %c0_76 = arith.constant 0 : index
    %c0_77 = arith.constant 0 : index
    %175 = vector.load %arg11[%c0_76, %c0_77] : memref<1x256xf32, #tpu.memory_space<vmem>>, vector<1x256xf32>
    %176 = vector.broadcast %175 : vector<1x256xf32> to vector<256x256xf32>
    %177 = arith.addf %174, %176 : vector<256x256xf32>
    %cst_78 = arith.constant 5.000000e-01 : f32
    %178 = vector.broadcast %cst_78 : f32 to vector<256x256xf32>
    %179 = arith.mulf %178, %177 : vector<256x256xf32>
    %cst_79 = arith.constant 0.707106769 : f32
    %180 = vector.broadcast %cst_79 : f32 to vector<256x256xf32>
    %181 = arith.mulf %177, %180 : vector<256x256xf32>
    %182 = math.erf %181 : vector<256x256xf32>
    %cst_80 = arith.constant 1.000000e+00 : f32
    %183 = vector.broadcast %cst_80 : f32 to vector<256x256xf32>
    %184 = arith.addf %183, %182 : vector<256x256xf32>
    %185 = arith.mulf %179, %184 : vector<256x256xf32>
    %186 = arith.truncf %185 : vector<256x256xf32> to vector<256x256xbf16>
    %c0_81 = arith.constant 0 : index
    %c0_82 = arith.constant 0 : index
    %187 = vector.load %arg12[%c0_81, %c0_82] : memref<256x128xbf16, #tpu.memory_space<vmem>>, vector<256x128xbf16>
    %cst_83 = arith.constant dense<0.000000e+00> : vector<256x128xf32>
    %188 = tpu.matmul %186, %187, %cst_83 {dimension_numbers = #tpu.dot_dimension_numbers<[1], [0], [0], [1], [0, 0, 1, 1], [], []>} : vector<256x256xbf16>, vector<256x128xbf16>, vector<256x128xf32> -> vector<256x128xf32>
    %c0_84 = arith.constant 0 : index
    %c0_85 = arith.constant 0 : index
    %189 = vector.load %arg13[%c0_84, %c0_85] : memref<1x128xf32, #tpu.memory_space<vmem>>, vector<1x128xf32>
    %190 = vector.broadcast %189 : vector<1x128xf32> to vector<256x128xf32>
    %191 = arith.addf %188, %190 : vector<256x128xf32>
    %192 = arith.addf %145, %191 : vector<256x128xf32>
    %193 = vector.shape_cast %192 : vector<256x128xf32> to vector<16x16x128xf32>
    %c0_86 = arith.constant 0 : index
    %c0_87 = arith.constant 0 : index
    %c0_88 = arith.constant 0 : index
    %194 = vector.load %arg14[%c0_86, %c0_87, %c0_88] : memref<16x16x128xf32, #tpu.memory_space<vmem>>, vector<16x16x128xf32>
    tpu.vector_store %arg14[%c0_86, %c0_87, %c0_88], %193 {strides = array<i32>} : memref<16x16x128xf32, #tpu.memory_space<vmem>>, vector<16x16x128xf32>,
    return
  }
  func.func @transform_0(%arg0: i32) -> (i32, i32, i32) {
    %c0_i32 = arith.constant 0 : i32
    %c0_i32_0 = arith.constant 0 : i32
    %c0_i32_1 = arith.constant 0 : i32
    return %arg0, %c0_i32, %c0_i32_0 : i32, i32, i32
  }
  func.func @transform_1(%arg0: i32) -> (i32, i32) {
    %c0_i32 = arith.constant 0 : i32
    %c0_i32_0 = arith.constant 0 : i32
    %c0_i32_1 = arith.constant 0 : i32
    return %c0_i32, %c0_i32_0 : i32, i32
  }
  func.func @transform_2(%arg0: i32) -> (i32, i32) {
    %c0_i32 = arith.constant 0 : i32
    %c0_i32_0 = arith.constant 0 : i32
    %c0_i32_1 = arith.constant 0 : i32
    return %c0_i32, %c0_i32_0 : i32, i32
  }
  func.func @transform_3(%arg0: i32) -> (i32, i32) {
    %c0_i32 = arith.constant 0 : i32
    %c0_i32_0 = arith.constant 0 : i32
    %c0_i32_1 = arith.constant 0 : i32
    return %c0_i32, %c0_i32_0 : i32, i32
  }
  func.func @transform_4(%arg0: i32) -> (i32, i32) {
    %c0_i32 = arith.constant 0 : i32
    %c0_i32_0 = arith.constant 0 : i32
    %c0_i32_1 = arith.constant 0 : i32
    return %c0_i32, %c0_i32_0 : i32, i32
  }
  func.func @transform_5(%arg0: i32) -> (i32, i32) {
    %c0_i32 = arith.constant 0 : i32
    %c0_i32_0 = arith.constant 0 : i32
    %c0_i32_1 = arith.constant 0 : i32
    return %c0_i32, %c0_i32_0 : i32, i32
  }
  func.func @transform_6(%arg0: i32) -> (i32, i32) {
    %c0_i32 = arith.constant 0 : i32
    %c0_i32_0 = arith.constant 0 : i32
    %c0_i32_1 = arith.constant 0 : i32
    return %c0_i32, %c0_i32_0 : i32, i32
  }
  func.func @transform_7(%arg0: i32) -> (i32, i32) {
    %c0_i32 = arith.constant 0 : i32
    %c0_i32_0 = arith.constant 0 : i32
    %c0_i32_1 = arith.constant 0 : i32
    return %c0_i32, %c0_i32_0 : i32, i32
  }
  func.func @transform_8(%arg0: i32) -> (i32, i32) {
    %c0_i32 = arith.constant 0 : i32
    %c0_i32_0 = arith.constant 0 : i32
    %c0_i32_1 = arith.constant 0 : i32
    return %c0_i32, %c0_i32_0 : i32, i32
  }
  func.func @transform_9(%arg0: i32) -> (i32, i32) {
    %c0_i32 = arith.constant 0 : i32
    %c0_i32_0 = arith.constant 0 : i32
    %c0_i32_1 = arith.constant 0 : i32
    return %c0_i32, %c0_i32_0 : i32, i32
  }
  func.func @transform_10(%arg0: i32) -> (i32, i32) {
    %c0_i32 = arith.constant 0 : i32
    %c0_i32_0 = arith.constant 0 : i32
    %c0_i32_1 = arith.constant 0 : i32
    return %c0_i32, %c0_i32_0 : i32, i32
  }
  func.func @transform_11(%arg0: i32) -> (i32, i32) {
    %c0_i32 = arith.constant 0 : i32
    %c0_i32_0 = arith.constant 0 : i32
    %c0_i32_1 = arith.constant 0 : i32
    return %c0_i32, %c0_i32_0 : i32, i32
  }
  func.func @transform_12(%arg0: i32) -> (i32, i32) {
    %c0_i32 = arith.constant 0 : i32
    %c0_i32_0 = arith.constant 0 : i32
    %c0_i32_1 = arith.constant 0 : i32
    return %c0_i32, %c0_i32_0 : i32, i32
  }
  func.func @transform_13(%arg0: i32) -> (i32, i32, i32) {
    %c0_i32 = arith.constant 0 : i32
    %c0_i32_0 = arith.constant 0 : i32
    %c0_i32_1 = arith.constant 0 : i32
    return %arg0, %c0_i32, %c0_i32_0 : i32, i32, i32
  }
}

</mosaic_0001>

<bundles_post_ra>
// kernel: tpu_custom_call.1
= control target key start
LH: loop header
LB: loop body
LE: loop exit
PB: predicated region body
PF: predicated region fallthrough
CT: control target
= control target key end

     0   :  { %s7003_s0 = inlined_call_operand.hbm [shape: f32[64,16,128], index: 0, kind: input, shape index: {}]   ;;  %s7004_s1 = inlined_call_operand.vmem [shape: f32[1,128], index: 1, kind: input, shape index: {}]   ;;  %s7005_s2 = inlined_call_operand.vmem [shape: f32[1,128], index: 2, kind: input, shape index: {}]   ;;  %s7006_s3 = inlined_call_operand.vmem [shape: bf16[32,16], index: 3, kind: input, shape index: {}]   ;;  %s7007_s4 = inlined_call_operand.vmem [shape: f32[32,1], index: 4, kind: input, shape index: {}]   ;;  %s7008_s5 = inlined_call_operand.vmem [shape: bf16[16,32], index: 5, kind: input, shape index: {}]   ;;  %s7009_s6 = inlined_call_operand.vmem [shape: f32[16,1], index: 6, kind: input, shape index: {}]   ;;  %s7010_s7 = inlined_call_operand.vmem [shape: f32[1,128], index: 7, kind: input, shape index: {}]   ;;  %s7011_s8 = inlined_call_operand.vmem [shape: f32[1,128], index: 8, kind: input, shape index: {}]   ;;  %s7012_s9 = inlined_call_operand.hbm [shape: bf16[128,256], index: 9, kind: input, shape index: {}]   ;;  %s7013_s10 = inlined_call_operand.vmem [shape: f32[1,256], index: 10, kind: input, shape index: {}]   ;;  %s7014_s11 = inlined_call_operand.hbm [shape: bf16[256,128], index: 11, kind: input, shape index: {}]   ;;  %s7015_s12 = inlined_call_operand.vmem [shape: f32[1,128], index: 12, kind: input, shape index: {}]   ;;  %s7016_s13 = inlined_call_operand.hbm [shape: f32[64,16,128], index: 13, kind: output, shape index: {}]  }
   0x1   :  { %7036 = sst [smem:[#allocation22_spill]] %s7013_s10 }
   0x2   :  { %7037 = sst [smem:[#allocation23_spill]] %s7015_s12 }
   0x3   :  { %7038 = sst [smem:[#allocation24_spill]] %s7016_s13 }
   0x4   :  { %18 = vsyncpa [#allocation5], 0 }
   0x5   :  { %20 = vsyncpa [#allocation5 + $0x1], 0 }
   0x6   :  { %21 = vsyncpa [#allocation8], 0 }
   0x7   :  { %22 = vsyncpa [#allocation6], 0 }
   0x8   :  { %24 = vsyncpa [#allocation6 + $0x1], 0  ;;  %s4990_s25 = smov 0   ;;  %s4992_s26 = smov 0  }
   0x9   :  { %s4994_s27 = smov 0   ;;  %s4996_s28 = smov 0  }
   0xa LB: > { %7039 = sst [smem:[#allocation14_spill]] %s4895_s25  ;;  %s5011_s29 = sadd.s32 4294967295, %s4907_s28   ;;  %s4907_s28 = sphi %s4996_s28, %s7082_s28   ;;  %s4903_s27 = sphi %s4994_s27, %s7081_s27   ;;  %s4899_s26 = sphi %s4992_s26, %s7080_s26   ;;  %s4895_s25 = sphi %s4990_s25, %s7079_s25  }
   0xb   : > { %s4044_s30 = sadd.s32 4294967294, %s4907_s28   ;;  %p50_p0 = scmp.ne.s32.totalorder %s4899_s26, %s4895_s25 }
   0xc   : > { %p7019_p1 = scmp.eq.s32.totalorder %s5011_s29, 0  ;;  %p332_p3 = scmp.eq.s32.totalorder %s4044_s30, 3 }
   0xd   : > { %p4045_p5 = scmp.ge.s32.totalorder %s4907_s28, 1  ;;  %p339_p7 = scmp.lt.s32.totalorder %s4907_s28, 5 }
   0xe   : > { %p5020_p4 = por %p7019_p1, %p50_p0  ;;  %p5025_p6 = por %p332_p3, %p50_p0 }
   0xf   : > { %p5030_p8 = pnand %p4045_p5, %p339_p7  ;;  %s4909_s17 = smov [#allocation7]  }
  0x10   : > { %s7040_s14 = scalar_select %p5020_p4, 1, 0 }
  0x11   : > { %s7041_s15 = scalar_select %p5025_p6, 1, 0 }
  0x12   : > { %s7043_s16 = scalar_select %p5030_p8, 1, 0 }
  0x13   : > { %7042 = sst [smem:[#allocation15_spill]] %s7041_s15  ;;  %s375_s18 = sshll.u32 %s4909_s17, 4  ;;  %s376_s18 = int_to_ptr.vmem [resolvable:$true] %s375_s18 }
  0x14   : > { %p4256_p9 = pneg %p5030_p8  ;;  %s4910_s20 = smov [#allocation9]  }
  0x15   : > { %s391_s21 = sshll.u32 %s4910_s20, 4  ;;  %s4751_s24 = scalar_lea.hbm %s7012_s9, 2048  ;;  %s5042_s21 = int_to_ptr.vmem [resolvable:$true] %s391_s21 }
  0x16   : > { %p5038_p10 = pnand %p4256_p9, %p7019_p1  ;;  %p4752_p11 = scmp.ne.s32.totalorder %s7012_s9, %s4751_s24 }
  0x17   : > { %p4758_p3 = scmp.lt.u32.totalorder %s4751_s24, %s7012_s9 }
  0x18   : > { %p4753_p12 = pneg %p5038_p10 }
  0x1a   : > { %p4754_p13 = pnand %p4753_p12, %p4752_p11 }
  0x1c   : > { %p4755_p0 = pneg %p4754_p13 }
  0x1e   : > { %p4760_p5 = pnand %p4758_p3, %p4755_p0 }
  0x20   : > { %4763 = shalt.err (!%p4760_p5)
}
  0x21   : > { %s4764_s20 = scalar_lea.vmem %s376_s18, 2048  ;;  %p4772_p2 = scmp.lt.s32.totalorder %s376_s18, %s376_s18 }
  0x22   : > { %p4765_p7 = scmp.ne.s32.totalorder %s376_s18, %s4764_s20  ;;  %p4773_p6 = scmp.lt.s32.totalorder %s4764_s20, %s4764_s20 }
  0x24   : > { %p4767_p9 = pnand %p4765_p7, %p4753_p12  ;;  %p4774_p4 = por %p4773_p6, %p4772_p2 }
  0x26   : > { %p4768_p1 = pneg %p4767_p9 }
  0x28   : > { %p4775_p8 = pnand %p4774_p4, %p4768_p1 }
  0x2a   : > { %4778 = shalt.err (!%p4775_p8)
}
  0x2b   : > { %s7023_s22 = smov 128   ;;  %s7024_s23 = smov 8  }
  0x2c   : > { %4259 = dma.hbm_to_vmem [thread:$0]  (!%p5038_p10), %s7012_s9, 2048, %s376_s18, [#allocation8], %s7023_s22, %s7023_s22, %s7024_s23  }
  0x2d   : > { %s4779_s17 = scalar_lea.hbm %s7014_s11, 2048 }
  0x2e   : > { %p4780_p1 = scmp.ne.s32.totalorder %s7014_s11, %s4779_s17  ;;  %p4786_p6 = scmp.lt.u32.totalorder %s4779_s17, %s7014_s11 }
  0x30   : > { %p4782_p2 = pnand %p4780_p1, %p4753_p12 }
  0x32   : > { %p4783_p4 = pneg %p4782_p2 }
  0x34   : > { %p4788_p8 = pnand %p4786_p6, %p4783_p4 }
  0x36   : > { %4791 = shalt.err (!%p4788_p8)
}
  0x37   : > { %s4792_s18 = scalar_lea.vmem %s5042_s21, 2048  ;;  %p4800_p3 = scmp.lt.s32.totalorder %s5042_s21, %s5042_s21 }
  0x38   : > { %p4793_p11 = scmp.ne.s32.totalorder %s5042_s21, %s4792_s18  ;;  %p4801_p5 = scmp.lt.s32.totalorder %s4792_s18, %s4792_s18 }
  0x3a   : > { %p4795_p13 = pnand %p4793_p11, %p4753_p12  ;;  %p4802_p7 = por %p4801_p5, %p4800_p3 }
  0x3c   : > { %p4796_p0 = pneg %p4795_p13 }
  0x3e   : > { %p4803_p9 = pnand %p4802_p7, %p4796_p0 }
  0x40   : > { %4806 = shalt.err (!%p4803_p9)
}
  0x41   : > { %s4913_s10 = smov 64   ;;  %s4914_s12 = smov 4  }
  0x42   : > { %4262 = dma.hbm_to_vmem [thread:$0]  (!%p5038_p10), %s7014_s11, 2048, %s5042_s21, [#allocation8], %s4913_s10, %s4913_s10, %s4914_s12  }
  0x43   : > { %s5095_s15 = sadd.s32 1, %s4907_s28   ;;  %s37_s30 = sadd.s32 1, %s4903_s27 }
  0x44   : > { %s34_s24 = ssub.s32 %s4907_s28, %s5095_s15  ;;  %p44_p1 = scmp.ne.s32.totalorder %s4903_s27, %s4899_s26 }
  0x45   : > { %p35_p12 = scmp.eq.s32.totalorder %s34_s24, 0  ;;  %p45_p2 = scmp.eq.s32.totalorder %s4907_s28, 0 }
  0x46   : > { %p7045_p6 = scmp.eq.s32.totalorder %s5011_s29, 3  ;;  %p4273_p11 = scmp.lt.s32.totalorder %s4907_s28, 4 }
  0x47   : > { %s5104_s17 = scalar_select %p35_p12, %s4903_s27, %s37_s30  }
  0x48   : > { %p46_p4 = por %p45_p2, %p44_p1  ;;  %p5108_p8 = por %p7045_p6, %p44_p1 }
  0x49   : > { %s408_s19 = sand.u32 1, %s4903_s27   ;;  %s4129_s21 = sshll.u32 %s4907_s28, 12 }
  0x4a   : > { %s4049_s18 = sshll.u32 %s408_s19, 8  ;;  %s5118_s13 = scalar_lea.hbm %s7003_s0, %s4129_s21 }
  0x4b   : > { %s412_s25 = scalar_lea.vmem [#allocation4], %s4049_s18  ;;  %p5122_p10 = pnand %p4273_p11, %p46_p4 }
  0x4c   : > { %s420_s24 = sshll.u32 %s412_s25, 4  ;;  %s5126_s22 = scalar_lea.sflag [#allocation5], %s408_s19  ;;  %s5120_s24 = int_to_ptr.vmem [resolvable:$true] %s420_s24 }
  0x4d   : > { %s4807_s23 = scalar_lea.hbm %s5118_s13, 4096  ;;  %p4809_p0 = pneg %p5122_p10 }
  0x4e   : > { %p4808_p13 = scmp.ne.s32.totalorder %s5118_s13, %s4807_s23  ;;  %s4812_s10 = scalar_lea.hbm %s7003_s0, 16384 }
  0x4f   : > { %p4813_p7 = scmp.lt.u32.totalorder %s5118_s13, %s7003_s0  ;;  %p4814_p9 = scmp.lt.u32.totalorder %s4812_s10, %s4807_s23 }
  0x50   : > { %p4810_p3 = pnand %p4809_p0, %p4808_p13  ;;  %p4816_p1 = scmp.lt.u32.totalorder %s4807_s23, %s5118_s13 }
  0x51   : > { %p4815_p12 = por %p4814_p9, %p4813_p7 }
  0x52   : > { %p4811_p5 = pneg %p4810_p3 }
  0x53   : > { %p4817_p2 = por %p4816_p1, %p4815_p12 }
  0x55   : > { %p4818_p4 = pnand %p4817_p2, %p4811_p5 }
  0x57   : > { %4821 = shalt.err (!%p4818_p4)
}
  0x58   : > { %s4822_s19 = scalar_lea.vmem %s5120_s24, 4096  ;;  %s4915_s18 = smov [#allocation4]  }
  0x59   : > { %p4823_p6 = scmp.ne.s32.totalorder %s5120_s24, %s4822_s19  ;;  %s4827_s21 = sshll.u32 %s4915_s18, 4  ;;  %s4828_s21 = int_to_ptr.vmem [resolvable:$false] %s4827_s21 }
  0x5a   : > { %s4829_s12 = scalar_lea.vmem %s4828_s21, 8192  ;;  %p4830_p3 = scmp.lt.s32.totalorder %s5120_s24, %s4828_s21 }
  0x5b   : > { %p4825_p11 = pnand %p4823_p6, %p4809_p0  ;;  %p4831_p7 = scmp.lt.s32.totalorder %s4829_s12, %s4822_s19 }
  0x5d   : > { %p4826_p13 = pneg %p4825_p11  ;;  %p4832_p9 = por %p4831_p7, %p4830_p3 }
  0x5f   : > { %p4833_p12 = pnand %p4832_p9, %p4826_p13 }
  0x61   : > { %4836 = shalt.err (!%p4833_p12)
}
  0x62   : > { %s7048_s23 = smov 8   ;;  %s7049_s10 = smov 128  }
  0x63   : > { %4266 = dma.hbm_to_vmem [thread:$0]  (!%p5122_p10), %s5118_s13, 4096, %s5120_s24, %s5126_s22, %s7049_s10, %s7049_s10, %s7048_s23  }
  0x64   : > { %p7050_p0 = scmp.ne.s32.totalorder %s7043_s16, 0 }
  0x66   : > { %432 = sbr.rel (%p7050_p0) target bundleno = 1536 (0x600), region = 72 }
  0x6d   : > { %s5160_s25 = sand.u32 1, %s4899_s26   ;;  %p7051_p5 = scmp.ne.s32.totalorder %s7040_s14, 0 }
  0x6e   : > { %s4054_s19 = sshll.u32 %s5160_s25, 8  ;;  %s435_s18 = scalar_lea.sflag [#allocation5], %s5160_s25 }
  0x6f   : > { %s5166_s30 = scalar_lea.vmem [#allocation4], %s4054_s19 }
  0x70   : > { %4882 = dma.done.wait (%p7051_p5), %s435_s18, 4096  }
  0x71   : > { %4884 = vsyncadd (%p7051_p5), %s435_s18, 4294963200  ;;  %p7052_p10 = scmp.eq.s32.totalorder %s5011_s29, 0 }
  0x73   : > { %4886 = dma.done.wait (%p7052_p10), [#allocation8], 4096   ;;  %p7053_p1 = pmov %p7052_p10 }
  0x74   : > { %v5177_v0 = vld [vmem:[%s5166_s30 + $0x10] sm:$0xff]  ;;  %v5180_v1 = vld [vmem:[%s5166_s30] sm:$0xff]  ;;  %v5185_v2 = vld [vmem:[%s5166_s30 + $0x18] sm:$0xff]  ;;  %v7025_v32 = vmov 0   ;;  %vm1136_vm0 = vcmask 130048   ;;  %vm1938_vm1 = vcmask 261120  }
  0x75   : > { %4888 = vsyncadd (%p7053_p1), [#allocation8], 4294963200  ;;  %530 = vadd.xlane.f32.xlu0 %v5177_v0  ;;  %526 = vadd.xlane.f32.xlu1 %v5180_v1  ;;  %v5188_v3 = vld [vmem:[%s5166_s30 + $0x8] sm:$0xff]  ;;  %v592_v4 = vmul.f32 %v5177_v0, %v5177_v0  ;;  %v593_v5 = vmul.f32 %v5185_v2, %v5185_v2  ;;  %v590_v7 = vmul.f32 %v5180_v1, %v5180_v1  ;;  %v5201_v8 = vld [vmem:[%s5166_s30 + $0x38] sm:$0xff]  ;;  %s7070_s23 = sld [smem:[#allocation22_spill]]  ;;  %s6858_s14 = scalar_lea.vmem [#allocation10], %s4054_s19 }
  0x76   : > { %v591_v6 = vmul.f32 %v5188_v3, %v5188_v3  ;;  %v5204_v9 = vld [vmem:[%s5166_s30 + $0x30] sm:$0xff]  ;;  %v5207_v10 = vld [vmem:[%s5166_s30 + $0x28] sm:$0xff]  ;;  %v5210_v11 = vld [vmem:[%s5166_s30 + $0x20] sm:$0xff]  ;;  %v597_v12 = vmul.f32 %v5201_v8, %v5201_v8  ;;  %1175 = vmatprep.mubr.bf16.mxu0 %v7025_v32  ;;  %1228 = vmatprep.mubr.bf16.mxu1 %v7025_v32  ;;  %s4131_s19 = sshll.u32 %s5011_s29, 12  ;;  %s3952_s16 = sshll.u32 %s6858_s14, 4  ;;  %s6957_s16 = int_to_ptr.vmem [resolvable:$true] %s3952_s16 }
  0x77   : > { %v596_v13 = vmul.f32 %v5204_v9, %v5204_v9  ;;  %v595_v14 = vmul.f32 %v5207_v10, %v5207_v10  ;;  %v594_v15 = vmul.f32 %v5210_v11, %v5210_v11  ;;  %v5225_v16 = vld [vmem:[%s5166_s30 + $0x58] sm:$0xff]  ;;  %v5228_v17 = vld [vmem:[%s5166_s30 + $0x50] sm:$0xff]  ;;  %v5233_v18 = vld [vmem:[%s5166_s30 + $0x48] sm:$0xff]  ;;  %4319 = vset.pattern.permute.xlu1 %v7025_v32  ;;  %4318 = vset.pattern.permute.xlu0 %v7025_v32  ;;  %s7074_s24 = sld [smem:[#allocation24_spill]]  ;;  %s3938_s29 = scalar_lea.sflag [#allocation6], %s5160_s25 }
  0x78   : > { %v5236_v19 = vld [vmem:[%s5166_s30 + $0x40] sm:$0xff]  ;;  %v601_v20 = vmul.f32 %v5225_v16, %v5225_v16  ;;  %v600_v21 = vmul.f32 %v5228_v17, %v5228_v17  ;;  %v599_v22 = vmul.f32 %v5233_v18, %v5233_v18  ;;  %v5249_v24 = vld [vmem:[%s5166_s30 + $0x78] sm:$0xff]  ;;  %v5252_v25 = vld [vmem:[%s5166_s30 + $0x70] sm:$0xff]  ;;  %s4837_s12 = scalar_lea.vmem %s6957_s16, 4096 }
  0x79   : > { %532 = vadd.xlane.f32.xlu0 %v5185_v2  ;;  %528 = vadd.xlane.f32.xlu1 %v5188_v3  ;;  %v598_v23 = vmul.f32 %v5236_v19, %v5236_v19  ;;  %v5257_v26 = vld [vmem:[%s5166_s30 + $0x68] sm:$0xff]  ;;  %v5260_v27 = vld [vmem:[%s5166_s30 + $0x60] sm:$0xff]  ;;  %v605_v28 = vmul.f32 %v5249_v24, %v5249_v24  ;;  %v604_v29 = vmul.f32 %v5252_v25, %v5252_v25  ;;  %v5275_v33 = vld [vmem:[%s5166_s30 + $0x98] sm:$0xff]  ;;  %p4838_p2 = scmp.ne.s32.totalorder %s6957_s16, %s4837_s12 }
  0x7a   : > { %v603_v30 = vmul.f32 %v5257_v26, %v5257_v26  ;;  %v602_v31 = vmul.f32 %v5260_v27, %v5260_v27  ;;  %v5278_v34 = vld [vmem:[%s5166_s30 + $0x90] sm:$0xff]  ;;  %v5285_v35 = vld [vmem:[%s5166_s30 + $0x88] sm:$0xff]  ;;  %v5288_v36 = vld [vmem:[%s5166_s30 + $0x80] sm:$0xff]  ;;  %v609_v37 = vmul.f32 %v5275_v33, %v5275_v33 }
  0x7b   : > { %v608_v38 = vmul.f32 %v5278_v34, %v5278_v34  ;;  %v607_v39 = vmul.f32 %v5285_v35, %v5285_v35  ;;  %v606_v40 = vmul.f32 %v5288_v36, %v5288_v36  ;;  %v5301_v41 = vld [vmem:[%s5166_s30 + $0xb8] sm:$0xff]  ;;  %v5304_v42 = vld [vmem:[%s5166_s30 + $0xb0] sm:$0xff]  ;;  %v5309_v43 = vld [vmem:[%s5166_s30 + $0xa8] sm:$0xff]  ;;  %p4839_p4 = pnand %p4838_p2, %p5108_p8 }
  0x7c   : > { %v5312_v44 = vld [vmem:[%s5166_s30 + $0xa0] sm:$0xff]  ;;  %v613_v45 = vmul.f32 %v5301_v41, %v5301_v41  ;;  %v612_v46 = vmul.f32 %v5304_v42, %v5304_v42  ;;  %v611_v47 = vmul.f32 %v5309_v43, %v5309_v43  ;;  %v5325_v49 = vld [vmem:[%s5166_s30 + $0xd8] sm:$0xff]  ;;  %v5328_v50 = vld [vmem:[%s5166_s30 + $0xd0] sm:$0xff] }
  0x7d   : > { %626 = vadd.xlane.f32.xlu0 %v592_v4  ;;  %628 = vadd.xlane.f32.xlu1 %v593_v5  ;;  %v610_v48 = vmul.f32 %v5312_v44, %v5312_v44  ;;  %v5333_v51 = vld [vmem:[%s5166_s30 + $0xc8] sm:$0xff]  ;;  %v5336_v52 = vld [vmem:[%s5166_s30 + $0xc0] sm:$0xff]  ;;  %v617_v53 = vmul.f32 %v5325_v49, %v5325_v49  ;;  %v616_v54 = vmul.f32 %v5328_v50, %v5328_v50  ;;  %v523_v57 = vld [vmem:[%s5166_s30 + $0xf8] sm:$0xff]  ;;  %s6955_s21 = scalar_lea.hbm %s7074_s24, %s4131_s19  ;;  %p4840_p6 = pneg %p4839_p4 }
  0x7e   : > { %v615_v55 = vmul.f32 %v5333_v51, %v5333_v51  ;;  %v614_v56 = vmul.f32 %v5336_v52, %v5336_v52  ;;  %v522_v58 = vld [vmem:[%s5166_s30 + $0xf0] sm:$0xff]  ;;  %v521_v59 = vld [vmem:[%s5166_s30 + $0xe8] sm:$0xff]  ;;  %v520_v60 = vld [vmem:[%s5166_s30 + $0xe0] sm:$0xff]  ;;  %v621_v61 = vmul.f32 %v523_v57, %v523_v57 }
  0x7f   : > { %v620_v62 = vmul.f32 %v522_v58, %v522_v58  ;;  %v619_v63 = vmul.f32 %v521_v59, %v521_v59  ;;  %v618_v4 = vmul.f32 %v520_v60, %v520_v60  ;;  %v1103_v5 = vld [vmem:[%s7007_s4 + $0x8] sm:$0xff] }
  0x81   : > { %624 = vadd.xlane.f32.xlu1 %v591_v6  ;;  %622 = vadd.xlane.f32.xlu0 %v590_v7 }
  0x85   : > { %540 = vadd.xlane.f32.xlu1 %v5201_v8  ;;  %538 = vadd.xlane.f32.xlu0 %v5204_v9 }
  0x89   : > { %536 = vadd.xlane.f32.xlu1 %v5207_v10  ;;  %534 = vadd.xlane.f32.xlu0 %v5210_v11 }
  0x8d   : > { %636 = vadd.xlane.f32.xlu1 %v597_v12  ;;  %634 = vadd.xlane.f32.xlu0 %v596_v13  ;;  %v1104_v12 = vld [vmem:[%s7007_s4 + $0x10] sm:$0xff]  ;;  %v1102_v13 = vld [vmem:[%s7007_s4] sm:$0xff] }
  0x91   : > { %632 = vadd.xlane.f32.xlu1 %v595_v14  ;;  %630 = vadd.xlane.f32.xlu0 %v594_v15 }
  0x95   : > { %548 = vadd.xlane.f32.xlu1 %v5225_v16  ;;  %546 = vadd.xlane.f32.xlu0 %v5228_v17 }
  0x99   : > { %544 = vadd.xlane.f32.xlu1 %v5233_v18  ;;  %542 = vadd.xlane.f32.xlu0 %v5236_v19 }
  0x9d   : > { %644 = vadd.xlane.f32.xlu1 %v601_v20  ;;  %642 = vadd.xlane.f32.xlu0 %v600_v21 }
  0xa1   : > { %640 = vadd.xlane.f32.xlu1 %v599_v22  ;;  %638 = vadd.xlane.f32.xlu0 %v598_v23  ;;  %v1105_v22 = vld [vmem:[%s7007_s4 + $0x18] sm:$0xff] }
  0xa5   : > { %556 = vadd.xlane.f32.xlu1 %v5249_v24  ;;  %554 = vadd.xlane.f32.xlu0 %v5252_v25 }
  0xa9   : > { %552 = vadd.xlane.f32.xlu1 %v5257_v26  ;;  %550 = vadd.xlane.f32.xlu0 %v5260_v27 }
  0xad   : > { %652 = vadd.xlane.f32.xlu1 %v605_v28  ;;  %650 = vadd.xlane.f32.xlu0 %v604_v29 }
  0xb1   : > { %648 = vadd.xlane.f32.xlu1 %v603_v30  ;;  %646 = vadd.xlane.f32.xlu0 %v602_v31 }
  0xb5   : > { %564 = vadd.xlane.f32.xlu1 %v5275_v33  ;;  %562 = vadd.xlane.f32.xlu0 %v5278_v34 }
  0xb9   : > { %560 = vadd.xlane.f32.xlu1 %v5285_v35  ;;  %558 = vadd.xlane.f32.xlu0 %v5288_v36 }
  0xbd   : > { %660 = vadd.xlane.f32.xlu1 %v609_v37  ;;  %658 = vadd.xlane.f32.xlu0 %v608_v38 }
  0xc1   : > { %656 = vadd.xlane.f32.xlu1 %v607_v39  ;;  %654 = vadd.xlane.f32.xlu0 %v606_v40  ;;  %v1921_v40 = vld [vmem:[%s7009_s6] sm:$0xff] }
  0xc5   : > { %572 = vadd.xlane.f32.xlu1 %v5301_v41  ;;  %570 = vadd.xlane.f32.xlu0 %v5304_v42 }
  0xc9   : > { %568 = vadd.xlane.f32.xlu1 %v5309_v43  ;;  %566 = vadd.xlane.f32.xlu0 %v5312_v44 }
  0xcd   : > { %668 = vadd.xlane.f32.xlu1 %v613_v45  ;;  %666 = vadd.xlane.f32.xlu0 %v612_v46 }
  0xd1   : > { %664 = vadd.xlane.f32.xlu1 %v611_v47  ;;  %662 = vadd.xlane.f32.xlu0 %v610_v48 }
  0xd5   : > { %580 = vadd.xlane.f32.xlu1 %v5325_v49  ;;  %578 = vadd.xlane.f32.xlu0 %v5328_v50 }
  0xd9   : > { %576 = vadd.xlane.f32.xlu1 %v5333_v51  ;;  %574 = vadd.xlane.f32.xlu0 %v5336_v52 }
  0xdd   : > { %676 = vadd.xlane.f32.xlu1 %v617_v53  ;;  %674 = vadd.xlane.f32.xlu0 %v616_v54 }
  0xe1   : > { %672 = vadd.xlane.f32.xlu1 %v615_v55  ;;  %670 = vadd.xlane.f32.xlu0 %v614_v56 }
  0xe5   : > { %588 = vadd.xlane.f32.xlu1 %v523_v57  ;;  %586 = vadd.xlane.f32.xlu0 %v522_v58 }
  0xe9   : > { %584 = vadd.xlane.f32.xlu1 %v521_v59  ;;  %582 = vadd.xlane.f32.xlu0 %v520_v60  ;;  %v1922_v59 = vld [vmem:[%s7009_s6 + $0x8] sm:$0xff] }
  0xed   : > { %684 = vadd.xlane.f32.xlu1 %v621_v61  ;;  %682 = vadd.xlane.f32.xlu0 %v620_v62 }
  0xf1   : > { %680 = vadd.xlane.f32.xlu1 %v619_v63  ;;  %678 = vadd.xlane.f32.xlu0 %v618_v4 }
 0x102   : > { %v531_v6 = vpop.xlane.xlu0 %530  ;;  %v527_v7 = vpop.xlane.xlu1 %526  ;;  %1113 = vperm.xlu1 %4319, %v1103_v5  }
 0x103   : > { %v5361_v20 = vmul.f32 0.0078125, %v531_v6  ;;  %v5368_v23 = vmul.f32 0.0078125, %v527_v7 }
 0x105   : > { %v752_v31 = vmul.f32 %v5361_v20, %v5361_v20  ;;  %v750_v47 = vmul.f32 %v5368_v23, %v5368_v23 }
 0x106   : > { %v533_v14 = vpop.xlane.xlu0 %532  ;;  %v529_v15 = vpop.xlane.xlu1 %528  ;;  %1118 = vperm.xlu1 %4319, %v1104_v12  }
 0x107   : > { %v5363_v21 = vmul.f32 0.0078125, %v533_v14  ;;  %1108 = vperm.xlu0 %4318, %v1102_v13   ;;  %v5370_v28 = vmul.f32 0.0078125, %v529_v15 }
 0x109   : > { %v753_v37 = vmul.f32 %v5363_v21, %v5363_v21  ;;  %v751_v48 = vmul.f32 %v5370_v28, %v5370_v28 }
 0x10a   : > { %v627_v29 = vpop.xlane.xlu0 %626  ;;  %v629_v30 = vpop.xlane.xlu1 %628  ;;  %1123 = vperm.xlu1 %4319, %v1105_v22  }
 0x10b   : > { %v720_v38 = vmul.f32 0.0078125, %v627_v29  ;;  %v721_v39 = vmul.f32 0.0078125, %v629_v30 }
 0x10d   : > { %v784_v45 = vsub.f32 %v720_v38, %v752_v31  ;;  %v785_v46 = vsub.f32 %v721_v39, %v753_v37 }
 0x10e   : > { %v625_v53 = vpop.xlane.xlu1 %624  ;;  %v623_v54 = vpop.xlane.xlu0 %622  ;;  %1925 = vperm.xlu1 %4319, %v1921_v40  }
 0x10f   : > { %v816_v55 = vmax.f32 %v784_v45, 0.0  ;;  %v817_v56 = vmax.f32 %v785_v46, 0.0  ;;  %v719_v57 = vmul.f32 0.0078125, %v625_v53  ;;  %v718_v58 = vmul.f32 0.0078125, %v623_v54 }
 0x111   : > { %v880_v60 = vadd.f32 1e-05, %v816_v55  ;;  %v881_v61 = vadd.f32 1e-05, %v817_v56  ;;  %v783_v62 = vsub.f32 %v719_v57, %v751_v48  ;;  %v782_v63 = vsub.f32 %v718_v58, %v750_v47  ;;  %v5403_v55 = vld [vmem:[%s7004_s1] ss:$0 sm:$0xff] }
 0x112   : > { %v541_v4 = vpop.xlane.xlu1 %540  ;;  %v539_v5 = vpop.xlane.xlu0 %538  ;;  %1930 = vperm.xlu1 %4319, %v1922_v59   ;;  %v848_v47 = vsub.f32 %v5177_v0, %v5361_v20  ;;  %v849_v57 = vsub.f32 %v5185_v2, %v5363_v21  ;;  %v847_v2 = vsub.f32 %v5188_v3, %v5370_v28 }
 0x113   : > { %4363 = vrsqrt.f32 %v880_v60  ;;  %v815_v6 = vmax.f32 %v783_v62, 0.0  ;;  %v814_v7 = vmax.f32 %v782_v63, 0.0  ;;  %v5386_v22 = vmul.f32 0.0078125, %v541_v4 }
 0x114   : > { %4365 = vrsqrt.f32 %v881_v61  ;;  %v5388_v29 = vmul.f32 0.0078125, %v539_v5  ;;  %v5414_v5 = vld [vmem:[%s7005_s2] ss:$0 sm:$0xff] }
 0x115   : > { %v879_v12 = vadd.f32 1e-05, %v815_v6  ;;  %v878_v13 = vadd.f32 1e-05, %v814_v7  ;;  %v757_v39 = vmul.f32 %v5386_v22, %v5386_v22 }
 0x116   : > { %v537_v14 = vpop.xlane.xlu1 %536  ;;  %v535_v15 = vpop.xlane.xlu0 %534  ;;  %v756_v40 = vmul.f32 %v5388_v29, %v5388_v29 }
 0x117   : > { %4367 = vrsqrt.f32 %v879_v12  ;;  %v5390_v30 = vmul.f32 0.0078125, %v537_v14  ;;  %v5392_v31 = vmul.f32 0.0078125, %v535_v15 }
 0x118   : > { %4369 = vrsqrt.f32 %v878_v13 }
 0x119   : > { %v755_v58 = vmul.f32 %v5390_v30, %v5390_v30  ;;  %v754_v59 = vmul.f32 %v5392_v31, %v5392_v31 }
 0x11a   : > { %v637_v37 = vpop.xlane.xlu1 %636  ;;  %v635_v38 = vpop.xlane.xlu0 %634 }
 0x11b   : > { %v725_v45 = vmul.f32 0.0078125, %v637_v37  ;;  %v724_v46 = vmul.f32 0.0078125, %v635_v38  ;;  %v846_v38 = vsub.f32 %v5180_v1, %v5368_v23 }
 0x11d   : > { %v4364_v48 = vpop.eup %4363  ;;  %v789_v53 = vsub.f32 %v725_v45, %v757_v39  ;;  %v788_v54 = vsub.f32 %v724_v46, %v756_v40 }
 0x11e   : > { %v4366_v56 = vpop.eup %4365  ;;  %v633_v60 = vpop.xlane.xlu1 %632  ;;  %v944_v20 = vmul.f32 %v4364_v48, %v848_v47 }
 0x11f   : > { %v631_v0 = vpop.xlane.xlu0 %630  ;;  %v821_v61 = vmax.f32 %v789_v53, 0.0  ;;  %v820_v62 = vmax.f32 %v788_v54, 0.0  ;;  %v723_v63 = vmul.f32 0.0078125, %v633_v60  ;;  %v945_v21 = vmul.f32 %v4366_v56, %v849_v57 }
 0x120   : > { %v722_v4 = vmul.f32 0.0078125, %v631_v0  ;;  %v982_v6 = vmul.f32 %v5403_v55, %v944_v20 }
 0x121   : > { %v4368_v7 = vpop.eup %4367  ;;  %v885_v12 = vadd.f32 1e-05, %v821_v61  ;;  %v884_v13 = vadd.f32 1e-05, %v820_v62  ;;  %v787_v14 = vsub.f32 %v723_v63, %v755_v58  ;;  %v983_v45 = vmul.f32 %v5403_v55, %v945_v21 }
 0x122   : > { %v786_v15 = vsub.f32 %v722_v4, %v754_v59  ;;  %v4370_v37 = vpop.eup %4369  ;;  %v549_v39 = vpop.xlane.xlu1 %548  ;;  %v5423_v46 = vadd.f32 %v5414_v5, %v982_v6  ;;  %v943_v47 = vmul.f32 %v4368_v7, %v847_v2 }
 0x123   : > { %v547_v40 = vpop.xlane.xlu0 %546  ;;  %4371 = vrsqrt.f32 %v885_v12  ;;  %v819_v3 = vmax.f32 %v787_v14, 0.0  ;;  %v5426_v48 = vadd.f32 %v5414_v5, %v983_v45  ;;  %v942_v53 = vmul.f32 %v4370_v37, %v846_v38 }
 0x124   : > { %v818_v28 = vmax.f32 %v786_v15, 0.0  ;;  %4373 = vrsqrt.f32 %v884_v13  ;;  %v5431_v59 = vmul.f32 0.0078125, %v549_v39  ;;  %v5433_v60 = vmul.f32 0.0078125, %v547_v40  ;;  %v5457_v39 = vld [vmem:[%s7006_s3] sm:$0xff]  }
 0x125   : > { %v883_v54 = vadd.f32 1e-05, %v819_v3  ;;  %v1051_v1 = vpack.c.bf16 %v5426_v48, %v5423_v46  ;;  %v980_v58 = vmul.f32 %v5403_v55, %v942_v53  ;;  %v981_v0 = vmul.f32 %v5403_v55, %v943_v47 }
 0x126   : > { %v882_v56 = vadd.f32 1e-05, %v818_v28  ;;  %v545_v23 = vpop.xlane.xlu1 %544  ;;  %v761_v21 = vmul.f32 %v5431_v59, %v5431_v59  ;;  %v760_v6 = vmul.f32 %v5433_v60, %v5433_v60  ;;  %v853_v13 = vsub.f32 %v5201_v8, %v5386_v22 }
 0x127   : > { %v543_v57 = vpop.xlane.xlu0 %542  ;;  %4375 = vrsqrt.f32 %v883_v54  ;;  %1143 = vmatprep.subr.bf16.mxu0 %v1051_v1  ;;  %v5437_v20 = vadd.f32 %v5414_v5, %v980_v58  ;;  %v5439_v61 = vmul.f32 0.0078125, %v545_v23  ;;  %v5444_v4 = vadd.f32 %v5414_v5, %v981_v0 }
 0x128   : > { %4377 = vrsqrt.f32 %v882_v56  ;;  %v5441_v62 = vmul.f32 0.0078125, %v543_v57  ;;  %v852_v45 = vsub.f32 %v5204_v9, %v5388_v29  ;;  %v851_v23 = vsub.f32 %v5207_v10, %v5390_v30 }
 0x129   : > { %v1050_v14 = vpack.c.bf16 %v5444_v4, %v5437_v20  ;;  %v759_v3 = vmul.f32 %v5439_v61, %v5439_v61 }
 0x12a   : > { %v645_v63 = vpop.xlane.xlu1 %644  ;;  %v758_v8 = vmul.f32 %v5441_v62, %v5441_v62 }
 0x12b   : > { %v643_v2 = vpop.xlane.xlu0 %642  ;;  %v729_v7 = vmul.f32 0.0078125, %v645_v63  ;;  %1144 = vmatpush1.bf16.msra.mxu0 %v1050_v14 }
 0x12c   : > { %v728_v12 = vmul.f32 0.0078125, %v643_v2 }
 0x12d   : > { %v4372_v15 = vpop.eup %4371  ;;  %v793_v37 = vsub.f32 %v729_v7, %v761_v21 }
 0x12e   : > { %v792_v38 = vsub.f32 %v728_v12, %v760_v6  ;;  %v4374_v40 = vpop.eup %4373  ;;  %v641_v22 = vpop.xlane.xlu1 %640  ;;  %v949_v47 = vmul.f32 %v4372_v15, %v853_v13  ;;  %4062 = vmatmul.mubr.msk.bf16.vlgmr.msra.gmra.mrb[0].mxu0 %vm1136_vm0, %v5457_v39  ;;  %v850_v6 = vsub.f32 %v5210_v11, %v5392_v31  ;;  %v5483_v31 = vld [vmem:[%s7006_s3 + $0x8] sm:$0xff]  }
 0x12f   : > { %v639_v28 = vpop.xlane.xlu0 %638  ;;  %v825_v53 = vmax.f32 %v793_v37, 0.0  ;;  %v727_v56 = vmul.f32 0.0078125, %v641_v22  ;;  %v948_v57 = vmul.f32 %v4374_v40, %v852_v45  ;;  %1185 = vmatprep.mubr.bf16.mxu0 %v7025_v32 }
 0x130   : > { %v824_v54 = vmax.f32 %v792_v38, 0.0  ;;  %v726_v1 = vmul.f32 0.0078125, %v639_v28  ;;  %v987_v9 = vmul.f32 %v5403_v55, %v949_v47 }
 0x131   : > { %v4376_v29 = vpop.eup %4375  ;;  %v889_v58 = vadd.f32 1e-05, %v825_v53  ;;  %v791_v63 = vsub.f32 %v727_v56, %v759_v3  ;;  %v986_v10 = vmul.f32 %v5403_v55, %v948_v57 }
 0x132   : > { %v888_v0 = vadd.f32 1e-05, %v824_v54  ;;  %v790_v2 = vsub.f32 %v726_v1, %v758_v8  ;;  %v4378_v21 = vpop.eup %4377  ;;  %v557_v7 = vpop.xlane.xlu1 %556  ;;  %v5475_v30 = vadd.f32 %v5414_v5, %v987_v9  ;;  %v947_v15 = vmul.f32 %v4376_v29, %v851_v23 }
 0x133   : > { %v555_v12 = vpop.xlane.xlu0 %554  ;;  %4379 = vrsqrt.f32 %v889_v58  ;;  %v823_v13 = vmax.f32 %v791_v63, 0.0  ;;  %v5478_v37 = vadd.f32 %v5414_v5, %v986_v10  ;;  %v946_v38 = vmul.f32 %v4378_v21, %v850_v6 }
 0x134   : > { %v822_v14 = vmax.f32 %v790_v2, 0.0  ;;  %4381 = vrsqrt.f32 %v888_v0  ;;  %v5488_v28 = vmul.f32 0.0078125, %v557_v7  ;;  %v5490_v47 = vmul.f32 0.0078125, %v555_v12 }
 0x135   : > { %v887_v40 = vadd.f32 1e-05, %v823_v13  ;;  %v1053_v3 = vpack.c.bf16 %v5475_v30, %v5478_v37  ;;  %v984_v22 = vmul.f32 %v5403_v55, %v946_v38  ;;  %v985_v53 = vmul.f32 %v5403_v55, %v947_v15 }
 0x136   : > { %v886_v11 = vadd.f32 1e-05, %v822_v14  ;;  %v553_v45 = vpop.xlane.xlu1 %552  ;;  %4063 = vmatmul.mubr.msk.bf16.gmra.mrb[4].mxu0 %vm1136_vm0, %v5483_v31  ;;  %v765_v29 = vmul.f32 %v5488_v28, %v5488_v28  ;;  %v764_v58 = vmul.f32 %v5490_v47, %v5490_v47  ;;  %v857_v2 = vsub.f32 %v5225_v16, %v5431_v59 }
 0x137   : > { %v551_v8 = vpop.xlane.xlu0 %550  ;;  %4383 = vrsqrt.f32 %v887_v40  ;;  %1196 = vmatprep.subr.bf16.mxu1 %v1053_v3  ;;  %v5494_v54 = vadd.f32 %v5414_v5, %v984_v22  ;;  %v5498_v56 = vmul.f32 0.0078125, %v553_v45  ;;  %v5503_v57 = vadd.f32 %v5414_v5, %v985_v53  ;;  %1281 = vmatprep.mubr.bf16.mxu0 %v7025_v32 }
 0x138   : > { %4385 = vrsqrt.f32 %v886_v11  ;;  %v5500_v1 = vmul.f32 0.0078125, %v551_v8  ;;  %v856_v13 = vsub.f32 %v5228_v17, %v5433_v60  ;;  %v855_v8 = vsub.f32 %v5233_v18, %v5439_v61 }
 0x139   : > { %v1052_v21 = vpack.c.bf16 %v5503_v57, %v5494_v54  ;;  %v763_v14 = vmul.f32 %v5498_v56, %v5498_v56 }
 0x13a   : > { %v653_v23 = vpop.xlane.xlu1 %652  ;;  %v762_v15 = vmul.f32 %v5500_v1, %v5500_v1 }
 0x13b   : > { %v651_v9 = vpop.xlane.xlu0 %650  ;;  %v733_v0 = vmul.f32 0.0078125, %v653_v23  ;;  %1197 = vmatpush1.bf16.msra.mxu1 %v1052_v21 }
 0x13c   : > { %v732_v63 = vmul.f32 0.0078125, %v651_v9 }
 0x13d   : > { %v4380_v6 = vpop.eup %4379  ;;  %v797_v7 = vsub.f32 %v733_v0, %v765_v29  ;;  %v854_v0 = vsub.f32 %v5236_v19, %v5441_v62 }
 0x13e   : > { %v796_v12 = vsub.f32 %v732_v63, %v764_v58  ;;  %v4382_v10 = vpop.eup %4381  ;;  %v649_v38 = vpop.xlane.xlu1 %648  ;;  %v953_v16 = vmul.f32 %v4380_v6, %v857_v2  ;;  %4064 = vmatmul.mubr.msk.bf16.vlgmr.msra.gmra.mrb[0].mxu1 %vm1136_vm0, %v5457_v39 }
 0x13f   : > { %v647_v40 = vpop.xlane.xlu0 %646  ;;  %v829_v59 = vmax.f32 %v797_v7, 0.0  ;;  %v731_v45 = vmul.f32 0.0078125, %v649_v38  ;;  %v952_v22 = vmul.f32 %v4382_v10, %v856_v13  ;;  %1238 = vmatprep.mubr.bf16.mxu1 %v7025_v32 }
 0x140   : > { %v828_v11 = vmax.f32 %v796_v12, 0.0  ;;  %v730_v3 = vmul.f32 0.0078125, %v647_v40  ;;  %v991_v17 = vmul.f32 %v5403_v55, %v953_v16 }
 0x141   : > { %v4384_v60 = vpop.eup %4383  ;;  %v893_v53 = vadd.f32 1e-05, %v829_v59  ;;  %v795_v9 = vsub.f32 %v731_v45, %v763_v14  ;;  %v990_v18 = vmul.f32 %v5403_v55, %v952_v22 }
 0x142   : > { %v892_v23 = vadd.f32 1e-05, %v828_v11  ;;  %v794_v29 = vsub.f32 %v730_v3, %v762_v15  ;;  %v4386_v58 = vpop.eup %4385  ;;  %v565_v63 = vpop.xlane.xlu1 %564  ;;  %v5530_v61 = vadd.f32 %v5414_v5, %v991_v17  ;;  %v951_v7 = vmul.f32 %v4384_v60, %v855_v8 }
 0x143   : > { %v563_v2 = vpop.xlane.xlu0 %562  ;;  %4387 = vrsqrt.f32 %v893_v53  ;;  %v827_v21 = vmax.f32 %v795_v9, 0.0  ;;  %v5533_v12 = vadd.f32 %v5414_v5, %v990_v18  ;;  %v950_v10 = vmul.f32 %v4386_v58, %v854_v0 }
 0x144   : > { %v826_v6 = vmax.f32 %v794_v29, 0.0  ;;  %4389 = vrsqrt.f32 %v892_v23  ;;  %v5538_v40 = vmul.f32 0.0078125, %v565_v63  ;;  %v5540_v16 = vmul.f32 0.0078125, %v563_v2 }
 0x145   : > { %v891_v13 = vadd.f32 1e-05, %v827_v21  ;;  %v1055_v14 = vpack.c.bf16 %v5530_v61, %v5533_v12  ;;  %v988_v38 = vmul.f32 %v5403_v55, %v950_v10  ;;  %v989_v59 = vmul.f32 %v5403_v55, %v951_v7 }
 0x146   : > { %v890_v19 = vadd.f32 1e-05, %v826_v6  ;;  %v561_v62 = vpop.xlane.xlu1 %560  ;;  %4065 = vmatmul.mubr.msk.bf16.gmra.mrb[4].mxu1 %vm1136_vm0, %v5483_v31  ;;  %v769_v60 = vmul.f32 %v5538_v40, %v5538_v40  ;;  %v768_v53 = vmul.f32 %v5540_v16, %v5540_v16  ;;  %v861_v29 = vsub.f32 %v5249_v24, %v5488_v28 }
 0x147   : > { %v559_v15 = vpop.xlane.xlu0 %558  ;;  %4391 = vrsqrt.f32 %v891_v13  ;;  %1249 = vmatprep.subr.bf16.mxu0 %v1055_v14  ;;  %v5544_v11 = vadd.f32 %v5414_v5, %v988_v38  ;;  %v5548_v45 = vmul.f32 0.0078125, %v561_v62  ;;  %v5553_v22 = vadd.f32 %v5414_v5, %v989_v59  ;;  %1334 = vmatprep.mubr.bf16.mxu1 %v7025_v32 }
 0x148   : > { %4393 = vrsqrt.f32 %v890_v19  ;;  %v5550_v3 = vmul.f32 0.0078125, %v559_v15  ;;  %v860_v21 = vsub.f32 %v5252_v25, %v5490_v47  ;;  %v859_v15 = vsub.f32 %v5257_v26, %v5498_v56 }
 0x149   : > { %v1054_v58 = vpack.c.bf16 %v5553_v22, %v5544_v11  ;;  %v767_v6 = vmul.f32 %v5548_v45, %v5548_v45 }
 0x14a   : > { %v661_v8 = vpop.xlane.xlu1 %660  ;;  %v766_v7 = vmul.f32 %v5550_v3, %v5550_v3 }
 0x14b   : > { %v659_v17 = vpop.xlane.xlu0 %658  ;;  %v737_v23 = vmul.f32 0.0078125, %v661_v8  ;;  %1250 = vmatpush1.bf16.msra.mxu0 %v1054_v58 }
 0x14c   : > { %v736_v9 = vmul.f32 0.0078125, %v659_v17 }
 0x14d   : > { %v4388_v0 = vpop.eup %4387  ;;  %v801_v63 = vsub.f32 %v737_v23, %v769_v60  ;;  %v858_v23 = vsub.f32 %v5260_v27, %v5500_v1 }
 0x14e   : > { %v800_v2 = vsub.f32 %v736_v9, %v768_v53  ;;  %v4390_v18 = vpop.eup %4389  ;;  %v657_v10 = vpop.xlane.xlu1 %656  ;;  %v957_v24 = vmul.f32 %v4388_v0, %v861_v29  ;;  %4066 = vmatmul.mubr.msk.bf16.vlgmr.msra.gmra.mrb[8].mxu0 %vm1136_vm0, %v5457_v39 }
 0x14f   : > { %v655_v13 = vpop.xlane.xlu0 %654  ;;  %v833_v28 = vmax.f32 %v801_v63, 0.0  ;;  %v735_v62 = vmul.f32 0.0078125, %v657_v10  ;;  %v956_v38 = vmul.f32 %v4390_v18, %v860_v21  ;;  %1291 = vmatprep.mubr.bf16.mxu0 %v7025_v32 }
 0x150   : > { %v832_v19 = vmax.f32 %v800_v2, 0.0  ;;  %v734_v14 = vmul.f32 0.0078125, %v655_v13  ;;  %v995_v25 = vmul.f32 %v5403_v55, %v957_v24 }
 0x151   : > { %v4392_v47 = vpop.eup %4391  ;;  %v897_v59 = vadd.f32 1e-05, %v833_v28  ;;  %v799_v17 = vsub.f32 %v735_v62, %v767_v6  ;;  %v994_v26 = vmul.f32 %v5403_v55, %v956_v38 }
 0x152   : > { %v896_v8 = vadd.f32 1e-05, %v832_v19  ;;  %v798_v60 = vsub.f32 %v734_v14, %v766_v7  ;;  %v4394_v53 = vpop.eup %4393  ;;  %v573_v9 = vpop.xlane.xlu1 %572  ;;  %v5580_v56 = vadd.f32 %v5414_v5, %v995_v25  ;;  %v955_v63 = vmul.f32 %v4392_v47, %v859_v15 }
 0x153   : > { %v571_v29 = vpop.xlane.xlu0 %570  ;;  %4395 = vrsqrt.f32 %v897_v59  ;;  %v831_v58 = vmax.f32 %v799_v17, 0.0  ;;  %v5583_v2 = vadd.f32 %v5414_v5, %v994_v26  ;;  %v954_v18 = vmul.f32 %v4394_v53, %v858_v23 }
 0x154   : > { %v830_v0 = vmax.f32 %v798_v60, 0.0  ;;  %4397 = vrsqrt.f32 %v896_v8  ;;  %v5588_v13 = vmul.f32 0.0078125, %v573_v9  ;;  %v5590_v24 = vmul.f32 0.0078125, %v571_v29 }
 0x155   : > { %v895_v21 = vadd.f32 1e-05, %v831_v58  ;;  %v1057_v6 = vpack.c.bf16 %v5580_v56, %v5583_v2  ;;  %v992_v10 = vmul.f32 %v5403_v55, %v954_v18  ;;  %v993_v28 = vmul.f32 %v5403_v55, %v955_v63 }
 0x156   : > { %v894_v27 = vadd.f32 1e-05, %v830_v0  ;;  %v569_v1 = vpop.xlane.xlu1 %568  ;;  %4067 = vmatmul.mubr.msk.bf16.gmra.mrb[12].mxu0 %vm1136_vm0, %v5483_v31  ;;  %v773_v47 = vmul.f32 %v5588_v13, %v5588_v13  ;;  %v772_v59 = vmul.f32 %v5590_v24, %v5590_v24  ;;  %v865_v60 = vsub.f32 %v5275_v33, %v5538_v40 }
 0x157   : > { %v567_v7 = vpop.xlane.xlu0 %566  ;;  %4399 = vrsqrt.f32 %v895_v21  ;;  %1302 = vmatprep.subr.bf16.mxu1 %v1057_v6  ;;  %v5594_v19 = vadd.f32 %v5414_v5, %v992_v10  ;;  %v5598_v62 = vmul.f32 0.0078125, %v569_v1  ;;  %v5603_v38 = vadd.f32 %v5414_v5, %v993_v28  ;;  %1387 = vmatprep.mubr.bf16.mxu0 %v7025_v32 }
 0x158   : > { %4401 = vrsqrt.f32 %v894_v27  ;;  %v5600_v14 = vmul.f32 0.0078125, %v567_v7  ;;  %v864_v58 = vsub.f32 %v5278_v34, %v5540_v16  ;;  %v863_v7 = vsub.f32 %v5285_v35, %v5548_v45 }
 0x159   : > { %v1056_v53 = vpack.c.bf16 %v5603_v38, %v5594_v19  ;;  %v771_v0 = vmul.f32 %v5598_v62, %v5598_v62 }
 0x15a   : > { %v669_v15 = vpop.xlane.xlu1 %668  ;;  %v770_v63 = vmul.f32 %v5600_v14, %v5600_v14 }
 0x15b   : > { %v667_v25 = vpop.xlane.xlu0 %666  ;;  %v741_v8 = vmul.f32 0.0078125, %v669_v15  ;;  %1303 = vmatpush1.bf16.msra.mxu1 %v1056_v53 }
 0x15c   : > { %v740_v17 = vmul.f32 0.0078125, %v667_v25 }
 0x15d   : > { %v4396_v23 = vpop.eup %4395  ;;  %v805_v9 = vsub.f32 %v741_v8, %v773_v47  ;;  %v862_v8 = vsub.f32 %v5288_v36, %v5550_v3 }
 0x15e   : > { %v804_v29 = vsub.f32 %v740_v17, %v772_v59  ;;  %v4398_v26 = vpop.eup %4397  ;;  %v665_v18 = vpop.xlane.xlu1 %664  ;;  %v961_v33 = vmul.f32 %v4396_v23, %v865_v60  ;;  %4068 = vmatmul.mubr.msk.bf16.vlgmr.msra.gmra.mrb[8].mxu1 %vm1136_vm0, %v5457_v39 }
 0x15f   : > { %v663_v21 = vpop.xlane.xlu0 %662  ;;  %v837_v40 = vmax.f32 %v805_v9, 0.0  ;;  %v739_v1 = vmul.f32 0.0078125, %v665_v18  ;;  %v960_v10 = vmul.f32 %v4398_v26, %v864_v58  ;;  %1344 = vmatprep.mubr.bf16.mxu1 %v7025_v32 }
 0x160   : > { %v836_v27 = vmax.f32 %v804_v29, 0.0  ;;  %v738_v6 = vmul.f32 0.0078125, %v663_v21  ;;  %v999_v34 = vmul.f32 %v5403_v55, %v961_v33 }
 0x161   : > { %v4400_v16 = vpop.eup %4399  ;;  %v901_v28 = vadd.f32 1e-05, %v837_v40  ;;  %v803_v25 = vsub.f32 %v739_v1, %v771_v0  ;;  %v998_v35 = vmul.f32 %v5403_v55, %v960_v10 }
 0x162   : > { %v900_v15 = vadd.f32 1e-05, %v836_v27  ;;  %v802_v47 = vsub.f32 %v738_v6, %v770_v63  ;;  %v4402_v59 = vpop.eup %4401  ;;  %v581_v17 = vpop.xlane.xlu1 %580  ;;  %v5630_v45 = vadd.f32 %v5414_v5, %v999_v34  ;;  %v959_v9 = vmul.f32 %v4400_v16, %v863_v7 }
 0x163   : > { %v579_v60 = vpop.xlane.xlu0 %578  ;;  %4403 = vrsqrt.f32 %v901_v28  ;;  %v835_v53 = vmax.f32 %v803_v25, 0.0  ;;  %v5633_v29 = vadd.f32 %v5414_v5, %v998_v35  ;;  %v958_v26 = vmul.f32 %v4402_v59, %v862_v8 }
 0x164   : > { %v834_v23 = vmax.f32 %v802_v47, 0.0  ;;  %4405 = vrsqrt.f32 %v900_v15  ;;  %v5638_v21 = vmul.f32 0.0078125, %v581_v17  ;;  %v5640_v33 = vmul.f32 0.0078125, %v579_v60 }
 0x165   : > { %v899_v58 = vadd.f32 1e-05, %v835_v53  ;;  %v1059_v0 = vpack.c.bf16 %v5630_v45, %v5633_v29  ;;  %v996_v18 = vmul.f32 %v5403_v55, %v958_v26  ;;  %v997_v40 = vmul.f32 %v5403_v55, %v959_v9 }
 0x166   : > { %v898_v36 = vadd.f32 1e-05, %v834_v23  ;;  %v577_v3 = vpop.xlane.xlu1 %576  ;;  %4069 = vmatmul.mubr.msk.bf16.gmra.mrb[12].mxu1 %vm1136_vm0, %v5483_v31  ;;  %v777_v16 = vmul.f32 %v5638_v21, %v5638_v21  ;;  %v776_v28 = vmul.f32 %v5640_v33, %v5640_v33  ;;  %v869_v47 = vsub.f32 %v5301_v41, %v5588_v13 }
 0x167   : > { %v575_v63 = vpop.xlane.xlu0 %574  ;;  %4407 = vrsqrt.f32 %v899_v58  ;;  %1355 = vmatprep.subr.bf16.mxu0 %v1059_v0  ;;  %v5644_v27 = vadd.f32 %v5414_v5, %v996_v18  ;;  %v5648_v1 = vmul.f32 0.0078125, %v577_v3  ;;  %v5653_v10 = vadd.f32 %v5414_v5, %v997_v40  ;;  %1440 = vmatprep.mubr.bf16.mxu1 %v7025_v32 }
 0x168   : > { %4409 = vrsqrt.f32 %v898_v36  ;;  %v5650_v6 = vmul.f32 0.0078125, %v575_v63  ;;  %v868_v53 = vsub.f32 %v5304_v42, %v5590_v24  ;;  %v867_v63 = vsub.f32 %v5309_v43, %v5598_v62 }
 0x169   : > { %v1058_v59 = vpack.c.bf16 %v5653_v10, %v5644_v27  ;;  %v775_v23 = vmul.f32 %v5648_v1, %v5648_v1 }
 0x16a   : > { %v677_v7 = vpop.xlane.xlu1 %676  ;;  %v774_v9 = vmul.f32 %v5650_v6, %v5650_v6 }
 0x16b   : > { %v675_v34 = vpop.xlane.xlu0 %674  ;;  %v745_v15 = vmul.f32 0.0078125, %v677_v7  ;;  %1356 = vmatpush1.bf16.msra.mxu0 %v1058_v59 }
 0x16c   : > { %v744_v25 = vmul.f32 0.0078125, %v675_v34 }
 0x16d   : > { %v4404_v8 = vpop.eup %4403  ;;  %v809_v17 = vsub.f32 %v745_v15, %v777_v16  ;;  %v866_v15 = vsub.f32 %v5312_v44, %v5600_v14 }
 0x16e   : > { %v808_v60 = vsub.f32 %v744_v25, %v776_v28  ;;  %v4406_v35 = vpop.eup %4405  ;;  %v673_v26 = vpop.xlane.xlu1 %672  ;;  %v965_v41 = vmul.f32 %v4404_v8, %v869_v47  ;;  %4070 = vmatmul.mubr.msk.bf16.vlgmr.msra.gmra.mrb[16].mxu0 %vm1136_vm0, %v5457_v39 }
 0x16f   : > { %v671_v58 = vpop.xlane.xlu0 %670  ;;  %v841_v13 = vmax.f32 %v809_v17, 0.0  ;;  %v743_v3 = vmul.f32 0.0078125, %v673_v26  ;;  %v964_v18 = vmul.f32 %v4406_v35, %v868_v53  ;;  %1397 = vmatprep.mubr.bf16.mxu0 %v7025_v32 }
 0x170   : > { %v840_v36 = vmax.f32 %v808_v60, 0.0  ;;  %v742_v0 = vmul.f32 0.0078125, %v671_v58  ;;  %v1003_v42 = vmul.f32 %v5403_v55, %v965_v41 }
 0x171   : > { %v4408_v24 = vpop.eup %4407  ;;  %v905_v40 = vadd.f32 1e-05, %v841_v13  ;;  %v807_v34 = vsub.f32 %v743_v3, %v775_v23  ;;  %v1002_v43 = vmul.f32 %v5403_v55, %v964_v18 }
 0x172   : > { %v904_v7 = vadd.f32 1e-05, %v840_v36  ;;  %v806_v16 = vsub.f32 %v742_v0, %v774_v9  ;;  %v4410_v28 = vpop.eup %4409  ;;  %v589_v25 = vpop.xlane.xlu1 %588  ;;  %v5680_v62 = vadd.f32 %v5414_v5, %v1003_v42  ;;  %v963_v17 = vmul.f32 %v4408_v24, %v867_v63 }
 0x173   : > { %v587_v47 = vpop.xlane.xlu0 %586  ;;  %4411 = vrsqrt.f32 %v905_v40  ;;  %v839_v59 = vmax.f32 %v807_v34, 0.0  ;;  %v5683_v60 = vadd.f32 %v5414_v5, %v1002_v43  ;;  %v962_v35 = vmul.f32 %v4410_v28, %v866_v15 }
 0x174   : > { %v838_v8 = vmax.f32 %v806_v16, 0.0  ;;  %4413 = vrsqrt.f32 %v904_v7  ;;  %v5688_v58 = vmul.f32 0.0078125, %v589_v25  ;;  %v5690_v41 = vmul.f32 0.0078125, %v587_v47 }
 0x175   : > { %v903_v53 = vadd.f32 1e-05, %v839_v59  ;;  %v1061_v23 = vpack.c.bf16 %v5680_v62, %v5683_v60  ;;  %v1000_v26 = vmul.f32 %v5403_v55, %v962_v35  ;;  %v1001_v13 = vmul.f32 %v5403_v55, %v963_v17 }
 0x176   : > { %v902_v44 = vadd.f32 1e-05, %v838_v8  ;;  %v585_v14 = vpop.xlane.xlu1 %584  ;;  %4071 = vmatmul.mubr.msk.bf16.gmra.mrb[20].mxu0 %vm1136_vm0, %v5483_v31  ;;  %v781_v24 = vmul.f32 %v5688_v58, %v5688_v58  ;;  %v780_v40 = vmul.f32 %v5690_v41, %v5690_v41  ;;  %v873_v16 = vsub.f32 %v5325_v49, %v5638_v21 }
 0x177   : > { %v583_v9 = vpop.xlane.xlu0 %582  ;;  %4415 = vrsqrt.f32 %v903_v53  ;;  %1408 = vmatprep.subr.bf16.mxu1 %v1061_v23  ;;  %v5694_v36 = vadd.f32 %v5414_v5, %v1000_v26  ;;  %v5698_v3 = vmul.f32 0.0078125, %v585_v14  ;;  %v5703_v18 = vadd.f32 %v5414_v5, %v1001_v13  ;;  %1493 = vmatprep.mubr.bf16.mxu0 %v7025_v32 }
 0x178   : > { %4417 = vrsqrt.f32 %v902_v44  ;;  %v5700_v0 = vmul.f32 0.0078125, %v583_v9  ;;  %v872_v59 = vsub.f32 %v5328_v50, %v5640_v33  ;;  %v871_v9 = vsub.f32 %v5333_v51, %v5648_v1 }
 0x179   : > { %v1060_v28 = vpack.c.bf16 %v5703_v18, %v5694_v36  ;;  %v779_v8 = vmul.f32 %v5698_v3, %v5698_v3  ;;  %v870_v50 = vsub.f32 %v5336_v52, %v5650_v6 }
 0x17a   : > { %v685_v63 = vpop.xlane.xlu1 %684  ;;  %v778_v17 = vmul.f32 %v5700_v0, %v5700_v0 }
 0x17b   : > { %v683_v42 = vpop.xlane.xlu0 %682  ;;  %v749_v7 = vmul.f32 0.0078125, %v685_v63  ;;  %1409 = vmatpush1.bf16.msra.mxu1 %v1060_v28 }
 0x17c   : > { %v748_v34 = vmul.f32 0.0078125, %v683_v42 }
 0x17d   : > { %v4412_v15 = vpop.eup %4411  ;;  %v813_v25 = vsub.f32 %v749_v7, %v781_v24 }
 0x17e   : > { %v812_v47 = vsub.f32 %v748_v34, %v780_v40  ;;  %v4414_v43 = vpop.eup %4413  ;;  %v681_v35 = vpop.xlane.xlu1 %680  ;;  %v969_v49 = vmul.f32 %v4412_v15, %v873_v16  ;;  %4072 = vmatmul.mubr.msk.bf16.vlgmr.msra.gmra.mrb[16].mxu1 %vm1136_vm0, %v5457_v39 }
 0x17f   : > { %v679_v53 = vpop.xlane.xlu0 %678  ;;  %v845_v21 = vmax.f32 %v813_v25, 0.0  ;;  %v747_v14 = vmul.f32 0.0078125, %v681_v35  ;;  %v968_v33 = vmul.f32 %v4414_v43, %v872_v59  ;;  %1450 = vmatprep.mubr.bf16.mxu1 %v7025_v32 }
 0x180   : > { %v844_v44 = vmax.f32 %v812_v47, 0.0  ;;  %v746_v23 = vmul.f32 0.0078125, %v679_v53  ;;  %v1007_v26 = vmul.f32 %v5403_v55, %v969_v49  ;;  %v4747_v53 = vld [vmem:[%s5166_s30 + $0xf8] sm:$0xff] }
 0x181   : > { %v4416_v13 = vpop.eup %4415  ;;  %v909_v63 = vadd.f32 1e-05, %v845_v21  ;;  %v811_v24 = vsub.f32 %v747_v14, %v779_v8  ;;  %v1006_v34 = vmul.f32 %v5403_v55, %v968_v33  ;;  %v877_v49 = vsub.f32 %v4747_v53, %v5688_v58  ;;  %v4749_v33 = vld [vmem:[%s5166_s30 + $0xe8] sm:$0xff] }
 0x182   : > { %v908_v42 = vadd.f32 1e-05, %v844_v44  ;;  %v810_v40 = vsub.f32 %v746_v23, %v778_v17  ;;  %v4418_v7 = vpop.eup %4417  ;;  %v5730_v51 = vadd.f32 %v5414_v5, %v1007_v26  ;;  %v967_v52 = vmul.f32 %v4416_v13, %v871_v9  ;;  %v4748_v44 = vld [vmem:[%s5166_s30 + $0xf0] sm:$0xff] }
 0x183   : > { %4419 = vrsqrt.f32 %v909_v63  ;;  %v843_v1 = vmax.f32 %v811_v24, 0.0  ;;  %v966_v16 = vmul.f32 %v4418_v7, %v870_v50  ;;  %v5733_v28 = vadd.f32 %v5414_v5, %v1006_v34 }
 0x184   : > { %7054 = vst [vmem:[#allocation16_spill] sm:$0xff] %v5730_v51  ;;  %v842_v6 = vmax.f32 %v810_v40, 0.0  ;;  %4421 = vrsqrt.f32 %v908_v42  ;;  %v1005_v15 = vmul.f32 %v5403_v55, %v967_v52  ;;  %v876_v14 = vsub.f32 %v4748_v44, %v5690_v41  ;;  %v4750_v42 = vld [vmem:[%s5166_s30 + $0xe0] sm:$0xff]  ;;  %s7071_s30 = sld [smem:[#allocation23_spill]] }
 0x185   : > { %7055 = vst [vmem:[#allocation17_spill] sm:$0xff] %v5733_v28  ;;  %v907_v25 = vadd.f32 1e-05, %v843_v1  ;;  %v1004_v43 = vmul.f32 %v5403_v55, %v966_v16  ;;  %v1063_v59 = vpack.c.bf16 %v5730_v51, %v5733_v28  ;;  %v875_v26 = vsub.f32 %v4749_v33, %v5698_v3 }
 0x186   : > { %v906_v47 = vadd.f32 1e-05, %v842_v6  ;;  %v5740_v8 = vadd.f32 %v5414_v5, %v1005_v15  ;;  %4073 = vmatmul.mubr.msk.bf16.gmra.mrb[20].mxu1 %vm1136_vm0, %v5483_v31  ;;  %v874_v58 = vsub.f32 %v4750_v42, %v5700_v0 }
 0x187   : > { %4423 = vrsqrt.f32 %v907_v25  ;;  %v5743_v17 = vadd.f32 %v5414_v5, %v1004_v43  ;;  %1461 = vmatprep.subr.bf16.mxu0 %v1063_v59  ;;  %1546 = vmatprep.mubr.bf16.mxu1 %v7025_v32 }
 0x188   : > { %4425 = vrsqrt.f32 %v906_v47 }
 0x189   : > { %v1062_v35 = vpack.c.bf16 %v5740_v8, %v5743_v17 }
 0x18b   : > { %1462 = vmatpush1.bf16.msra.mxu0 %v1062_v35 }
 0x18d   : > { %v4420_v21 = vpop.eup %4419 }
 0x18e   : > { %v4422_v23 = vpop.eup %4421  ;;  %4074 = vmatmul.mubr.msk.bf16.vlgmr.msra.gmra.mrb[24].mxu0 %vm1136_vm0, %v5457_v39  ;;  %v973_v9 = vmul.f32 %v4420_v21, %v877_v49 }
 0x18f   : > { %1503 = vmatprep.mubr.bf16.mxu0 %v7025_v32  ;;  %v972_v50 = vmul.f32 %v4422_v23, %v876_v14 }
 0x190   : > { %v1011_v13 = vmul.f32 %v5403_v55, %v973_v9 }
 0x191   : > { %v4424_v63 = vpop.eup %4423  ;;  %v1010_v24 = vmul.f32 %v5403_v55, %v972_v50 }
 0x192   : > { %v4426_v41 = vpop.eup %4425  ;;  %v5764_v40 = vadd.f32 %v5414_v5, %v1011_v13  ;;  %v971_v7 = vmul.f32 %v4424_v63, %v875_v26 }
 0x193   : > { %v5767_v34 = vadd.f32 %v5414_v5, %v1010_v24  ;;  %v970_v52 = vmul.f32 %v4426_v41, %v874_v58 }
 0x194   : > { %7056 = vst [vmem:[#allocation18_spill] sm:$0xff] %v5764_v40  ;;  %v1009_v1 = vmul.f32 %v5403_v55, %v971_v7 }
 0x195   : > { %7057 = vst [vmem:[#allocation19_spill] sm:$0xff] %v5767_v34  ;;  %v1065_v3 = vpack.c.bf16 %v5764_v40, %v5767_v34  ;;  %v1008_v6 = vmul.f32 %v5403_v55, %v970_v52  ;;  %v5790_v55 = vpop.permute.xlu1 %1113 }
 0x196   : > { %4075 = vmatmul.mubr.msk.bf16.gmra.mrb[28].mxu0 %vm1136_vm0, %v5483_v31  ;;  %v5776_v0 = vadd.f32 %v5414_v5, %v1009_v1 }
 0x197   : > { %1514 = vmatprep.subr.bf16.mxu1 %v1065_v3  ;;  %v5779_v16 = vadd.f32 %v5414_v5, %v1008_v6  ;;  %1974 = vmatprep.mubr.bf16.mxu0 %v7025_v32  ;;  %v5792_v5 = vpop.permute.xlu0 %1108 }
 0x198   : > { %7058 = vst [vmem:[#allocation20_spill] sm:$0xff] %v5776_v0 }
 0x199   : > { %7059 = vst [vmem:[#allocation21_spill] sm:$0xff] %v5779_v16  ;;  %v1064_v15 = vpack.c.bf16 %v5776_v0, %v5779_v16  ;;  %v5797_v21 = vpop.permute.xlu1 %1118 }
 0x19b   : > { %1515 = vmatpush1.bf16.msra.mxu1 %v1064_v15 }
 0x19d   : > { %v5801_v26 = vpop.permute.xlu1 %1123 }
 0x19e   : > { %4076 = vmatmul.mubr.msk.bf16.vlgmr.msra.gmra.mrb[24].mxu1 %vm1136_vm0, %v5457_v39 }
 0x19f   : > { %1556 = vmatprep.mubr.bf16.mxu1 %v7025_v32 }
 0x1a6   : > { %4077 = vmatmul.mubr.msk.bf16.gmra.mrb[28].mxu1 %vm1136_vm0, %v5483_v31 }
 0x1a7   : > { %2017 = vmatprep.mubr.bf16.mxu1 %v7025_v32 }
 0x201   : > { %v1177_v25 = vpop.f32.mrb[0].mxu0 }
 0x202   : > { %v1179_v47 = vpop.f32.mrb[1].mxu0  ;;  %v1178_v43 = vadd.f32 %v1177_v25, %v5792_v5 }
 0x203   : > { %v1180_v59 = vadd.f32 %v1179_v47, %v5792_v5  ;;  %v1181_v35 = vpop.f32.mrb[2].mxu0 }
 0x204   : > { %v1182_v39 = vadd.f32 %v1181_v35, %v5790_v55  ;;  %v1631_v53 = vmul.f32 0.70710677, %v1178_v43  ;;  %v1183_v49 = vpop.f32.mrb[3].mxu0 }
 0x205   : > { %v1632_v31 = vmul.f32 0.70710677, %v1180_v59  ;;  %v1184_v44 = vadd.f32 %v1183_v49, %v5790_v55 }
 0x206   : > { %v1647_v14 = vmul.f32 0.70710677, %v1182_v39  ;;  %4427 = verf.f32 %v1631_v53 }
 0x207   : > { %4429 = verf.f32 %v1632_v31  ;;  %v1648_v23 = vmul.f32 0.70710677, %v1184_v44 }
 0x208   : > { %4431 = verf.f32 %v1647_v14  ;;  %v1567_v14 = vmul.f32 0.5, %v1178_v43 }
 0x209   : > { %4433 = verf.f32 %v1648_v23  ;;  %v1187_v9 = vpop.f32.mrb[4].mxu0  ;;  %v1583_v23 = vmul.f32 0.5, %v1182_v39 }
 0x20a   : > { %v1188_v50 = vadd.f32 %v1187_v9, %v5797_v21  ;;  %v1189_v33 = vpop.f32.mrb[5].mxu0 }
 0x20b   : > { %v1190_v13 = vadd.f32 %v1189_v33, %v5797_v21  ;;  %v1191_v63 = vpop.f32.mrb[6].mxu0 }
 0x20c   : > { %v1663_v42 = vmul.f32 0.70710677, %v1188_v50  ;;  %v1192_v58 = vadd.f32 %v1191_v63, %v5801_v26  ;;  %v1193_v24 = vpop.f32.mrb[7].mxu0 }
 0x20d   : > { %v1664_v41 = vmul.f32 0.70710677, %v1190_v13  ;;  %v1194_v7 = vadd.f32 %v1193_v24, %v5801_v26  ;;  %v1584_v24 = vmul.f32 0.5, %v1184_v44 }
 0x20e   : > { %4435 = verf.f32 %v1663_v42  ;;  %v1679_v52 = vmul.f32 0.70710677, %v1192_v58  ;;  %v1568_v42 = vmul.f32 0.5, %v1180_v59 }
 0x20f   : > { %4437 = verf.f32 %v1664_v41  ;;  %v1680_v1 = vmul.f32 0.70710677, %v1194_v7 }
 0x210   : > { %v4428_v3 = vpop.eup %4427  ;;  %4439 = verf.f32 %v1679_v52 }
 0x211   : > { %v4430_v6 = vpop.eup %4429  ;;  %v1759_v15 = vadd.f32 1.0, %v4428_v3  ;;  %4441 = verf.f32 %v1680_v1  ;;  %v1230_v25 = vpop.f32.mrb[0].mxu1 }
 0x212   : > { %v4432_v47 = vpop.eup %4431  ;;  %v1760_v35 = vadd.f32 1.0, %v4430_v6  ;;  %v5807_v53 = vadd.f32 %v1230_v25, %v5792_v5  ;;  %v1232_v49 = vpop.f32.mrb[1].mxu1 }
 0x213   : > { %v4434_v31 = vpop.eup %4433  ;;  %v1775_v9 = vadd.f32 1.0, %v4432_v47  ;;  %v5810_v33 = vadd.f32 %v1232_v49, %v5792_v5  ;;  %v1234_v63 = vpop.f32.mrb[2].mxu1  ;;  %v1823_v3 = vmul.f32 %v1759_v15, %v1567_v14 }
 0x214   : > { %v1776_v41 = vadd.f32 1.0, %v4434_v31  ;;  %v1633_v52 = vmul.f32 0.70710677, %v5807_v53  ;;  %v1236_v1 = vpop.f32.mrb[3].mxu1  ;;  %v5815_v32 = vadd.f32 %v1234_v63, %v5790_v55  ;;  %v1824_v43 = vmul.f32 %v1760_v35, %v1568_v42 }
 0x215   : > { %v1839_v6 = vmul.f32 %v1775_v9, %v1583_v23  ;;  %v1634_v25 = vmul.f32 0.70710677, %v5810_v33  ;;  %v5818_v47 = vadd.f32 %v1236_v1, %v5790_v55 }
 0x216   : > { %v1840_v39 = vmul.f32 %v1776_v41, %v1584_v24  ;;  %4443 = verf.f32 %v1633_v52  ;;  %v1649_v59 = vmul.f32 0.70710677, %v5815_v32  ;;  %v1599_v41 = vmul.f32 0.5, %v1188_v50 }
 0x217   : > { %v1887_v49 = vpack.c.bf16 %v1839_v6, %v1823_v3  ;;  %4445 = verf.f32 %v1634_v25  ;;  %v1650_v31 = vmul.f32 0.70710677, %v5818_v47  ;;  %v1615_v52 = vmul.f32 0.5, %v1192_v58 }
 0x218   : > { %v4436_v44 = vpop.eup %4435  ;;  %v1888_v15 = vpack.c.bf16 %v1840_v39, %v1824_v43  ;;  %4447 = verf.f32 %v1649_v59  ;;  %v1600_v25 = vmul.f32 0.5, %v1190_v13  ;;  %v1616_v43 = vmul.f32 0.5, %v1194_v7 }
 0x219   : > { %v4438_v14 = vpop.eup %4437  ;;  %v1791_v23 = vadd.f32 1.0, %v4436_v44  ;;  %v1240_v9 = vpop.f32.mrb[4].mxu1  ;;  %4449 = verf.f32 %v1650_v31 }
 0x21a   : > { %v4440_v63 = vpop.eup %4439  ;;  %v1792_v40 = vadd.f32 1.0, %v4438_v14  ;;  %v5823_v35 = vadd.f32 %v1240_v9, %v5797_v21  ;;  %v1242_v42 = vpop.f32.mrb[5].mxu1  ;;  %1942 = vmatprep.subr.bf16.mxu0 %v1888_v15 }
 0x21b   : > { %v4442_v24 = vpop.eup %4441  ;;  %v1807_v1 = vadd.f32 1.0, %v4440_v63  ;;  %v5826_v3 = vadd.f32 %v1242_v42, %v5797_v21  ;;  %v1244_v6 = vpop.f32.mrb[6].mxu1  ;;  %1943 = vmatpush1.bf16.msra.mxu0 %v1887_v49  ;;  %v1855_v31 = vmul.f32 %v1791_v23, %v1599_v41 }
 0x21c   : > { %v1808_v39 = vadd.f32 1.0, %v4442_v24  ;;  %v1665_v59 = vmul.f32 0.70710677, %v5823_v35  ;;  %v1246_v44 = vpop.f32.mrb[7].mxu1  ;;  %v5831_v15 = vadd.f32 %v1244_v6, %v5801_v26  ;;  %v1856_v50 = vmul.f32 %v1792_v40, %v1600_v25  ;;  %v5844_v6 = vld [vmem:[%s7008_s5] sm:$0xff]  }
 0x21d   : > { %v1871_v14 = vmul.f32 %v1807_v1, %v1615_v52  ;;  %v1666_v9 = vmul.f32 0.70710677, %v5826_v3  ;;  %v5834_v63 = vadd.f32 %v1246_v44, %v5801_v26 }
 0x21e   : > { %v1872_v58 = vmul.f32 %v1808_v39, %v1616_v43  ;;  %4451 = verf.f32 %v1665_v59  ;;  %v1681_v13 = vmul.f32 0.70710677, %v5831_v15  ;;  %v1569_v43 = vmul.f32 0.5, %v5807_v53 }
 0x21f   : > { %v1903_v49 = vpack.c.bf16 %v1871_v14, %v1855_v31  ;;  %4453 = verf.f32 %v1666_v9  ;;  %v1682_v42 = vmul.f32 0.70710677, %v5834_v63  ;;  %v1570_v14 = vmul.f32 0.5, %v5810_v33 }
 0x220   : > { %v4444_v7 = vpop.eup %4443  ;;  %v1904_v23 = vpack.c.bf16 %v1872_v58, %v1856_v50  ;;  %4455 = verf.f32 %v1681_v13  ;;  %v1585_v9 = vmul.f32 0.5, %v5815_v32 }
 0x221   : > { %v4446_v24 = vpop.eup %4445  ;;  %v1283_v41 = vpop.f32.mrb[8].mxu0  ;;  %v1761_v52 = vadd.f32 1.0, %v4444_v7  ;;  %4457 = verf.f32 %v1682_v42  ;;  %v1586_v7 = vmul.f32 0.5, %v5818_v47 }
 0x222   : > { %v5839_v40 = vadd.f32 %v1283_v41, %v5792_v5  ;;  %v1285_v1 = vpop.f32.mrb[9].mxu0  ;;  %1944 = vmatprep.subr.bf16.mxu0 %v1904_v23  ;;  %v4448_v25 = vpop.eup %4447  ;;  %v1762_v39 = vadd.f32 1.0, %v4446_v24 }
 0x223   : > { %v5848_v59 = vadd.f32 %v1285_v1, %v5792_v5  ;;  %v1287_v44 = vpop.f32.mrb[10].mxu0  ;;  %1945 = vmatpush1.bf16.msra.mxu0 %v1903_v49  ;;  %v4450_v31 = vpop.eup %4449  ;;  %v1777_v50 = vadd.f32 1.0, %v4448_v25  ;;  %v1825_v24 = vmul.f32 %v1761_v52, %v1569_v43  ;;  %v7060_v1 = vmov 0  }
 0x224   : > { %v1635_v58 = vmul.f32 0.70710677, %v5839_v40  ;;  %v1289_v13 = vpop.f32.mrb[11].mxu0  ;;  %v1778_v42 = vadd.f32 1.0, %v4450_v31  ;;  %v5856_v23 = vadd.f32 %v1287_v44, %v5790_v55  ;;  %v1826_v32 = vmul.f32 %v1762_v39, %v1570_v14 }
 0x225   : > { %v1636_v53 = vmul.f32 0.70710677, %v5848_v59  ;;  %v1841_v49 = vmul.f32 %v1777_v50, %v1585_v9  ;;  %v5859_v41 = vadd.f32 %v1289_v13, %v5790_v55  ;;  %v1601_v13 = vmul.f32 0.5, %v5823_v35 }
 0x226   : > { %4459 = verf.f32 %v1635_v58  ;;  %4079 = vmatmul.mubr.msk.bf16.vlgmr.msra.gmra.mrb[32].mxu0 %vm1938_vm1, %v5844_v6  ;;  %v1842_v33 = vmul.f32 %v1778_v42, %v1586_v7  ;;  %v1651_v47 = vmul.f32 0.70710677, %v5856_v23 }
 0x227   : > { %4461 = verf.f32 %v1636_v53  ;;  %2060 = vmatprep.mubr.bf16.mxu0 %v7060_v1  ;;  %v1889_v31 = vpack.c.bf16 %v1841_v49, %v1825_v24  ;;  %v1652_v44 = vmul.f32 0.70710677, %v5859_v41  ;;  %v1602_v49 = vmul.f32 0.5, %v5826_v3 }
 0x228   : > { %v4452_v25 = vpop.eup %4451  ;;  %4463 = verf.f32 %v1651_v47  ;;  %v1890_v9 = vpack.c.bf16 %v1842_v33, %v1826_v32  ;;  %v1617_v32 = vmul.f32 0.5, %v5831_v15 }
 0x229   : > { %v4454_v52 = vpop.eup %4453  ;;  %v1293_v43 = vpop.f32.mrb[12].mxu0  ;;  %v1793_v50 = vadd.f32 1.0, %v4452_v25  ;;  %4465 = verf.f32 %v1652_v44  ;;  %v1618_v44 = vmul.f32 0.5, %v5834_v63 }
 0x22a   : > { %v5867_v58 = vadd.f32 %v1293_v43, %v5797_v21  ;;  %v1295_v39 = vpop.f32.mrb[13].mxu0  ;;  %v4456_v14 = vpop.eup %4455  ;;  %v1794_v7 = vadd.f32 1.0, %v4454_v52  ;;  %1985 = vmatprep.subr.bf16.mxu1 %v1890_v9 }
 0x22b   : > { %v5871_v42 = vadd.f32 %v1295_v39, %v5797_v21  ;;  %v1297_v53 = vpop.f32.mrb[14].mxu0  ;;  %v4458_v24 = vpop.eup %4457  ;;  %v1809_v33 = vadd.f32 1.0, %v4456_v14  ;;  %1986 = vmatpush1.bf16.msra.mxu1 %v1889_v31  ;;  %v1857_v9 = vmul.f32 %v1793_v50, %v1601_v13 }
 0x22c   : > { %v1667_v47 = vmul.f32 0.70710677, %v5867_v58  ;;  %v1299_v25 = vpop.f32.mrb[15].mxu0  ;;  %v1810_v43 = vadd.f32 1.0, %v4458_v24  ;;  %v5879_v52 = vadd.f32 %v1297_v53, %v5801_v26  ;;  %v1858_v15 = vmul.f32 %v1794_v7, %v1602_v49 }
 0x22d   : > { %v1668_v35 = vmul.f32 0.70710677, %v5871_v42  ;;  %v1873_v39 = vmul.f32 %v1809_v33, %v1617_v32  ;;  %v5882_v3 = vadd.f32 %v1299_v25, %v5801_v26  ;;  %v1571_v7 = vmul.f32 0.5, %v5839_v40 }
 0x22e   : > { %4467 = verf.f32 %v1667_v47  ;;  %v1874_v14 = vmul.f32 %v1810_v43, %v1618_v44  ;;  %v1683_v31 = vmul.f32 0.70710677, %v5879_v52  ;;  %v1572_v44 = vmul.f32 0.5, %v5848_v59 }
 0x22f   : > { %4469 = verf.f32 %v1668_v35  ;;  %v1905_v0 = vpack.c.bf16 %v1873_v39, %v1857_v9  ;;  %v1684_v63 = vmul.f32 0.70710677, %v5882_v3  ;;  %v1587_v43 = vmul.f32 0.5, %v5856_v23 }
 0x230   : > { %v4460_v34 = vpop.eup %4459  ;;  %4471 = verf.f32 %v1683_v31  ;;  %v1906_v53 = vpack.c.bf16 %v1874_v14, %v1858_v15  ;;  %v1588_v9 = vmul.f32 0.5, %v5859_v41 }
 0x231   : > { %v4462_v24 = vpop.eup %4461  ;;  %v1336_v16 = vpop.f32.mrb[8].mxu1  ;;  %v1763_v51 = vadd.f32 1.0, %v4460_v34  ;;  %4473 = verf.f32 %v1684_v63 }
 0x232   : > { %v5887_v50 = vadd.f32 %v1336_v16, %v5792_v5  ;;  %v1338_v13 = vpop.f32.mrb[9].mxu1  ;;  %v4464_v32 = vpop.eup %4463  ;;  %v1764_v49 = vadd.f32 1.0, %v4462_v24  ;;  %1987 = vmatprep.subr.bf16.mxu1 %v1906_v53 }
 0x233   : > { %v5891_v33 = vadd.f32 %v1338_v13, %v5792_v5  ;;  %v1340_v47 = vpop.f32.mrb[10].mxu1  ;;  %v4466_v25 = vpop.eup %4465  ;;  %v1779_v34 = vadd.f32 1.0, %v4464_v32  ;;  %1988 = vmatpush1.bf16.msra.mxu1 %v1905_v0  ;;  %v1827_v14 = vmul.f32 %v1763_v51, %v1571_v7 }
 0x234   : > { %v1637_v35 = vmul.f32 0.70710677, %v5887_v50  ;;  %v1342_v16 = vpop.f32.mrb[11].mxu1  ;;  %v1780_v39 = vadd.f32 1.0, %v4466_v25  ;;  %v5899_v15 = vadd.f32 %v1340_v47, %v5790_v55  ;;  %v1828_v23 = vmul.f32 %v1764_v49, %v1572_v44 }
 0x235   : > { %v1638_v40 = vmul.f32 0.70710677, %v5891_v33  ;;  %v1843_v31 = vmul.f32 %v1779_v34, %v1587_v43  ;;  %v5902_v59 = vadd.f32 %v1342_v16, %v5790_v55  ;;  %v1603_v44 = vmul.f32 0.5, %v5867_v58 }
 0x236   : > { %4475 = verf.f32 %v1637_v35  ;;  %v1844_v63 = vmul.f32 %v1780_v39, %v1588_v9  ;;  %v1653_v0 = vmul.f32 0.70710677, %v5899_v15  ;;  %4080 = vmatmul.mubr.msk.bf16.vlgmr.msra.gmra.mrb[32].mxu1 %vm1938_vm1, %v5844_v6  ;;  %v1604_v9 = vmul.f32 0.5, %v5871_v42 }
 0x237   : > { %4477 = verf.f32 %v1638_v40  ;;  %v1891_v24 = vpack.c.bf16 %v1843_v31, %v1827_v14  ;;  %v1654_v53 = vmul.f32 0.70710677, %v5902_v59  ;;  %2103 = vmatprep.mubr.bf16.mxu1 %v7060_v1  ;;  %v1619_v39 = vmul.f32 0.5, %v5879_v52 }
 0x238   : > { %v4468_v41 = vpop.eup %4467  ;;  %4479 = verf.f32 %v1653_v0  ;;  %v1892_v32 = vpack.c.bf16 %v1844_v63, %v1828_v23  ;;  %v1620_v23 = vmul.f32 0.5, %v5882_v3 }
 0x239   : > { %v4470_v51 = vpop.eup %4469  ;;  %v1346_v13 = vpop.f32.mrb[12].mxu1  ;;  %v1795_v7 = vadd.f32 1.0, %v4468_v41  ;;  %4481 = verf.f32 %v1654_v53 }
 0x23a   : > { %v5910_v49 = vadd.f32 %v1346_v13, %v5797_v21  ;;  %v1348_v47 = vpop.f32.mrb[13].mxu1  ;;  %v4472_v25 = vpop.eup %4471  ;;  %v1796_v43 = vadd.f32 1.0, %v4470_v51  ;;  %2028 = vmatprep.subr.bf16.mxu0 %v1892_v32 }
 0x23b   : > { %v5914_v34 = vadd.f32 %v1348_v47, %v5797_v21  ;;  %v1350_v35 = vpop.f32.mrb[14].mxu1  ;;  %v4474_v16 = vpop.eup %4473  ;;  %v1811_v40 = vadd.f32 1.0, %v4472_v25  ;;  %2029 = vmatpush1.bf16.msra.mxu0 %v1891_v24  ;;  %v1859_v41 = vmul.f32 %v1795_v7, %v1603_v44 }
 0x23c   : > { %v1669_v14 = vmul.f32 0.70710677, %v5910_v49  ;;  %v1352_v31 = vpop.f32.mrb[15].mxu1  ;;  %v1812_v63 = vadd.f32 1.0, %v4474_v16  ;;  %v5922_v0 = vadd.f32 %v1350_v35, %v5801_v26  ;;  %v1860_v52 = vmul.f32 %v1796_v43, %v1604_v9 }
 0x23d   : > { %v1670_v58 = vmul.f32 0.70710677, %v5914_v34  ;;  %v1875_v53 = vmul.f32 %v1811_v40, %v1619_v39  ;;  %v5925_v42 = vadd.f32 %v1352_v31, %v5801_v26  ;;  %v1573_v43 = vmul.f32 0.5, %v5887_v50 }
 0x23e   : > { %4483 = verf.f32 %v1669_v14  ;;  %v1876_v51 = vmul.f32 %v1812_v63, %v1620_v23  ;;  %v1685_v24 = vmul.f32 0.70710677, %v5922_v0  ;;  %v1574_v23 = vmul.f32 0.5, %v5891_v33 }
 0x23f   : > { %4485 = verf.f32 %v1670_v58  ;;  %v1907_v32 = vpack.c.bf16 %v1875_v53, %v1859_v41  ;;  %v1686_v3 = vmul.f32 0.70710677, %v5925_v42  ;;  %v1589_v63 = vmul.f32 0.5, %v5899_v15 }
 0x240   : > { %v4476_v13 = vpop.eup %4475  ;;  %4487 = verf.f32 %v1685_v24  ;;  %v1908_v35 = vpack.c.bf16 %v1876_v51, %v1860_v52  ;;  %v1590_v52 = vmul.f32 0.5, %v5902_v59 }
 0x241   : > { %v4478_v47 = vpop.eup %4477  ;;  %v1389_v25 = vpop.f32.mrb[16].mxu0  ;;  %v1765_v16 = vadd.f32 1.0, %v4476_v13  ;;  %4489 = verf.f32 %v1686_v3 }
 0x242   : > { %v5930_v7 = vadd.f32 %v1389_v25, %v5792_v5  ;;  %v1391_v44 = vpop.f32.mrb[17].mxu0  ;;  %v4480_v39 = vpop.eup %4479  ;;  %v1766_v9 = vadd.f32 1.0, %v4478_v47  ;;  %2030 = vmatprep.subr.bf16.mxu0 %v1908_v35 }
 0x243   : > { %v5934_v40 = vadd.f32 %v1391_v44, %v5792_v5  ;;  %v1393_v14 = vpop.f32.mrb[18].mxu0  ;;  %v4482_v31 = vpop.eup %4481  ;;  %v1781_v58 = vadd.f32 1.0, %v4480_v39  ;;  %2031 = vmatpush1.bf16.msra.mxu0 %v1907_v32  ;;  %v1829_v13 = vmul.f32 %v1765_v16, %v1573_v43 }
 0x244   : > { %v1639_v41 = vmul.f32 0.70710677, %v5930_v7  ;;  %v1395_v53 = vpop.f32.mrb[19].mxu0  ;;  %v1782_v51 = vadd.f32 1.0, %v4482_v31  ;;  %v5942_v24 = vadd.f32 %v1393_v14, %v5790_v55  ;;  %v1830_v15 = vmul.f32 %v1766_v9, %v1574_v23 }
 0x245   : > { %v1640_v50 = vmul.f32 0.70710677, %v5934_v40  ;;  %v1845_v3 = vmul.f32 %v1781_v58, %v1589_v63  ;;  %v5945_v33 = vadd.f32 %v1395_v53, %v5790_v55  ;;  %v1605_v23 = vmul.f32 0.5, %v5910_v49 }
 0x246   : > { %4491 = verf.f32 %v1639_v41  ;;  %v1846_v47 = vmul.f32 %v1782_v51, %v1590_v52  ;;  %v1655_v32 = vmul.f32 0.70710677, %v5942_v24  ;;  %4081 = vmatmul.mubr.msk.bf16.vlgmr.msra.gmra.mrb[36].mxu0 %vm1938_vm1, %v5844_v6  ;;  %v1606_v52 = vmul.f32 0.5, %v5914_v34 }
 0x247   : > { %4493 = verf.f32 %v1640_v50  ;;  %v1893_v25 = vpack.c.bf16 %v1845_v3, %v1829_v13  ;;  %v1656_v35 = vmul.f32 0.70710677, %v5945_v33  ;;  %2146 = vmatprep.mubr.bf16.mxu0 %v7060_v1  ;;  %v1621_v51 = vmul.f32 0.5, %v5922_v0 }
 0x248   : > { %v4484_v59 = vpop.eup %4483  ;;  %4495 = verf.f32 %v1655_v32  ;;  %v1894_v39 = vpack.c.bf16 %v1846_v47, %v1830_v15  ;;  %v1622_v15 = vmul.f32 0.5, %v5925_v42 }
 0x249   : > { %v4486_v16 = vpop.eup %4485  ;;  %v1399_v44 = vpop.f32.mrb[20].mxu0  ;;  %v1797_v43 = vadd.f32 1.0, %v4484_v59  ;;  %4497 = verf.f32 %v1656_v35 }
 0x24a   : > { %v5953_v9 = vadd.f32 %v1399_v44, %v5797_v21  ;;  %v1401_v14 = vpop.f32.mrb[21].mxu0  ;;  %v4488_v31 = vpop.eup %4487  ;;  %v1798_v63 = vadd.f32 1.0, %v4486_v16  ;;  %2071 = vmatprep.subr.bf16.mxu1 %v1894_v39 }
 0x24b   : > { %v5957_v58 = vadd.f32 %v1401_v14, %v5797_v21  ;;  %v1403_v41 = vpop.f32.mrb[22].mxu0  ;;  %v4490_v53 = vpop.eup %4489  ;;  %v1813_v50 = vadd.f32 1.0, %v4488_v31  ;;  %2072 = vmatpush1.bf16.msra.mxu1 %v1893_v25  ;;  %v1861_v59 = vmul.f32 %v1797_v43, %v1605_v23 }
 0x24c   : > { %v1671_v13 = vmul.f32 0.70710677, %v5953_v9  ;;  %v1405_v3 = vpop.f32.mrb[23].mxu0  ;;  %v1814_v47 = vadd.f32 1.0, %v4490_v53  ;;  %v5965_v32 = vadd.f32 %v1403_v41, %v5801_v26  ;;  %v1862_v0 = vmul.f32 %v1798_v63, %v1606_v52 }
 0x24d   : > { %v1672_v49 = vmul.f32 0.70710677, %v5957_v58  ;;  %v1877_v35 = vmul.f32 %v1813_v50, %v1621_v51  ;;  %v5968_v34 = vadd.f32 %v1405_v3, %v5801_v26  ;;  %v1575_v63 = vmul.f32 0.5, %v5930_v7 }
 0x24e   : > { %4499 = verf.f32 %v1671_v13  ;;  %v1878_v16 = vmul.f32 %v1814_v47, %v1622_v15  ;;  %v1687_v25 = vmul.f32 0.70710677, %v5965_v32  ;;  %v1576_v15 = vmul.f32 0.5, %v5934_v40 }
 0x24f   : > { %4501 = verf.f32 %v1672_v49  ;;  %v1909_v39 = vpack.c.bf16 %v1877_v35, %v1861_v59  ;;  %v1688_v42 = vmul.f32 0.70710677, %v5968_v34  ;;  %v1591_v47 = vmul.f32 0.5, %v5942_v24 }
 0x250   : > { %v4492_v44 = vpop.eup %4491  ;;  %4503 = verf.f32 %v1687_v25  ;;  %v1910_v41 = vpack.c.bf16 %v1878_v16, %v1862_v0  ;;  %v1592_v0 = vmul.f32 0.5, %v5945_v33 }
 0x251   : > { %v4494_v14 = vpop.eup %4493  ;;  %v1442_v31 = vpop.f32.mrb[16].mxu1  ;;  %v1767_v53 = vadd.f32 1.0, %v4492_v44  ;;  %4505 = verf.f32 %v1688_v42 }
 0x252   : > { %v5973_v43 = vadd.f32 %v1442_v31, %v5792_v5  ;;  %v1444_v23 = vpop.f32.mrb[17].mxu1  ;;  %v4496_v51 = vpop.eup %4495  ;;  %v1768_v52 = vadd.f32 1.0, %v4494_v14  ;;  %2073 = vmatprep.subr.bf16.mxu1 %v1910_v41 }
 0x253   : > { %v5977_v50 = vadd.f32 %v1444_v23, %v5792_v5  ;;  %v1446_v13 = vpop.f32.mrb[18].mxu1  ;;  %v4498_v3 = vpop.eup %4497  ;;  %v1783_v49 = vadd.f32 1.0, %v4496_v51  ;;  %2074 = vmatpush1.bf16.msra.mxu1 %v1909_v39  ;;  %v1831_v44 = vmul.f32 %v1767_v53, %v1575_v63 }
 0x254   : > { %v1641_v59 = vmul.f32 0.70710677, %v5973_v43  ;;  %v1448_v35 = vpop.f32.mrb[19].mxu1  ;;  %v1784_v16 = vadd.f32 1.0, %v4498_v3  ;;  %v5985_v25 = vadd.f32 %v1446_v13, %v5790_v55  ;;  %v1832_v24 = vmul.f32 %v1768_v52, %v1576_v15 }
 0x255   : > { %v1642_v7 = vmul.f32 0.70710677, %v5977_v50  ;;  %v1847_v42 = vmul.f32 %v1783_v49, %v1591_v47  ;;  %v5988_v40 = vadd.f32 %v1448_v35, %v5790_v55  ;;  %v1607_v15 = vmul.f32 0.5, %v5953_v9 }
 0x256   : > { %4507 = verf.f32 %v1641_v59  ;;  %v1848_v14 = vmul.f32 %v1784_v16, %v1592_v0  ;;  %v1657_v39 = vmul.f32 0.70710677, %v5985_v25  ;;  %4082 = vmatmul.mubr.msk.bf16.vlgmr.msra.gmra.mrb[36].mxu1 %vm1938_vm1, %v5844_v6  ;;  %v1608_v0 = vmul.f32 0.5, %v5957_v58 }
 0x257   : > { %4509 = verf.f32 %v1642_v7  ;;  %v1895_v31 = vpack.c.bf16 %v1847_v42, %v1831_v44  ;;  %v1658_v41 = vmul.f32 0.70710677, %v5988_v40  ;;  %2189 = vmatprep.mubr.bf16.mxu1 %v7060_v1  ;;  %v1623_v16 = vmul.f32 0.5, %v5965_v32 }
 0x258   : > { %v4500_v33 = vpop.eup %4499  ;;  %4511 = verf.f32 %v1657_v39  ;;  %v1896_v51 = vpack.c.bf16 %v1848_v14, %v1832_v24  ;;  %v1624_v24 = vmul.f32 0.5, %v5968_v34 }
 0x259   : > { %v4502_v53 = vpop.eup %4501  ;;  %v1452_v23 = vpop.f32.mrb[20].mxu1  ;;  %v1799_v63 = vadd.f32 1.0, %v4500_v33  ;;  %4513 = verf.f32 %v1658_v41 }
 0x25a   : > { %v5996_v52 = vadd.f32 %v1452_v23, %v5797_v21  ;;  %v1454_v13 = vpop.f32.mrb[21].mxu1  ;;  %v4504_v3 = vpop.eup %4503  ;;  %v1800_v47 = vadd.f32 1.0, %v4502_v53  ;;  %2114 = vmatprep.subr.bf16.mxu0 %v1896_v51 }
 0x25b   : > { %v6000_v49 = vadd.f32 %v1454_v13, %v5797_v21  ;;  %v1456_v59 = vpop.f32.mrb[22].mxu1  ;;  %v4506_v35 = vpop.eup %4505  ;;  %v1815_v7 = vadd.f32 1.0, %v4504_v3  ;;  %2115 = vmatpush1.bf16.msra.mxu0 %v1895_v31  ;;  %v1863_v33 = vmul.f32 %v1799_v63, %v1607_v15 }
 0x25c   : > { %v1673_v44 = vmul.f32 0.70710677, %v5996_v52  ;;  %v1458_v42 = vpop.f32.mrb[23].mxu1  ;;  %v1816_v14 = vadd.f32 1.0, %v4506_v35  ;;  %v6008_v39 = vadd.f32 %v1456_v59, %v5801_v26  ;;  %v1864_v53 = vmul.f32 %v1800_v47, %v1608_v0 }
 0x25d   : > { %v1674_v9 = vmul.f32 0.70710677, %v6000_v49  ;;  %v1879_v41 = vmul.f32 %v1815_v7, %v1623_v16  ;;  %v6011_v58 = vadd.f32 %v1458_v42, %v5801_v26  ;;  %v1577_v0 = vmul.f32 0.5, %v5973_v43 }
 0x25e   : > { %4515 = verf.f32 %v1673_v44  ;;  %v1880_v23 = vmul.f32 %v1816_v14, %v1624_v24  ;;  %v1689_v31 = vmul.f32 0.70710677, %v6008_v39  ;;  %v1578_v24 = vmul.f32 0.5, %v5977_v50 }
 0x25f   : > { %4517 = verf.f32 %v1674_v9  ;;  %v1911_v13 = vpack.c.bf16 %v1879_v41, %v1863_v33  ;;  %v1690_v3 = vmul.f32 0.70710677, %v6011_v58 }
 0x260   : > { %v4508_v34 = vpop.eup %4507  ;;  %4519 = verf.f32 %v1689_v31  ;;  %v1912_v16 = vpack.c.bf16 %v1880_v23, %v1864_v53  ;;  %v1594_v23 = vmul.f32 0.5, %v5988_v40 }
 0x261   : > { %v1495_v32 = vpop.f32.mrb[24].mxu0  ;;  %v4510_v15 = vpop.eup %4509  ;;  %v1769_v7 = vadd.f32 1.0, %v4508_v34  ;;  %4521 = verf.f32 %v1690_v3 }
 0x262   : > { %v1497_v51 = vpop.f32.mrb[25].mxu0  ;;  %v6016_v59 = vadd.f32 %v1495_v32, %v5792_v5  ;;  %v4512_v42 = vpop.eup %4511  ;;  %v1770_v14 = vadd.f32 1.0, %v4510_v15  ;;  %2116 = vmatprep.subr.bf16.mxu0 %v1912_v16  ;;  %v1593_v32 = vmul.f32 0.5, %v5985_v25 }
 0x263   : > { %v1499_v63 = vpop.f32.mrb[26].mxu0  ;;  %v6019_v35 = vadd.f32 %v1497_v51, %v5792_v5  ;;  %v4514_v41 = vpop.eup %4513  ;;  %v1785_v53 = vadd.f32 1.0, %v4512_v42  ;;  %2117 = vmatpush1.bf16.msra.mxu0 %v1911_v13  ;;  %v1833_v51 = vmul.f32 %v1769_v7, %v1577_v0 }
 0x264   : > { %v1501_v47 = vpop.f32.mrb[27].mxu0  ;;  %v1643_v44 = vmul.f32 0.70710677, %v6016_v59  ;;  %v6026_v33 = vadd.f32 %v1499_v63, %v5790_v55  ;;  %v1786_v31 = vadd.f32 1.0, %v4514_v41  ;;  %v1834_v15 = vmul.f32 %v1770_v14, %v1578_v24 }
 0x265   : > { %v1644_v9 = vmul.f32 0.70710677, %v6019_v35  ;;  %v6030_v43 = vadd.f32 %v1501_v47, %v5790_v55  ;;  %v1849_v34 = vmul.f32 %v1785_v53, %v1593_v32 }
 0x266   : > { %4523 = verf.f32 %v1643_v44  ;;  %v1659_v50 = vmul.f32 0.70710677, %v6026_v33  ;;  %v1850_v16 = vmul.f32 %v1786_v31, %v1594_v23  ;;  %4083 = vmatmul.mubr.msk.bf16.vlgmr.msra.gmra.mrb[40].mxu0 %vm1938_vm1, %v5844_v6  ;;  %v1609_v23 = vmul.f32 0.5, %v5996_v52 }
 0x267   : > { %4525 = verf.f32 %v1644_v9  ;;  %v1660_v3 = vmul.f32 0.70710677, %v6030_v43  ;;  %v1897_v47 = vpack.c.bf16 %v1849_v34, %v1833_v51  ;;  %2232 = vmatprep.mubr.bf16.mxu0 %v7060_v1  ;;  %v1610_v34 = vmul.f32 0.5, %v6000_v49 }
 0x268   : > { %4527 = verf.f32 %v1659_v50  ;;  %v4516_v40 = vpop.eup %4515  ;;  %v1898_v24 = vpack.c.bf16 %v1850_v16, %v1834_v15  ;;  %v1626_v15 = vmul.f32 0.5, %v6011_v58 }
 0x269   : > { %v1505_v63 = vpop.f32.mrb[28].mxu0  ;;  %4529 = verf.f32 %v1660_v3  ;;  %v4518_v7 = vpop.eup %4517  ;;  %v1801_v9 = vadd.f32 1.0, %v4516_v40  ;;  %v1625_v3 = vmul.f32 0.5, %v6008_v39 }
 0x26a   : > { %v6038_v25 = vadd.f32 %v1505_v63, %v5797_v21  ;;  %v1507_v13 = vpop.f32.mrb[29].mxu0  ;;  %v4520_v53 = vpop.eup %4519  ;;  %v1802_v31 = vadd.f32 1.0, %v4518_v7  ;;  %2157 = vmatprep.subr.bf16.mxu1 %v1898_v24 }
 0x26b   : > { %v6041_v44 = vadd.f32 %v1507_v13, %v5797_v21  ;;  %v1509_v0 = vpop.f32.mrb[30].mxu0  ;;  %v4522_v51 = vpop.eup %4521  ;;  %v1817_v63 = vadd.f32 1.0, %v4520_v53  ;;  %2158 = vmatpush1.bf16.msra.mxu1 %v1897_v47 }
 0x26c   : > { %v1675_v42 = vmul.f32 0.70710677, %v6038_v25  ;;  %v1511_v14 = vpop.f32.mrb[31].mxu0  ;;  %v6047_v32 = vadd.f32 %v1509_v0, %v5801_v26  ;;  %v1818_v16 = vadd.f32 1.0, %v4522_v51  ;;  %v1865_v0 = vmul.f32 %v1801_v9, %v1609_v23 }
 0x26d   : > { %v1676_v41 = vmul.f32 0.70710677, %v6041_v44  ;;  %v6051_v50 = vadd.f32 %v1511_v14, %v5801_v26  ;;  %v1881_v7 = vmul.f32 %v1817_v63, %v1625_v3  ;;  %v1866_v49 = vmul.f32 %v1802_v31, %v1610_v34 }
 0x26e   : > { %4531 = verf.f32 %v1675_v42  ;;  %v1691_v13 = vmul.f32 0.70710677, %v6047_v32  ;;  %v1579_v42 = vmul.f32 0.5, %v6016_v59  ;;  %v1882_v28 = vmul.f32 %v1818_v16, %v1626_v15 }
 0x26f   : > { %4533 = verf.f32 %v1676_v41  ;;  %v1692_v52 = vmul.f32 0.70710677, %v6051_v50  ;;  %v1913_v58 = vpack.c.bf16 %v1881_v7, %v1865_v0  ;;  %v1580_v23 = vmul.f32 0.5, %v6019_v35 }
 0x270   : > { %v4524_v40 = vpop.eup %4523  ;;  %4535 = verf.f32 %v1691_v13  ;;  %v1914_v31 = vpack.c.bf16 %v1882_v28, %v1866_v49  ;;  %v1595_v15 = vmul.f32 0.5, %v6026_v33  ;;  %v1596_v13 = vmul.f32 0.5, %v6030_v43 }
 0x271   : > { %v1548_v24 = vpop.f32.mrb[24].mxu1  ;;  %v4526_v14 = vpop.eup %4525  ;;  %v1771_v41 = vadd.f32 1.0, %v4524_v40  ;;  %4537 = verf.f32 %v1692_v52 }
 0x272   : > { %v6060_v39 = vadd.f32 %v1548_v24, %v5792_v5  ;;  %v1550_v47 = vpop.f32.mrb[25].mxu1  ;;  %v4528_v9 = vpop.eup %4527  ;;  %v1772_v59 = vadd.f32 1.0, %v4526_v14  ;;  %2159 = vmatprep.subr.bf16.mxu1 %v1914_v31  ;;  %v1612_v31 = vmul.f32 0.5, %v6041_v44 }
 0x273   : > { %v6063_v53 = vadd.f32 %v1550_v47, %v5792_v5  ;;  %v1552_v51 = vpop.f32.mrb[26].mxu1  ;;  %v4530_v63 = vpop.eup %4529  ;;  %v1787_v16 = vadd.f32 1.0, %v4528_v9  ;;  %v1835_v0 = vmul.f32 %v1771_v41, %v1579_v42  ;;  %2160 = vmatpush1.bf16.msra.mxu1 %v1913_v58  ;;  %v1611_v41 = vmul.f32 0.5, %v6038_v25 }
 0x274   : > { %v1645_v3 = vmul.f32 0.70710677, %v6060_v39  ;;  %v1554_v34 = vpop.f32.mrb[27].mxu1  ;;  %v1788_v40 = vadd.f32 1.0, %v4530_v63  ;;  %v1553_v5 = vadd.f32 %v1552_v51, %v5790_v55  ;;  %v1836_v24 = vmul.f32 %v1772_v59, %v1580_v23 }
 0x275   : > { %v1646_v52 = vmul.f32 0.70710677, %v6063_v53  ;;  %v1555_v35 = vadd.f32 %v1554_v34, %v5790_v55  ;;  %v1851_v7 = vmul.f32 %v1787_v16, %v1595_v15  ;;  %v1627_v25 = vmul.f32 0.5, %v6047_v32 }
 0x276   : > { %4539 = verf.f32 %v1645_v3  ;;  %v1852_v14 = vmul.f32 %v1788_v40, %v1596_v13  ;;  %v1661_v33 = vmul.f32 0.70710677, %v1553_v5  ;;  %4084 = vmatmul.mubr.msk.bf16.vlgmr.msra.gmra.mrb[40].mxu1 %vm1938_vm1, %v5844_v6 }
 0x277   : > { %4541 = verf.f32 %v1646_v52  ;;  %v1899_v47 = vpack.c.bf16 %v1851_v7, %v1835_v0  ;;  %v1662_v43 = vmul.f32 0.70710677, %v1555_v35  ;;  %2275 = vmatprep.mubr.bf16.mxu1 %v7060_v1  ;;  %v1628_v0 = vmul.f32 0.5, %v6051_v50 }
 0x278   : > { %v4532_v28 = vpop.eup %4531  ;;  %4543 = verf.f32 %v1661_v33  ;;  %v1900_v42 = vpack.c.bf16 %v1852_v14, %v1836_v24 }
 0x279   : > { %v4534_v49 = vpop.eup %4533  ;;  %v1558_v9 = vpop.f32.mrb[28].mxu1  ;;  %v1803_v58 = vadd.f32 1.0, %v4532_v28  ;;  %4545 = verf.f32 %v1662_v43 }
 0x27a   : > { %v6075_v51 = vadd.f32 %v1558_v9, %v5797_v21  ;;  %v1560_v55 = vpop.f32.mrb[29].mxu1  ;;  %v4536_v3 = vpop.eup %4535  ;;  %v1804_v34 = vadd.f32 1.0, %v4534_v49  ;;  %2200 = vmatprep.subr.bf16.mxu0 %v1900_v42 }
 0x27b   : > { %v1561_v23 = vadd.f32 %v1560_v55, %v5797_v21  ;;  %v1562_v59 = vpop.f32.mrb[30].mxu1  ;;  %v4538_v13 = vpop.eup %4537  ;;  %v1819_v52 = vadd.f32 1.0, %v4536_v3  ;;  %2201 = vmatpush1.bf16.msra.mxu0 %v1899_v47  ;;  %v1867_v28 = vmul.f32 %v1803_v58, %v1611_v41  ;;  %v1597_v3 = vmul.f32 0.5, %v1553_v5 }
 0x27c   : > { %v1677_v63 = vmul.f32 0.70710677, %v6075_v51  ;;  %v1563_v15 = vadd.f32 %v1562_v59, %v5801_v26  ;;  %v1564_v16 = vpop.f32.mrb[31].mxu1  ;;  %v1820_v7 = vadd.f32 1.0, %v4538_v13  ;;  %v1868_v49 = vmul.f32 %v1804_v34, %v1612_v31 }
 0x27d   : > { %v1678_v40 = vmul.f32 0.70710677, %v1561_v23  ;;  %v1565_v21 = vadd.f32 %v1564_v16, %v5801_v26  ;;  %v1883_v24 = vmul.f32 %v1819_v52, %v1627_v25  ;;  %v1581_v59 = vmul.f32 0.5, %v6060_v39 }
 0x27e   : > { %4547 = verf.f32 %v1677_v63  ;;  %v1693_v44 = vmul.f32 0.70710677, %v1563_v15  ;;  %v1884_v43 = vmul.f32 %v1820_v7, %v1628_v0  ;;  %v1582_v58 = vmul.f32 0.5, %v6063_v53 }
 0x27f   : > { %4549 = verf.f32 %v1678_v40  ;;  %v1694_v14 = vmul.f32 0.70710677, %v1565_v21  ;;  %v1915_v32 = vpack.c.bf16 %v1883_v24, %v1867_v28  ;;  %v1598_v63 = vmul.f32 0.5, %v1555_v35 }
 0x280   : > { %v4540_v33 = vpop.eup %4539  ;;  %4551 = verf.f32 %v1693_v44  ;;  %v1916_v55 = vpack.c.bf16 %v1884_v43, %v1868_v49  ;;  %v1613_v53 = vmul.f32 0.5, %v6075_v51  ;;  %v1629_v35 = vmul.f32 0.5, %v1563_v15 }
 0x281   : > { %v4542_v9 = vpop.eup %4541  ;;  %4553 = verf.f32 %v1694_v14  ;;  %v1773_v47 = vadd.f32 1.0, %v4540_v33  ;;  %v1614_v14 = vmul.f32 0.5, %v1561_v23  ;;  %v1630_v33 = vmul.f32 0.5, %v1565_v21 }
 0x282   : > { %v4544_v42 = vpop.eup %4543  ;;  %v1774_v26 = vadd.f32 1.0, %v4542_v9  ;;  %2202 = vmatprep.subr.bf16.mxu0 %v1916_v55 }
 0x283   : > { %v4546_v50 = vpop.eup %4545  ;;  %v1789_v41 = vadd.f32 1.0, %v4544_v42  ;;  %2203 = vmatpush1.bf16.msra.mxu0 %v1915_v32  ;;  %v1837_v34 = vmul.f32 %v1773_v47, %v1581_v59 }
 0x284   : > { %v1790_v31 = vadd.f32 1.0, %v4546_v50  ;;  %v1838_v25 = vmul.f32 %v1774_v26, %v1582_v58  ;;  %v6094_v26 = vpop.permute.xlu1 %1925 }
 0x285   : > { %v1853_v16 = vmul.f32 %v1789_v41, %v1597_v3 }
 0x286   : > { %v1854_v52 = vmul.f32 %v1790_v31, %v1598_v63  ;;  %4085 = vmatmul.mubr.msk.bf16.vlgmr.msra.gmra.mrb[44].mxu0 %vm1938_vm1, %v5844_v6 }
 0x287   : > { %v1901_v0 = vpack.c.bf16 %v1853_v16, %v1837_v34  ;;  %3064 = vmatprep.mubr.bf16.mxu0 %v7060_v1 }
 0x288   : > { %v4548_v13 = vpop.eup %4547  ;;  %v1902_v44 = vpack.c.bf16 %v1854_v52, %v1838_v25  ;;  %v6097_v21 = vpop.permute.xlu1 %1930 }
 0x289   : > { %v4550_v40 = vpop.eup %4549  ;;  %v1805_v7 = vadd.f32 1.0, %v4548_v13 }
 0x28a   : > { %v4552_v39 = vpop.eup %4551  ;;  %v1806_v5 = vadd.f32 1.0, %v4550_v40  ;;  %2243 = vmatprep.subr.bf16.mxu1 %v1902_v44 }
 0x28b   : > { %v4554_v28 = vpop.eup %4553  ;;  %v1821_v24 = vadd.f32 1.0, %v4552_v39  ;;  %v1869_v43 = vmul.f32 %v1805_v7, %v1613_v53  ;;  %2244 = vmatpush1.bf16.msra.mxu1 %v1901_v0 }
 0x28c   : > { %v1822_v49 = vadd.f32 1.0, %v4554_v28  ;;  %v1870_v32 = vmul.f32 %v1806_v5, %v1614_v14  ;;  %v4323_v5 = vld [vmem:[#allocation7] ss:$8 sps:$4 sm:$0xff]  }
 0x28d   : > { %v1885_v9 = vmul.f32 %v1821_v24, %v1629_v35  ;;  %v4326_v35 = vld [vmem:[#allocation7 + $0x10] ss:$8 sps:$4 sm:$0xff]  }
 0x28e   : > { %v1886_v55 = vmul.f32 %v1822_v49, %v1630_v33  ;;  %v4331_v33 = vld [vmem:[#allocation7 + $0x24] ss:$8 sps:$4 sm:$0xff]   ;;  %v4329_v49 = vld [vmem:[#allocation7 + $0x20] ss:$8 sps:$4 sm:$0xff]  }
 0x28f   : > { %v1917_v47 = vpack.c.bf16 %v1885_v9, %v1869_v43 }
 0x290   : > { %v1918_v42 = vpack.c.bf16 %v1886_v55, %v1870_v32  ;;  %v4334_v55 = vld [vmem:[#allocation7 + $0x34] ss:$8 sps:$4 sm:$0xff]  }
 0x292   : > { %2245 = vmatprep.subr.bf16.mxu1 %v1918_v42  ;;  %v4332_v42 = vld [vmem:[#allocation7 + $0x30] ss:$8 sps:$4 sm:$0xff]  }
 0x293   : > { %2246 = vmatpush1.bf16.msra.mxu1 %v1917_v47 }
 0x296   : > { %4086 = vmatmul.mubr.msk.bf16.vlgmr.msra.gmra.mrb[44].mxu1 %vm1938_vm1, %v5844_v6 }
 0x2f9   : > { %v1976_v51 = vpop.f32.mrb[32].mxu0 }
 0x2fa   : > { %v1977_v23 = vadd.f32 %v1976_v51, %v6094_v26  ;;  %v1978_v15 = vpop.f32.mrb[33].mxu0 }
 0x2fb   : > { %v1980_v50 = vpop.f32.mrb[34].mxu0  ;;  %v1979_v58 = vadd.f32 %v1978_v15, %v6094_v26 }
 0x2fc   : > { %v6100_v59 = vadd.f32 %v1977_v23, %v5437_v20  ;;  %v1981_v3 = vadd.f32 %v1980_v50, %v6097_v21  ;;  %v1982_v41 = vpop.f32.mrb[35].mxu0 }
 0x2fd   : > { %v6112_v31 = vadd.f32 %v1979_v58, %v5423_v46  ;;  %v1983_v20 = vadd.f32 %v1982_v41, %v6097_v21  ;;  %v4335_v41 = vld [vmem:[#allocation7 + $0x40] ss:$8 sps:$4 sm:$0xff]  }
 0x2fe   : > { %v6105_v63 = vadd.f32 %v1981_v3, %v5444_v4  ;;  %2384 = vadd.xlane.f32.xlu1 %v6100_v59  ;;  %v2448_v6 = vmul.f32 %v6100_v59, %v6100_v59  ;;  %v4337_v3 = vld [vmem:[#allocation7 + $0x44] ss:$8 sps:$4 sm:$0xff]  }
 0x2ff   : > { %v2450_v4 = vmul.f32 %v6112_v31, %v6112_v31  ;;  %v6121_v16 = vadd.f32 %v1983_v20, %v5426_v48  ;;  %v4325_v48 = vld [vmem:[#allocation7 + $0x4] ss:$8 sps:$4 sm:$0xff]  }
 0x300   : > { %2386 = vadd.xlane.f32.xlu0 %v6105_v63  ;;  %v2449_v34 = vmul.f32 %v6105_v63, %v6105_v63  ;;  %3032 = vmatprep.subr.bf16.mxu0 %v4325_v48 }
 0x301   : > { %v2451_v40 = vmul.f32 %v6121_v16, %v6121_v16  ;;  %3033 = vmatpush1.bf16.msra.mxu0 %v4323_v5  ;;  %v4344_v5 = vld [vmem:[#allocation7 + $0x70] ss:$8 sps:$4 sm:$0xff]  }
 0x302   : > { %2480 = vadd.xlane.f32.xlu1 %v2448_v6 }
 0x304   : > { %2388 = vadd.xlane.f32.xlu0 %v6112_v31 }
 0x306   : > { %2482 = vadd.xlane.f32.xlu1 %v2449_v34  ;;  %v4338_v34 = vld [vmem:[#allocation7 + $0x50] ss:$8 sps:$4 sm:$0xff]  }
 0x308   : > { %2484 = vadd.xlane.f32.xlu0 %v2450_v4 }
 0x309   : > { %v2019_v13 = vpop.f32.mrb[32].mxu1 }
 0x30a   : > { %2390 = vadd.xlane.f32.xlu1 %v6121_v16  ;;  %v2020_v46 = vadd.f32 %v2019_v13, %v6094_v26  ;;  %v2021_v25 = vpop.f32.mrb[33].mxu1 }
 0x30b   : > { %v2023_v52 = vpop.f32.mrb[34].mxu1  ;;  %v2022_v28 = vadd.f32 %v2021_v25, %v6094_v26  ;;  %v4341_v25 = vld [vmem:[#allocation7 + $0x60] ss:$8 sps:$4 sm:$0xff]  }
 0x30c   : > { %v6128_v0 = vadd.f32 %v2020_v46, %v5494_v54  ;;  %v2024_v7 = vadd.f32 %v2023_v52, %v6097_v21  ;;  %v2025_v39 = vpop.f32.mrb[35].mxu1  ;;  %v4328_v54 = vld [vmem:[#allocation7 + $0x14] ss:$8 sps:$4 sm:$0xff]   ;;  %v4343_v46 = vld [vmem:[#allocation7 + $0x64] ss:$8 sps:$4 sm:$0xff]  }
 0x30d   : > { %v2026_v24 = vadd.f32 %v2025_v39, %v6097_v21  ;;  %3034 = vmatprep.subr.bf16.mxu0 %v4328_v54  ;;  %v4346_v39 = vld [vmem:[#allocation7 + $0x74] ss:$8 sps:$4 sm:$0xff]  }
 0x30e   : > { %2486 = vadd.xlane.f32.xlu1 %v2451_v40  ;;  %2392 = vadd.xlane.f32.xlu0 %v6128_v0  ;;  %v6133_v44 = vadd.f32 %v2024_v7, %v5503_v57  ;;  %v2452_v53 = vmul.f32 %v6128_v0, %v6128_v0  ;;  %v6143_v57 = vadd.f32 %v2022_v28, %v5478_v37 }
 0x30f   : > { %3035 = vmatpush1.bf16.msra.mxu0 %v4326_v35  ;;  %v6147_v43 = vadd.f32 %v2026_v24, %v5475_v30 }
 0x310   : > { %v2453_v14 = vmul.f32 %v6133_v44, %v6133_v44  ;;  %3036 = vmatprep.subr.bf16.mxu0 %v4331_v33  ;;  %v2454_v9 = vmul.f32 %v6143_v57, %v6143_v57 }
 0x311   : > { %v2455_v23 = vmul.f32 %v6147_v43, %v6147_v43 }
 0x312   : > { %2394 = vadd.xlane.f32.xlu1 %v6133_v44  ;;  %2488 = vadd.xlane.f32.xlu0 %v2452_v53 }
 0x313   : > { %3037 = vmatpush1.bf16.msra.mxu0 %v4329_v49 }
 0x314   : > { %3038 = vmatprep.subr.bf16.mxu0 %v4334_v55 }
 0x316   : > { %2490 = vadd.xlane.f32.xlu1 %v2453_v14  ;;  %2396 = vadd.xlane.f32.xlu0 %v6143_v57 }
 0x317   : > { %3039 = vmatpush1.bf16.msra.mxu0 %v4332_v42 }
 0x318   : > { %3040 = vmatprep.subr.bf16.mxu0 %v4337_v3 }
 0x319   : > { %v2062_v32 = vpop.f32.mrb[36].mxu0 }
 0x31a   : > { %2398 = vadd.xlane.f32.xlu1 %v6147_v43  ;;  %v2063_v37 = vadd.f32 %v2062_v32, %v6094_v26  ;;  %v2064_v47 = vpop.f32.mrb[37].mxu0  ;;  %2492 = vadd.xlane.f32.xlu0 %v2454_v9 }
 0x31b   : > { %v2066_v51 = vpop.f32.mrb[38].mxu0  ;;  %v2065_v6 = vadd.f32 %v2064_v47, %v6094_v26  ;;  %3041 = vmatpush1.bf16.msra.mxu0 %v4335_v41 }
 0x31c   : > { %v6156_v30 = vadd.f32 %v2063_v37, %v5544_v11  ;;  %v2067_v15 = vadd.f32 %v2066_v51, %v6097_v21  ;;  %v2068_v50 = vpop.f32.mrb[39].mxu0  ;;  %v4340_v11 = vld [vmem:[#allocation7 + $0x54] ss:$8 sps:$4 sm:$0xff]  }
 0x31d   : > { %v2069_v4 = vadd.f32 %v2068_v50, %v6097_v21  ;;  %3042 = vmatprep.subr.bf16.mxu0 %v4340_v11 }
 0x31e   : > { %2494 = vadd.xlane.f32.xlu1 %v2455_v23  ;;  %2400 = vadd.xlane.f32.xlu0 %v6156_v30  ;;  %v6161_v58 = vadd.f32 %v2067_v15, %v5553_v22  ;;  %v2456_v20 = vmul.f32 %v6156_v30, %v6156_v30  ;;  %v6171_v22 = vadd.f32 %v2065_v6, %v5533_v12 }
 0x31f   : > { %3043 = vmatpush1.bf16.msra.mxu0 %v4338_v34  ;;  %v6175_v52 = vadd.f32 %v2069_v4, %v5530_v61 }
 0x320   : > { %v2457_v13 = vmul.f32 %v6161_v58, %v6161_v58  ;;  %3044 = vmatprep.subr.bf16.mxu0 %v4343_v46  ;;  %v2458_v40 = vmul.f32 %v6171_v22, %v6171_v22 }
 0x321   : > { %v2459_v53 = vmul.f32 %v6175_v52, %v6175_v52 }
 0x322   : > { %2402 = vadd.xlane.f32.xlu1 %v6161_v58  ;;  %2496 = vadd.xlane.f32.xlu0 %v2456_v20 }
 0x323   : > { %3045 = vmatpush1.bf16.msra.mxu0 %v4341_v25 }
 0x324   : > { %3046 = vmatprep.subr.bf16.mxu0 %v4346_v39 }
 0x326   : > { %2498 = vadd.xlane.f32.xlu1 %v2457_v13  ;;  %2404 = vadd.xlane.f32.xlu0 %v6171_v22 }
 0x327   : > { %3047 = vmatpush1.bf16.msra.mxu0 %v4344_v5 }
 0x329   : > { %v2105_v7 = vpop.f32.mrb[36].mxu1 }
 0x32a   : > { %2406 = vadd.xlane.f32.xlu1 %v6175_v52  ;;  %v2106_v12 = vadd.f32 %v2105_v7, %v6094_v26  ;;  %v2107_v48 = vpop.f32.mrb[37].mxu1  ;;  %2500 = vadd.xlane.f32.xlu0 %v2458_v40 }
 0x32b   : > { %v2109_v28 = vpop.f32.mrb[38].mxu1  ;;  %v2108_v14 = vadd.f32 %v2107_v48, %v6094_v26 }
 0x32c   : > { %v6184_v61 = vadd.f32 %v2106_v12, %v5594_v19  ;;  %v2110_v54 = vadd.f32 %v2109_v28, %v6097_v21  ;;  %v2111_v35 = vpop.f32.mrb[39].mxu1 }
 0x32d   : > { %v2112_v19 = vadd.f32 %v2111_v35, %v6097_v21  ;;  %v6199_v9 = vadd.f32 %v2108_v14, %v5583_v2 }
 0x32e   : > { %2502 = vadd.xlane.f32.xlu1 %v2459_v53  ;;  %2408 = vadd.xlane.f32.xlu0 %v6184_v61  ;;  %v6189_v24 = vadd.f32 %v2110_v54, %v5603_v38  ;;  %v2460_v33 = vmul.f32 %v6184_v61, %v6184_v61 }
 0x32f   : > { %v6203_v38 = vadd.f32 %v2112_v19, %v5580_v56  ;;  %v2462_v32 = vmul.f32 %v6199_v9, %v6199_v9 }
 0x330   : > { %v2461_v49 = vmul.f32 %v6189_v24, %v6189_v24 }
 0x331   : > { %v2463_v2 = vmul.f32 %v6203_v38, %v6203_v38 }
 0x332   : > { %2410 = vadd.xlane.f32.xlu1 %v6189_v24  ;;  %2504 = vadd.xlane.f32.xlu0 %v2460_v33 }
 0x336   : > { %2506 = vadd.xlane.f32.xlu1 %v2461_v49  ;;  %2412 = vadd.xlane.f32.xlu0 %v6199_v9 }
 0x339   : > { %v2148_v55 = vpop.f32.mrb[40].mxu0 }
 0x33a   : > { %2414 = vadd.xlane.f32.xlu1 %v6203_v38  ;;  %v2149_v37 = vadd.f32 %v2148_v55, %v6094_v26  ;;  %v2150_v47 = vpop.f32.mrb[41].mxu0  ;;  %2508 = vadd.xlane.f32.xlu0 %v2462_v32 }
 0x33b   : > { %v2152_v42 = vpop.f32.mrb[42].mxu0  ;;  %v2151_v50 = vadd.f32 %v2150_v47, %v6094_v26 }
 0x33c   : > { %v6212_v51 = vadd.f32 %v2149_v37, %v5644_v27  ;;  %v2153_v56 = vadd.f32 %v2152_v42, %v6097_v21  ;;  %v2154_v23 = vpop.f32.mrb[43].mxu0  ;;  %v7061_v37 = vld [vmem:[#allocation17_spill] sm:$0xff] }
 0x33d   : > { %v2155_v27 = vadd.f32 %v2154_v23, %v6097_v21  ;;  %v6227_v6 = vadd.f32 %v2151_v50, %v5633_v29 }
 0x33e   : > { %2510 = vadd.xlane.f32.xlu1 %v2463_v2  ;;  %2416 = vadd.xlane.f32.xlu0 %v6212_v51  ;;  %v6217_v15 = vadd.f32 %v2153_v56, %v5653_v10  ;;  %v2464_v3 = vmul.f32 %v6212_v51, %v6212_v51  ;;  %v7062_v56 = vld [vmem:[#allocation16_spill] sm:$0xff] }
 0x33f   : > { %v6231_v10 = vadd.f32 %v2155_v27, %v5630_v45  ;;  %v2466_v20 = vmul.f32 %v6227_v6, %v6227_v6 }
 0x340   : > { %v2465_v41 = vmul.f32 %v6217_v15, %v6217_v15 }
 0x341   : > { %v2467_v29 = vmul.f32 %v6231_v10, %v6231_v10 }
 0x342   : > { %2418 = vadd.xlane.f32.xlu1 %v6217_v15  ;;  %2512 = vadd.xlane.f32.xlu0 %v2464_v3 }
 0x346   : > { %2514 = vadd.xlane.f32.xlu1 %v2465_v41  ;;  %2420 = vadd.xlane.f32.xlu0 %v6227_v6  ;;  %v7063_v41 = vld [vmem:[#allocation21_spill] sm:$0xff] }
 0x349   : > { %v2191_v11 = vpop.f32.mrb[40].mxu1 }
 0x34a   : > { %2422 = vadd.xlane.f32.xlu1 %v6231_v10  ;;  %v2192_v34 = vadd.f32 %v2191_v11, %v6094_v26  ;;  %v2193_v4 = vpop.f32.mrb[41].mxu1  ;;  %2516 = vadd.xlane.f32.xlu0 %v2466_v20 }
 0x34b   : > { %v2195_v13 = vpop.f32.mrb[42].mxu1  ;;  %v2194_v7 = vadd.f32 %v2193_v4, %v6094_v26  ;;  %v7064_v4 = vld [vmem:[#allocation20_spill] sm:$0xff] }
 0x34c   : > { %v6240_v46 = vadd.f32 %v2192_v34, %v5694_v36  ;;  %v2196_v45 = vadd.f32 %v2195_v13, %v6097_v21  ;;  %v2197_v25 = vpop.f32.mrb[43].mxu1 }
 0x34d   : > { %v2198_v36 = vadd.f32 %v2197_v25, %v6097_v21  ;;  %v6255_v48 = vadd.f32 %v2194_v7, %v5683_v60 }
 0x34e   : > { %2518 = vadd.xlane.f32.xlu1 %v2467_v29  ;;  %2424 = vadd.xlane.f32.xlu0 %v6240_v46  ;;  %v6245_v40 = vadd.f32 %v2196_v45, %v5703_v18  ;;  %v2468_v39 = vmul.f32 %v6240_v46, %v6240_v46 }
 0x34f   : > { %v6259_v18 = vadd.f32 %v2198_v36, %v5680_v62  ;;  %v2470_v54 = vmul.f32 %v6255_v48, %v6255_v48 }
 0x350   : > { %v2469_v12 = vmul.f32 %v6245_v40, %v6245_v40 }
 0x351   : > { %v2471_v62 = vmul.f32 %v6259_v18, %v6259_v18 }
 0x352   : > { %2426 = vadd.xlane.f32.xlu1 %v6245_v40  ;;  %2520 = vadd.xlane.f32.xlu0 %v2468_v39  ;;  %v7066_v39 = vld [vmem:[#allocation19_spill] sm:$0xff] }
 0x356   : > { %2522 = vadd.xlane.f32.xlu1 %v2469_v12  ;;  %2428 = vadd.xlane.f32.xlu0 %v6255_v48  ;;  %v7068_v12 = vld [vmem:[#allocation18_spill] sm:$0xff] }
 0x359   : > { %v2234_v5 = vpop.f32.mrb[44].mxu0 }
 0x35a   : > { %v2235_v28 = vadd.f32 %v2234_v5, %v6094_v26  ;;  %v2236_v53 = vpop.f32.mrb[45].mxu0  ;;  %2430 = vadd.xlane.f32.xlu1 %v6259_v18  ;;  %2524 = vadd.xlane.f32.xlu0 %v2470_v54 }
 0x35b   : > { %v2238_v35 = vpop.f32.mrb[46].mxu0  ;;  %v2237_v49 = vadd.f32 %v2236_v53, %v6094_v26 }
 0x35c   : > { %v6266_v14 = vadd.f32 %v2235_v28, %v5743_v17  ;;  %v2240_v60 = vpop.f32.mrb[47].mxu0  ;;  %v2239_v33 = vadd.f32 %v2238_v35, %v6097_v21 }
 0x35d   : > { %v2241_v17 = vadd.f32 %v2240_v60, %v6097_v21  ;;  %v6283_v47 = vadd.f32 %v2237_v49, %v7061_v37 }
 0x35e   : > { %2526 = vadd.xlane.f32.xlu1 %v2471_v62  ;;  %2432 = vadd.xlane.f32.xlu0 %v6266_v14  ;;  %v6273_v19 = vadd.f32 %v2239_v33, %v5740_v8  ;;  %v2472_v32 = vmul.f32 %v6266_v14, %v6266_v14 }
 0x35f   : > { %v6288_v23 = vadd.f32 %v2241_v17, %v7062_v56  ;;  %v2474_v3 = vmul.f32 %v6283_v47, %v6283_v47 }
 0x360   : > { %v2473_v55 = vmul.f32 %v6273_v19, %v6273_v19 }
 0x361   : > { %v2475_v34 = vmul.f32 %v6288_v23, %v6288_v23 }
 0x362   : > { %2434 = vadd.xlane.f32.xlu1 %v6273_v19  ;;  %2528 = vadd.xlane.f32.xlu0 %v2472_v32 }
 0x366   : > { %2530 = vadd.xlane.f32.xlu1 %v2473_v55  ;;  %2436 = vadd.xlane.f32.xlu0 %v6283_v47 }
 0x369   : > { %v2277_v42 = vpop.f32.mrb[44].mxu1 }
 0x36a   : > { %v2278_v8 = vadd.f32 %v2277_v42, %v6094_v26  ;;  %v2279_v2 = vpop.f32.mrb[45].mxu1  ;;  %2438 = vadd.xlane.f32.xlu1 %v6288_v23  ;;  %2532 = vadd.xlane.f32.xlu0 %v2474_v3 }
 0x36b   : > { %v2281_v50 = vpop.f32.mrb[46].mxu1  ;;  %v2280_v29 = vadd.f32 %v2279_v2, %v6094_v26 }
 0x36c   : > { %v2283_v27 = vpop.f32.mrb[47].mxu1  ;;  %v6294_v20 = vadd.f32 %v2278_v8, %v7063_v41  ;;  %v2282_v11 = vadd.f32 %v2281_v50, %v6097_v21 }
 0x36d   : > { %v2284_v25 = vadd.f32 %v2283_v27, %v6097_v21  ;;  %v6311_v36 = vadd.f32 %v2280_v29, %v7066_v39 }
 0x36e   : > { %2534 = vadd.xlane.f32.xlu1 %v2475_v34  ;;  %2440 = vadd.xlane.f32.xlu0 %v6294_v20  ;;  %v6301_v13 = vadd.f32 %v2282_v11, %v7064_v4  ;;  %v2476_v45 = vmul.f32 %v6294_v20, %v6294_v20 }
 0x36f   : > { %7067 = vst [vmem:[#allocation16_spill] sm:$0xff] %v6311_v36  ;;  %v6315_v5 = vadd.f32 %v2284_v25, %v7068_v12  ;;  %v2478_v26 = vmul.f32 %v6311_v36, %v6311_v36 }
 0x370   : > { %7065 = vst [vmem:[#allocation17_spill] sm:$0xff] %v6301_v13  ;;  %v2477_v7 = vmul.f32 %v6301_v13, %v6301_v13 }
 0x371   : > { %7069 = vst [vmem:[#allocation21_spill] sm:$0xff] %v6315_v5  ;;  %v2479_v21 = vmul.f32 %v6315_v5, %v6315_v5 }
 0x372   : > { %2442 = vadd.xlane.f32.xlu1 %v6301_v13  ;;  %2536 = vadd.xlane.f32.xlu0 %v2476_v45 }
 0x376   : > { %2538 = vadd.xlane.f32.xlu1 %v2477_v7  ;;  %2444 = vadd.xlane.f32.xlu0 %v6311_v36 }
 0x37a   : > { %2446 = vadd.xlane.f32.xlu1 %v6315_v5  ;;  %2540 = vadd.xlane.f32.xlu0 %v2478_v26 }
 0x37e   : > { %2542 = vadd.xlane.f32.xlu1 %v2479_v21 }
 0x38b   : > { %v2385_v28 = vpop.xlane.xlu1 %2384 }
 0x38c   : > { %v2544_v53 = vmul.f32 0.0078125, %v2385_v28 }
 0x38d   : > { %v2387_v54 = vpop.xlane.xlu0 %2386 }
 0x38e   : > { %v2608_v60 = vmul.f32 %v2544_v53, %v2544_v53  ;;  %v2545_v33 = vmul.f32 0.0078125, %v2387_v54 }
 0x38f   : > { %v2481_v35 = vpop.xlane.xlu1 %2480 }
 0x390   : > { %v2576_v62 = vmul.f32 0.0078125, %v2481_v35  ;;  %v2609_v37 = vmul.f32 %v2545_v33, %v2545_v33 }
 0x391   : > { %v2389_v49 = vpop.xlane.xlu0 %2388 }
 0x392   : > { %v2640_v32 = vsub.f32 %v2576_v62, %v2608_v60  ;;  %v6322_v17 = vmul.f32 0.0078125, %v2389_v49  ;;  %v2704_v49 = vsub.f32 %v6100_v59, %v2544_v53  ;;  %v2705_v53 = vsub.f32 %v6105_v63, %v2545_v33 }
 0x393   : > { %v2483_v55 = vpop.xlane.xlu1 %2482 }
 0x394   : > { %v2672_v42 = vmax.f32 %v2640_v32, 0.0  ;;  %v2577_v8 = vmul.f32 0.0078125, %v2483_v55  ;;  %v2610_v50 = vmul.f32 %v6322_v17, %v6322_v17 }
 0x395   : > { %v2485_v2 = vpop.xlane.xlu0 %2484 }
 0x396   : > { %v2736_v56 = vadd.f32 1e-05, %v2672_v42  ;;  %v2641_v3 = vsub.f32 %v2577_v8, %v2609_v37  ;;  %v2578_v27 = vmul.f32 0.0078125, %v2485_v2 }
 0x397   : > { %v2391_v41 = vpop.xlane.xlu1 %2390 }
 0x398   : > { %4555 = vrsqrt.f32 %v2736_v56  ;;  %v2673_v11 = vmax.f32 %v2641_v3, 0.0  ;;  %v2642_v34 = vsub.f32 %v2578_v27, %v2610_v50  ;;  %v6326_v4 = vmul.f32 0.0078125, %v2391_v41  ;;  %v6342_v41 = vld [vmem:[%s7010_s7] ss:$0 sm:$0xff] }
 0x39a   : > { %v2737_v29 = vadd.f32 1e-05, %v2673_v11  ;;  %v2674_v45 = vmax.f32 %v2642_v34, 0.0  ;;  %v2611_v39 = vmul.f32 %v6326_v4, %v6326_v4 }
 0x39b   : > { %v2487_v25 = vpop.xlane.xlu1 %2486  ;;  %v2393_v12 = vpop.xlane.xlu0 %2392 }
 0x39c   : > { %4557 = vrsqrt.f32 %v2737_v29  ;;  %v2738_v7 = vadd.f32 1e-05, %v2674_v45  ;;  %v2579_v26 = vmul.f32 0.0078125, %v2487_v25  ;;  %v6330_v21 = vmul.f32 0.0078125, %v2393_v12 }
 0x39e   : > { %4559 = vrsqrt.f32 %v2738_v7  ;;  %v2643_v28 = vsub.f32 %v2579_v26, %v2611_v39  ;;  %v2612_v32 = vmul.f32 %v6330_v21, %v6330_v21  ;;  %v4347_v26 = vld [vmem:[#allocation9 + $0x40] sm:$0xff]  }
 0x39f   : > { %v2395_v54 = vpop.xlane.xlu1 %2394  ;;  %v2489_v60 = vpop.xlane.xlu0 %2488  ;;  %4132 = vmatprep.subr.bf16.mxu1 %v4347_v26 }
 0x3a0   : > { %v2675_v35 = vmax.f32 %v2643_v28, 0.0  ;;  %v6332_v62 = vmul.f32 0.0078125, %v2395_v54  ;;  %v2580_v55 = vmul.f32 0.0078125, %v2489_v60  ;;  %v4348_v28 = vld [vmem:[#allocation9] sm:$0xff]   ;;  %v4349_v54 = vld [vmem:[#allocation9 + $0x48] sm:$0xff]   ;;  %v2706_v60 = vsub.f32 %v6112_v31, %v6322_v17 }
 0x3a1   : > { %4133 = vmatpush3.bf16.msra.mxu1 %v4348_v28  ;;  %v4350_v17 = vld [vmem:[#allocation9 + $0x8] sm:$0xff]  }
 0x3a2   : > { %v4556_v37 = vpop.eup %4555  ;;  %v2739_v42 = vadd.f32 1e-05, %v2675_v35  ;;  %v2644_v8 = vsub.f32 %v2580_v55, %v2612_v32  ;;  %v2613_v50 = vmul.f32 %v6332_v62, %v6332_v62  ;;  %v6355_v55 = vld [vmem:[%s7011_s8] ss:$0 sm:$0xff]  ;;  %4134 = vmatprep.subr.bf16.mxu1 %v4349_v54 }
 0x3a3   : > { %v2491_v2 = vpop.xlane.xlu1 %2490  ;;  %v2800_v56 = vmul.f32 %v4556_v37, %v2704_v49  ;;  %v2397_v3 = vpop.xlane.xlu0 %2396 }
 0x3a4   : > { %4561 = vrsqrt.f32 %v2739_v42  ;;  %v2581_v27 = vmul.f32 0.0078125, %v2491_v2  ;;  %v2676_v11 = vmax.f32 %v2644_v8, 0.0  ;;  %v6345_v34 = vmul.f32 0.0078125, %v2397_v3 }
 0x3a5   : > { %v2838_v12 = vmul.f32 %v6342_v41, %v2800_v56  ;;  %4135 = vmatpush3.bf16.msra.mxu1 %v4350_v17  ;;  %v2708_v17 = vsub.f32 %v6128_v0, %v6330_v21 }
 0x3a6   : > { %v4558_v29 = vpop.eup %4557  ;;  %v2645_v45 = vsub.f32 %v2581_v27, %v2613_v50  ;;  %v2740_v25 = vadd.f32 1e-05, %v2676_v11  ;;  %v2614_v37 = vmul.f32 %v6345_v34, %v6345_v34 }
 0x3a7   : > { %v2399_v7 = vpop.xlane.xlu1 %2398  ;;  %v2801_v39 = vmul.f32 %v4558_v29, %v2705_v53  ;;  %v2493_v32 = vpop.xlane.xlu0 %2492  ;;  %v2876_v3 = vadd.f32 %v6355_v55, %v2838_v12 }
 0x3a8   : > { %v4560_v35 = vpop.eup %4559  ;;  %v2677_v49 = vmax.f32 %v2645_v45, 0.0  ;;  %v6350_v33 = vmul.f32 0.0078125, %v2399_v7  ;;  %4563 = vrsqrt.f32 %v2740_v25  ;;  %v2582_v42 = vmul.f32 0.0078125, %v2493_v32 }
 0x3a9   : > { %v2839_v8 = vmul.f32 %v6342_v41, %v2801_v39  ;;  %v2802_v53 = vmul.f32 %v4560_v35, %v2706_v60  ;;  %v2707_v25 = vsub.f32 %v6121_v16, %v6326_v4 }
 0x3aa   : > { %v2741_v2 = vadd.f32 1e-05, %v2677_v49  ;;  %v2646_v56 = vsub.f32 %v2582_v42, %v2614_v37  ;;  %v2615_v11 = vmul.f32 %v6350_v33, %v6350_v33 }
 0x3ab   : > { %v2495_v50 = vpop.xlane.xlu1 %2494  ;;  %v2877_v27 = vadd.f32 %v6355_v55, %v2839_v8  ;;  %v2401_v29 = vpop.xlane.xlu0 %2400  ;;  %v2840_v60 = vmul.f32 %v6342_v41, %v2802_v53 }
 0x3ac   : > { %4565 = vrsqrt.f32 %v2741_v2  ;;  %v2583_v45 = vmul.f32 0.0078125, %v2495_v50  ;;  %v2678_v7 = vmax.f32 %v2646_v56, 0.0  ;;  %v6366_v39 = vmul.f32 0.0078125, %v2401_v29 }
 0x3ad   : > { %v2908_v26 = vpack.c.bf16 %v2877_v27, %v2876_v3  ;;  %v2878_v53 = vadd.f32 %v6355_v55, %v2840_v60 }
 0x3ae   : > { %v4562_v28 = vpop.eup %4561  ;;  %v2647_v49 = vsub.f32 %v2583_v45, %v2615_v11  ;;  %v2742_v12 = vadd.f32 1e-05, %v2678_v7  ;;  %v2616_v4 = vmul.f32 %v6366_v39, %v6366_v39 }
 0x3af   : > { %3065 = vmatmul.mubr.bf16.vlgmr.msra.gmra.mrb[48].mxu0 %v2908_v26  ;;  %v2403_v35 = vpop.xlane.xlu1 %2402  ;;  %v2803_v54 = vmul.f32 %v4562_v28, %v2707_v25  ;;  %v2497_v37 = vpop.xlane.xlu0 %2496  ;;  %v2709_v26 = vsub.f32 %v6133_v44, %v6332_v62 }
 0x3b0   : > { %v2679_v32 = vmax.f32 %v2647_v49, 0.0  ;;  %v6369_v42 = vmul.f32 0.0078125, %v2403_v35  ;;  %3074 = vmatprep.mubr.bf16.mxu0 %v7060_v1  ;;  %4567 = vrsqrt.f32 %v2742_v12  ;;  %v2584_v8 = vmul.f32 0.0078125, %v2497_v37 }
 0x3b1   : > { %v2841_v2 = vmul.f32 %v6342_v41, %v2803_v54 }
 0x3b2   : > { %v2743_v56 = vadd.f32 1e-05, %v2679_v32  ;;  %v4564_v50 = vpop.eup %4563  ;;  %v2648_v3 = vsub.f32 %v2584_v8, %v2616_v4  ;;  %v2617_v29 = vmul.f32 %v6369_v42, %v6369_v42 }
 0x3b3   : > { %v2499_v27 = vpop.xlane.xlu1 %2498  ;;  %v2879_v11 = vadd.f32 %v6355_v55, %v2841_v2  ;;  %v2405_v45 = vpop.xlane.xlu0 %2404  ;;  %v2804_v7 = vmul.f32 %v4564_v50, %v2708_v17  ;;  %v2710_v50 = vsub.f32 %v6143_v57, %v6345_v34 }
 0x3b4   : > { %4569 = vrsqrt.f32 %v2743_v56  ;;  %v2585_v25 = vmul.f32 0.0078125, %v2499_v27  ;;  %v2680_v28 = vmax.f32 %v2648_v3, 0.0  ;;  %v6383_v21 = vmul.f32 0.0078125, %v2405_v45 }
 0x3b5   : > { %v2909_v49 = vpack.c.bf16 %v2879_v11, %v2878_v53  ;;  %v2842_v37 = vmul.f32 %v6342_v41, %v2804_v7 }
 0x3b6   : > { %v4566_v12 = vpop.eup %4565  ;;  %v2649_v35 = vsub.f32 %v2585_v25, %v2617_v29  ;;  %v2744_v54 = vadd.f32 1e-05, %v2680_v28  ;;  %v2618_v62 = vmul.f32 %v6383_v21, %v6383_v21 }
 0x3b7   : > { %3075 = vmatmul.mubr.bf16.gmra.mrb[52].mxu0 %v2909_v49  ;;  %v2407_v60 = vpop.xlane.xlu1 %2406  ;;  %v2805_v32 = vmul.f32 %v4566_v12, %v2709_v26  ;;  %v2501_v8 = vpop.xlane.xlu0 %2500  ;;  %v2880_v29 = vadd.f32 %v6355_v55, %v2842_v37  ;;  %v2711_v49 = vsub.f32 %v6147_v43, %v6350_v33 }
 0x3b8   : > { %v2681_v4 = vmax.f32 %v2649_v35, 0.0  ;;  %v6386_v2 = vmul.f32 0.0078125, %v2407_v60  ;;  %3084 = vmatprep.mubr.bf16.mxu0 %v7060_v1  ;;  %4571 = vrsqrt.f32 %v2744_v54  ;;  %v2586_v17 = vmul.f32 0.0078125, %v2501_v8 }
 0x3b9   : > { %v2843_v56 = vmul.f32 %v6342_v41, %v2805_v32 }
 0x3ba   : > { %v2745_v3 = vadd.f32 1e-05, %v2681_v4  ;;  %v4568_v27 = vpop.eup %4567  ;;  %v2650_v53 = vsub.f32 %v2586_v17, %v2618_v62  ;;  %v2619_v25 = vmul.f32 %v6386_v2, %v6386_v2 }
 0x3bb   : > { %v2503_v11 = vpop.xlane.xlu1 %2502  ;;  %v2881_v45 = vadd.f32 %v6355_v55, %v2843_v56  ;;  %v2409_v7 = vpop.xlane.xlu0 %2408  ;;  %v2806_v28 = vmul.f32 %v4568_v27, %v2710_v50  ;;  %v2712_v27 = vsub.f32 %v6156_v30, %v6366_v39 }
 0x3bc   : > { %4573 = vrsqrt.f32 %v2745_v3  ;;  %v2587_v26 = vmul.f32 0.0078125, %v2503_v11  ;;  %v2682_v12 = vmax.f32 %v2650_v53, 0.0  ;;  %v6400_v34 = vmul.f32 0.0078125, %v2409_v7 }
 0x3bd   : > { %v2910_v35 = vpack.c.bf16 %v2881_v45, %v2880_v29  ;;  %v2844_v8 = vmul.f32 %v6342_v41, %v2806_v28 }
 0x3be   : > { %v4570_v54 = vpop.eup %4569  ;;  %v2651_v60 = vsub.f32 %v2587_v26, %v2619_v25  ;;  %v2746_v32 = vadd.f32 1e-05, %v2682_v12  ;;  %v2620_v33 = vmul.f32 %v6400_v34, %v6400_v34 }
 0x3bf   : > { %3085 = vmatmul.mubr.bf16.gmra.mrb[56].mxu0 %v2910_v35  ;;  %v2411_v37 = vpop.xlane.xlu1 %2410  ;;  %v2807_v4 = vmul.f32 %v4570_v54, %v2711_v49  ;;  %v2505_v17 = vpop.xlane.xlu0 %2504  ;;  %v2882_v25 = vadd.f32 %v6355_v55, %v2844_v8  ;;  %v2713_v35 = vsub.f32 %v6161_v58, %v6369_v42 }
 0x3c0   : > { %v2683_v62 = vmax.f32 %v2651_v60, 0.0  ;;  %v6403_v56 = vmul.f32 0.0078125, %v2411_v37  ;;  %3094 = vmatprep.mubr.bf16.mxu0 %v7060_v1  ;;  %4575 = vrsqrt.f32 %v2746_v32  ;;  %v2588_v50 = vmul.f32 0.0078125, %v2505_v17 }
 0x3c1   : > { %v2845_v3 = vmul.f32 %v6342_v41, %v2807_v4 }
 0x3c2   : > { %v2747_v53 = vadd.f32 1e-05, %v2683_v62  ;;  %v4572_v11 = vpop.eup %4571  ;;  %v2652_v29 = vsub.f32 %v2588_v50, %v2620_v33  ;;  %v2621_v26 = vmul.f32 %v6403_v56, %v6403_v56 }
 0x3c3   : > { %v2507_v45 = vpop.xlane.xlu1 %2506  ;;  %v2883_v7 = vadd.f32 %v6355_v55, %v2845_v3  ;;  %v2413_v28 = vpop.xlane.xlu0 %2412  ;;  %v2808_v12 = vmul.f32 %v4572_v11, %v2712_v27  ;;  %v2714_v11 = vsub.f32 %v6171_v22, %v6383_v21 }
 0x3c4   : > { %4577 = vrsqrt.f32 %v2747_v53  ;;  %v2589_v49 = vmul.f32 0.0078125, %v2507_v45  ;;  %v2684_v54 = vmax.f32 %v2652_v29, 0.0  ;;  %v6417_v39 = vmul.f32 0.0078125, %v2413_v28 }
 0x3c5   : > { %v2911_v60 = vpack.c.bf16 %v2883_v7, %v2882_v25  ;;  %v2846_v17 = vmul.f32 %v6342_v41, %v2808_v12 }
 0x3c6   : > { %v4574_v32 = vpop.eup %4573  ;;  %v2653_v37 = vsub.f32 %v2589_v49, %v2621_v26  ;;  %v2748_v4 = vadd.f32 1e-05, %v2684_v54  ;;  %v2622_v42 = vmul.f32 %v6417_v39, %v6417_v39 }
 0x3c7   : > { %3095 = vmatmul.mubr.bf16.gmra.mrb[60].mxu0 %v2911_v60  ;;  %v2415_v8 = vpop.xlane.xlu1 %2414  ;;  %v2809_v62 = vmul.f32 %v4574_v32, %v2713_v35  ;;  %v2509_v50 = vpop.xlane.xlu0 %2508  ;;  %v2884_v26 = vadd.f32 %v6355_v55, %v2846_v17  ;;  %v2715_v60 = vsub.f32 %v6175_v52, %v6386_v2 }
 0x3c8   : > { %v2685_v33 = vmax.f32 %v2653_v37, 0.0  ;;  %v6420_v3 = vmul.f32 0.0078125, %v2415_v8  ;;  %3104 = vmatprep.mubr.bf16.mxu0 %v7060_v1  ;;  %4579 = vrsqrt.f32 %v2748_v4  ;;  %v2590_v27 = vmul.f32 0.0078125, %v2509_v50 }
 0x3c9   : > { %v2847_v53 = vmul.f32 %v6342_v41, %v2809_v62 }
 0x3ca   : > { %v2749_v29 = vadd.f32 1e-05, %v2685_v33  ;;  %v4576_v45 = vpop.eup %4575  ;;  %v2654_v25 = vsub.f32 %v2590_v27, %v2622_v42  ;;  %v2623_v49 = vmul.f32 %v6420_v3, %v6420_v3 }
 0x3cb   : > { %v2511_v7 = vpop.xlane.xlu1 %2510  ;;  %v2885_v28 = vadd.f32 %v6355_v55, %v2847_v53  ;;  %v2417_v12 = vpop.xlane.xlu0 %2416  ;;  %v2810_v54 = vmul.f32 %v4576_v45, %v2714_v11  ;;  %v2716_v45 = vsub.f32 %v6184_v61, %v6400_v34 }
 0x3cc   : > { %4581 = vrsqrt.f32 %v2749_v29  ;;  %v2591_v35 = vmul.f32 0.0078125, %v2511_v7  ;;  %v2686_v32 = vmax.f32 %v2654_v25, 0.0  ;;  %v6434_v21 = vmul.f32 0.0078125, %v2417_v12 }
 0x3cd   : > { %v2912_v37 = vpack.c.bf16 %v2885_v28, %v2884_v26  ;;  %v2848_v50 = vmul.f32 %v6342_v41, %v2810_v54 }
 0x3ce   : > { %v4578_v4 = vpop.eup %4577  ;;  %v2655_v8 = vsub.f32 %v2591_v35, %v2623_v49  ;;  %v2750_v62 = vadd.f32 1e-05, %v2686_v32  ;;  %v2624_v2 = vmul.f32 %v6434_v21, %v6434_v21 }
 0x3cf   : > { %3105 = vmatmul.mubr.bf16.gmra.mrb[64].mxu0 %v2912_v37  ;;  %v2419_v17 = vpop.xlane.xlu1 %2418  ;;  %v2811_v33 = vmul.f32 %v4578_v4, %v2715_v60  ;;  %v2513_v27 = vpop.xlane.xlu0 %2512  ;;  %v2886_v49 = vadd.f32 %v6355_v55, %v2848_v50  ;;  %v2717_v37 = vsub.f32 %v6189_v24, %v6403_v56 }
 0x3d0   : > { %v2687_v42 = vmax.f32 %v2655_v8, 0.0  ;;  %v6437_v53 = vmul.f32 0.0078125, %v2419_v17  ;;  %3114 = vmatprep.mubr.bf16.mxu0 %v7060_v1  ;;  %4583 = vrsqrt.f32 %v2750_v62  ;;  %v2592_v11 = vmul.f32 0.0078125, %v2513_v27 }
 0x3d1   : > { %v2849_v29 = vmul.f32 %v6342_v41, %v2811_v33 }
 0x3d2   : > { %v2751_v25 = vadd.f32 1e-05, %v2687_v42  ;;  %v4580_v7 = vpop.eup %4579  ;;  %v2656_v26 = vsub.f32 %v2592_v11, %v2624_v2  ;;  %v2625_v35 = vmul.f32 %v6437_v53, %v6437_v53 }
 0x3d3   : > { %v2515_v28 = vpop.xlane.xlu1 %2514  ;;  %v2887_v12 = vadd.f32 %v6355_v55, %v2849_v29  ;;  %v2421_v54 = vpop.xlane.xlu0 %2420  ;;  %v2812_v32 = vmul.f32 %v4580_v7, %v2716_v45  ;;  %v2718_v7 = vsub.f32 %v6199_v9, %v6417_v39 }
 0x3d4   : > { %4585 = vrsqrt.f32 %v2751_v25  ;;  %v2593_v60 = vmul.f32 0.0078125, %v2515_v28  ;;  %v2688_v4 = vmax.f32 %v2656_v26, 0.0  ;;  %v6451_v34 = vmul.f32 0.0078125, %v2421_v54 }
 0x3d5   : > { %v2913_v8 = vpack.c.bf16 %v2887_v12, %v2886_v49  ;;  %v2850_v27 = vmul.f32 %v6342_v41, %v2812_v32 }
 0x3d6   : > { %v4582_v62 = vpop.eup %4581  ;;  %v2657_v17 = vsub.f32 %v2593_v60, %v2625_v35  ;;  %v2752_v33 = vadd.f32 1e-05, %v2688_v4  ;;  %v2626_v56 = vmul.f32 %v6451_v34, %v6451_v34 }
 0x3d7   : > { %3115 = vmatmul.mubr.bf16.gmra.mrb[68].mxu0 %v2913_v8  ;;  %v2423_v50 = vpop.xlane.xlu1 %2422  ;;  %v2813_v42 = vmul.f32 %v4582_v62, %v2717_v37  ;;  %v2517_v11 = vpop.xlane.xlu0 %2516  ;;  %v2888_v35 = vadd.f32 %v6355_v55, %v2850_v27  ;;  %v2719_v8 = vsub.f32 %v6203_v38, %v6420_v3 }
 0x3d8   : > { %v2689_v2 = vmax.f32 %v2657_v17, 0.0  ;;  %v6454_v29 = vmul.f32 0.0078125, %v2423_v50  ;;  %3124 = vmatprep.mubr.bf16.mxu0 %v7060_v1  ;;  %4587 = vrsqrt.f32 %v2752_v33  ;;  %v2594_v45 = vmul.f32 0.0078125, %v2517_v11 }
 0x3d9   : > { %v2851_v25 = vmul.f32 %v6342_v41, %v2813_v42 }
 0x3da   : > { %v2753_v26 = vadd.f32 1e-05, %v2689_v2  ;;  %v4584_v28 = vpop.eup %4583  ;;  %v2658_v49 = vsub.f32 %v2594_v45, %v2626_v56  ;;  %v2627_v60 = vmul.f32 %v6454_v29, %v6454_v29 }
 0x3db   : > { %v2519_v12 = vpop.xlane.xlu1 %2518  ;;  %v2889_v54 = vadd.f32 %v6355_v55, %v2851_v25  ;;  %v2425_v32 = vpop.xlane.xlu0 %2424  ;;  %v2814_v4 = vmul.f32 %v4584_v28, %v2718_v7  ;;  %v2720_v28 = vsub.f32 %v6212_v51, %v6434_v21 }
 0x3dc   : > { %4589 = vrsqrt.f32 %v2753_v26  ;;  %v2595_v37 = vmul.f32 0.0078125, %v2519_v12  ;;  %v2690_v62 = vmax.f32 %v2658_v49, 0.0  ;;  %v6468_v39 = vmul.f32 0.0078125, %v2425_v32 }
 0x3dd   : > { %v2914_v17 = vpack.c.bf16 %v2889_v54, %v2888_v35  ;;  %v2852_v11 = vmul.f32 %v6342_v41, %v2814_v4 }
 0x3de   : > { %v4586_v33 = vpop.eup %4585  ;;  %v2659_v50 = vsub.f32 %v2595_v37, %v2627_v60  ;;  %v2754_v42 = vadd.f32 1e-05, %v2690_v62  ;;  %v2628_v3 = vmul.f32 %v6468_v39, %v6468_v39 }
 0x3df   : > { %3125 = vmatmul.mubr.bf16.gmra.mrb[72].mxu0 %v2914_v17  ;;  %v2427_v27 = vpop.xlane.xlu1 %2426  ;;  %v2815_v2 = vmul.f32 %v4586_v33, %v2719_v8  ;;  %v2521_v45 = vpop.xlane.xlu0 %2520  ;;  %v2890_v60 = vadd.f32 %v6355_v55, %v2852_v11  ;;  %v2721_v17 = vsub.f32 %v6217_v15, %v6437_v53 }
 0x3e0   : > { %v2691_v56 = vmax.f32 %v2659_v50, 0.0  ;;  %v6471_v25 = vmul.f32 0.0078125, %v2427_v27  ;;  %3134 = vmatprep.mubr.bf16.mxu0 %v7060_v1  ;;  %4591 = vrsqrt.f32 %v2754_v42  ;;  %v2596_v7 = vmul.f32 0.0078125, %v2521_v45 }
 0x3e1   : > { %v2853_v26 = vmul.f32 %v6342_v41, %v2815_v2 }
 0x3e2   : > { %v2755_v49 = vadd.f32 1e-05, %v2691_v56  ;;  %v4588_v12 = vpop.eup %4587  ;;  %v2660_v35 = vsub.f32 %v2596_v7, %v2628_v3  ;;  %v2629_v37 = vmul.f32 %v6471_v25, %v6471_v25 }
 0x3e3   : > { %v2523_v54 = vpop.xlane.xlu1 %2522  ;;  %v2891_v32 = vadd.f32 %v6355_v55, %v2853_v26  ;;  %v2429_v4 = vpop.xlane.xlu0 %2428  ;;  %v2816_v62 = vmul.f32 %v4588_v12, %v2720_v28  ;;  %v2722_v12 = vsub.f32 %v6227_v6, %v6451_v34 }
 0x3e4   : > { %4593 = vrsqrt.f32 %v2755_v49  ;;  %v2597_v8 = vmul.f32 0.0078125, %v2523_v54  ;;  %v2692_v33 = vmax.f32 %v2660_v35, 0.0  ;;  %v6485_v21 = vmul.f32 0.0078125, %v2429_v4 }
 0x3e5   : > { %v2915_v50 = vpack.c.bf16 %v2891_v32, %v2890_v60  ;;  %v2854_v45 = vmul.f32 %v6342_v41, %v2816_v62 }
 0x3e6   : > { %v4590_v42 = vpop.eup %4589  ;;  %v2661_v27 = vsub.f32 %v2597_v8, %v2629_v37  ;;  %v2756_v2 = vadd.f32 1e-05, %v2692_v33  ;;  %v2630_v53 = vmul.f32 %v6485_v21, %v6485_v21 }
 0x3e7   : > { %3135 = vmatmul.mubr.bf16.gmra.mrb[76].mxu0 %v2915_v50  ;;  %v2431_v11 = vpop.xlane.xlu1 %2430  ;;  %v2817_v56 = vmul.f32 %v4590_v42, %v2721_v17  ;;  %v2525_v7 = vpop.xlane.xlu0 %2524  ;;  %v2892_v37 = vadd.f32 %v6355_v55, %v2854_v45  ;;  %v2723_v50 = vsub.f32 %v6231_v10, %v6454_v29 }
 0x3e8   : > { %v2693_v3 = vmax.f32 %v2661_v27, 0.0  ;;  %v6488_v26 = vmul.f32 0.0078125, %v2431_v11  ;;  %3144 = vmatprep.mubr.bf16.mxu0 %v7060_v1  ;;  %4595 = vrsqrt.f32 %v2756_v2  ;;  %v2598_v28 = vmul.f32 0.0078125, %v2525_v7 }
 0x3e9   : > { %v2855_v49 = vmul.f32 %v6342_v41, %v2817_v56 }
 0x3ea   : > { %v2757_v35 = vadd.f32 1e-05, %v2693_v3  ;;  %v4592_v54 = vpop.eup %4591  ;;  %v2662_v60 = vsub.f32 %v2598_v28, %v2630_v53  ;;  %v2631_v8 = vmul.f32 %v6488_v26, %v6488_v26 }
 0x3eb   : > { %v2527_v32 = vpop.xlane.xlu1 %2526  ;;  %v2893_v4 = vadd.f32 %v6355_v55, %v2855_v49  ;;  %v2433_v62 = vpop.xlane.xlu0 %2432  ;;  %v2818_v33 = vmul.f32 %v4592_v54, %v2722_v12  ;;  %v2724_v54 = vsub.f32 %v6240_v46, %v6468_v39 }
 0x3ec   : > { %4597 = vrsqrt.f32 %v2757_v35  ;;  %v2599_v17 = vmul.f32 0.0078125, %v2527_v32  ;;  %v2694_v42 = vmax.f32 %v2662_v60, 0.0  ;;  %v6502_v34 = vmul.f32 0.0078125, %v2433_v62 }
 0x3ed   : > { %v2916_v27 = vpack.c.bf16 %v2893_v4, %v2892_v37  ;;  %v2856_v7 = vmul.f32 %v6342_v41, %v2818_v33 }
 0x3ee   : > { %v4594_v2 = vpop.eup %4593  ;;  %v2663_v11 = vsub.f32 %v2599_v17, %v2631_v8  ;;  %v2758_v56 = vadd.f32 1e-05, %v2694_v42  ;;  %v2632_v29 = vmul.f32 %v6502_v34, %v6502_v34 }
 0x3ef   : > { %3145 = vmatmul.mubr.bf16.gmra.mrb[80].mxu0 %v2916_v27  ;;  %v2435_v45 = vpop.xlane.xlu1 %2434  ;;  %v2819_v3 = vmul.f32 %v4594_v2, %v2723_v50  ;;  %v2529_v28 = vpop.xlane.xlu0 %2528  ;;  %v2894_v8 = vadd.f32 %v6355_v55, %v2856_v7  ;;  %v2725_v27 = vsub.f32 %v6245_v40, %v6471_v25 }
 0x3f0   : > { %v2695_v53 = vmax.f32 %v2663_v11, 0.0  ;;  %v6505_v49 = vmul.f32 0.0078125, %v2435_v45  ;;  %3154 = vmatprep.mubr.bf16.mxu0 %v7060_v1  ;;  %4599 = vrsqrt.f32 %v2758_v56  ;;  %v2600_v12 = vmul.f32 0.0078125, %v2529_v28 }
 0x3f1   : > { %v2857_v35 = vmul.f32 %v6342_v41, %v2819_v3 }
 0x3f2   : > { %v2759_v60 = vadd.f32 1e-05, %v2695_v53  ;;  %v4596_v32 = vpop.eup %4595  ;;  %v2664_v37 = vsub.f32 %v2600_v12, %v2632_v29  ;;  %v2633_v17 = vmul.f32 %v6505_v49, %v6505_v49 }
 0x3f3   : > { %v2531_v4 = vpop.xlane.xlu1 %2530  ;;  %v2895_v62 = vadd.f32 %v6355_v55, %v2857_v35  ;;  %v2437_v33 = vpop.xlane.xlu0 %2436  ;;  %v2820_v42 = vmul.f32 %v4596_v32, %v2724_v54  ;;  %v2726_v32 = vsub.f32 %v6255_v48, %v6485_v21 }
 0x3f4   : > { %4601 = vrsqrt.f32 %v2759_v60  ;;  %v2601_v50 = vmul.f32 0.0078125, %v2531_v4  ;;  %v2696_v2 = vmax.f32 %v2664_v37, 0.0  ;;  %v6519_v39 = vmul.f32 0.0078125, %v2437_v33 }
 0x3f5   : > { %v2917_v11 = vpack.c.bf16 %v2895_v62, %v2894_v8  ;;  %v2858_v28 = vmul.f32 %v6342_v41, %v2820_v42 }
 0x3f6   : > { %v4598_v56 = vpop.eup %4597  ;;  %v2665_v45 = vsub.f32 %v2601_v50, %v2633_v17  ;;  %v2760_v3 = vadd.f32 1e-05, %v2696_v2  ;;  %v2634_v25 = vmul.f32 %v6519_v39, %v6519_v39 }
 0x3f7   : > { %3155 = vmatmul.mubr.bf16.gmra.mrb[84].mxu0 %v2917_v11  ;;  %v2439_v7 = vpop.xlane.xlu1 %2438  ;;  %v2821_v53 = vmul.f32 %v4598_v56, %v2725_v27  ;;  %v2533_v12 = vpop.xlane.xlu0 %2532  ;;  %v2896_v17 = vadd.f32 %v6355_v55, %v2858_v28  ;;  %v2727_v11 = vsub.f32 %v6259_v18, %v6488_v26 }
 0x3f8   : > { %v2697_v29 = vmax.f32 %v2665_v45, 0.0  ;;  %v6522_v35 = vmul.f32 0.0078125, %v2439_v7  ;;  %3164 = vmatprep.mubr.bf16.mxu0 %v7060_v1  ;;  %4603 = vrsqrt.f32 %v2760_v3  ;;  %v2602_v54 = vmul.f32 0.0078125, %v2533_v12 }
 0x3f9   : > { %v2859_v60 = vmul.f32 %v6342_v41, %v2821_v53 }
 0x3fa   : > { %v2761_v37 = vadd.f32 1e-05, %v2697_v29  ;;  %v4600_v4 = vpop.eup %4599  ;;  %v2666_v8 = vsub.f32 %v2602_v54, %v2634_v25  ;;  %v2635_v50 = vmul.f32 %v6522_v35, %v6522_v35 }
 0x3fb   : > { %v2535_v62 = vpop.xlane.xlu1 %2534  ;;  %v2897_v33 = vadd.f32 %v6355_v55, %v2859_v60  ;;  %v2441_v42 = vpop.xlane.xlu0 %2440  ;;  %v2822_v2 = vmul.f32 %v4600_v4, %v2726_v32  ;;  %v2728_v4 = vsub.f32 %v6266_v14, %v6502_v34  ;;  %v2729_v34 = vsub.f32 %v6273_v19, %v6505_v49  ;;  %v4354_v49 = vld [vmem:[#allocation9 + $0x18] sm:$0xff]  }
 0x3fc   : > { %4605 = vrsqrt.f32 %v2761_v37  ;;  %v2603_v27 = vmul.f32 0.0078125, %v2535_v62  ;;  %v2698_v56 = vmax.f32 %v2666_v8, 0.0  ;;  %v6536_v21 = vmul.f32 0.0078125, %v2441_v42 }
 0x3fd   : > { %v2918_v45 = vpack.c.bf16 %v2897_v33, %v2896_v17  ;;  %v2860_v12 = vmul.f32 %v6342_v41, %v2822_v2 }
 0x3fe   : > { %v4602_v3 = vpop.eup %4601  ;;  %v2667_v7 = vsub.f32 %v2603_v27, %v2635_v50  ;;  %v2762_v53 = vadd.f32 1e-05, %v2698_v56  ;;  %v2636_v26 = vmul.f32 %v6536_v21, %v6536_v21  ;;  %v4351_v27 = vld [vmem:[#allocation9 + $0x50] sm:$0xff]  }
 0x3ff   : > { %3165 = vmatmul.mubr.bf16.gmra.mrb[88].mxu0 %v2918_v45  ;;  %v2443_v28 = vpop.xlane.xlu1 %2442  ;;  %v2823_v29 = vmul.f32 %v4602_v3, %v2727_v11  ;;  %v2537_v54 = vpop.xlane.xlu0 %2536  ;;  %v2898_v50 = vadd.f32 %v6355_v55, %v2860_v12  ;;  %v4352_v3 = vld [vmem:[#allocation9 + $0x10] sm:$0xff]   ;;  %4136 = vmatprep.subr.bf16.mxu1 %v4351_v27 }
 0x400   : > { %v2699_v25 = vmax.f32 %v2667_v7, 0.0  ;;  %v6539_v60 = vmul.f32 0.0078125, %v2443_v28  ;;  %3174 = vmatprep.mubr.bf16.mxu0 %v7060_v1  ;;  %4607 = vrsqrt.f32 %v2762_v53  ;;  %v2604_v32 = vmul.f32 0.0078125, %v2537_v54  ;;  %4137 = vmatpush3.bf16.msra.mxu1 %v4352_v3 }
 0x401   : > { %v2861_v37 = vmul.f32 %v6342_v41, %v2823_v29 }
 0x402   : > { %v2763_v8 = vadd.f32 1e-05, %v2699_v25  ;;  %v4604_v62 = vpop.eup %4603  ;;  %v2668_v17 = vsub.f32 %v2604_v32, %v2636_v26  ;;  %v2637_v2 = vmul.f32 %v6539_v60, %v6539_v60 }
 0x403   : > { %v2539_v33 = vpop.xlane.xlu1 %2538  ;;  %v2899_v42 = vadd.f32 %v6355_v55, %v2861_v37  ;;  %v2445_v11 = vpop.xlane.xlu0 %2444  ;;  %v2824_v45 = vmul.f32 %v4604_v62, %v2728_v4  ;;  %v4353_v37 = vld [vmem:[#allocation9 + $0x58] sm:$0xff]  }
 0x404   : > { %4609 = vrsqrt.f32 %v2763_v8  ;;  %v2605_v56 = vmul.f32 0.0078125, %v2539_v33  ;;  %v2700_v7 = vmax.f32 %v2668_v17, 0.0  ;;  %v6553_v53 = vmul.f32 0.0078125, %v2445_v11  ;;  %4138 = vmatprep.subr.bf16.mxu1 %v4353_v37 }
 0x405   : > { %v2919_v28 = vpack.c.bf16 %v2899_v42, %v2898_v50  ;;  %v2862_v32 = vmul.f32 %v6342_v41, %v2824_v45  ;;  %v2730_v42 = vsub.f32 %v6283_v47, %v6519_v39  ;;  %4139 = vmatpush3.bf16.msra.mxu1 %v4354_v49  ;;  %v2731_v39 = vsub.f32 %v6288_v23, %v6522_v35  ;;  %v4357_v49 = vld [vmem:[#allocation9 + $0x68] sm:$0xff]  }
 0x406   : > { %v4606_v29 = vpop.eup %4605  ;;  %v2669_v12 = vsub.f32 %v2605_v56, %v2637_v2  ;;  %v2764_v25 = vadd.f32 1e-05, %v2700_v7  ;;  %v2638_v17 = vmul.f32 %v6553_v53, %v6553_v53  ;;  %v2732_v35 = vsub.f32 %v6294_v20, %v6536_v21 }
 0x407   : > { %3175 = vmatmul.mubr.bf16.gmra.mrb[92].mxu0 %v2919_v28  ;;  %v2447_v54 = vpop.xlane.xlu1 %2446  ;;  %v2825_v26 = vmul.f32 %v4606_v29, %v2729_v34  ;;  %v2541_v8 = vpop.xlane.xlu0 %2540  ;;  %v2900_v45 = vadd.f32 %v6355_v55, %v2862_v32  ;;  %v4355_v34 = vld [vmem:[#allocation9 + $0x60] sm:$0xff]  }
 0x408   : > { %v2701_v4 = vmax.f32 %v2669_v12, 0.0  ;;  %v6556_v62 = vmul.f32 0.0078125, %v2447_v54  ;;  %3184 = vmatprep.mubr.bf16.mxu0 %v7060_v1  ;;  %4611 = vrsqrt.f32 %v2764_v25  ;;  %v2606_v33 = vmul.f32 0.0078125, %v2541_v8  ;;  %v4356_v12 = vld [vmem:[#allocation9 + $0x20] sm:$0xff]   ;;  %4140 = vmatprep.subr.bf16.mxu1 %v4355_v34 }
 0x409   : > { %v2863_v50 = vmul.f32 %v6342_v41, %v2825_v26  ;;  %4141 = vmatpush3.bf16.msra.mxu1 %v4356_v12  ;;  %v2733_v34 = vsub.f32 %v6301_v13, %v6539_v60  ;;  %v4361_v12 = vld [vmem:[#allocation9 + $0x78] sm:$0xff]  }
 0x40a   : > { %v2765_v27 = vadd.f32 1e-05, %v2701_v4  ;;  %v4608_v2 = vpop.eup %4607  ;;  %v2670_v11 = vsub.f32 %v2606_v33, %v2638_v17  ;;  %v2639_v7 = vmul.f32 %v6556_v62, %v6556_v62  ;;  %v4358_v33 = vld [vmem:[#allocation9 + $0x28] sm:$0xff]   ;;  %4142 = vmatprep.subr.bf16.mxu1 %v4357_v49 }
 0x40b   : > { %v2543_v56 = vpop.xlane.xlu1 %2542  ;;  %v2901_v3 = vadd.f32 %v6355_v55, %v2863_v50  ;;  %v2826_v29 = vmul.f32 %v4608_v2, %v2730_v42 }
 0x40c   : > { %4613 = vrsqrt.f32 %v2765_v27  ;;  %v2607_v28 = vmul.f32 0.0078125, %v2543_v56  ;;  %v2702_v25 = vmax.f32 %v2670_v11, 0.0  ;;  %v4359_v56 = vld [vmem:[#allocation9 + $0x70] sm:$0xff]  }
 0x40d   : > { %v2920_v54 = vpack.c.bf16 %v2901_v3, %v2900_v45  ;;  %v2864_v8 = vmul.f32 %v6342_v41, %v2826_v29  ;;  %4143 = vmatpush3.bf16.msra.mxu1 %v4358_v33  ;;  %v4360_v3 = vld [vmem:[#allocation9 + $0x30] sm:$0xff]  }
 0x40e   : > { %v4610_v26 = vpop.eup %4609  ;;  %v2671_v37 = vsub.f32 %v2607_v28, %v2639_v7  ;;  %v2766_v32 = vadd.f32 1e-05, %v2702_v25  ;;  %4144 = vmatprep.subr.bf16.mxu1 %v4359_v56 }
 0x40f   : > { %3185 = vmatmul.mubr.bf16.gmra.mrb[96].mxu0 %v2920_v54  ;;  %v2827_v4 = vmul.f32 %v4610_v26, %v2731_v39  ;;  %v2902_v2 = vadd.f32 %v6355_v55, %v2864_v8  ;;  %v4362_v39 = vld [vmem:[#allocation9 + $0x38] sm:$0xff]   ;;  %v2734_v54 = vsub.f32 %v6311_v36, %v6553_v53 }
 0x410   : > { %v2703_v17 = vmax.f32 %v2671_v37, 0.0  ;;  %3194 = vmatprep.mubr.bf16.mxu0 %v7060_v1  ;;  %4615 = vrsqrt.f32 %v2766_v32 }
 0x411   : > { %v2865_v50 = vmul.f32 %v6342_v41, %v2827_v4  ;;  %4145 = vmatpush3.bf16.msra.mxu1 %v4360_v3  ;;  %v2735_v4 = vsub.f32 %v6315_v5, %v6556_v62  ;;  %v2940_v62 = vld [vmem:[%s7070_s23] sm:$0x3]  ;;  %s4917_s23 = smov [#allocation10]  }
 0x412   : > { %v2767_v42 = vadd.f32 1e-05, %v2703_v17  ;;  %v4612_v27 = vpop.eup %4611  ;;  %4146 = vmatprep.subr.bf16.mxu1 %v4361_v12  ;;  %s4841_s10 = sshll.u32 %s4917_s23, 4  ;;  %s4842_s10 = int_to_ptr.vmem [resolvable:$false] %s4841_s10 }
 0x413   : > { %v2903_v11 = vadd.f32 %v6355_v55, %v2865_v50  ;;  %v2828_v45 = vmul.f32 %v4612_v27, %v2732_v35  ;;  %v2942_v27 = vlaneseq  ;;  %s4843_s18 = scalar_lea.vmem %s4842_s10, 8192  ;;  %p4844_p11 = scmp.lt.s32.totalorder %s6957_s16, %s4842_s10 }
 0x414   : > { %4617 = vrsqrt.f32 %v2767_v42  ;;  %p4845_p13 = scmp.lt.s32.totalorder %s4843_s18, %s4837_s12 }
 0x415   : > { %v2921_v7 = vpack.c.bf16 %v2903_v11, %v2902_v2  ;;  %v2866_v29 = vmul.f32 %v6342_v41, %v2828_v45  ;;  %4147 = vmatpush3.bf16.msra.mxu1 %v4362_v39  ;;  %v2943_v2 = vshrl.u32 %v2942_v27, 7 }
 0x416   : > { %v4614_v28 = vpop.eup %4613  ;;  %p4846_p3 = por %p4845_p13, %p4844_p11 }
 0x417   : > { %3195 = vmatmul.mubr.bf16.gmra.mrb[100].mxu0 %v2921_v7  ;;  %v2829_v21 = vmul.f32 %v4614_v28, %v2733_v34  ;;  %v2904_v26 = vadd.f32 %v6355_v55, %v2866_v29  ;;  %v2944_v11 = vsub.s32 0, %v2943_v2  ;;  %v2948_v56 = vsub.s32 1, %v2943_v2 }
 0x418   : > { %3204 = vmatprep.mubr.bf16.mxu0 %v7060_v1  ;;  %p4847_p7 = pnand %p4846_p3, %p4840_p6 }
 0x419   : > { %v2867_v25 = vmul.f32 %v6342_v41, %v2829_v21  ;;  %v6596_v45 = vrot.slane %v2940_v62, %v2944_v11  ;;  %v6598_v3 = vrot.slane %v2940_v62, %v2948_v56 }
 0x41a   : > { %v4616_v60 = vpop.eup %4615 }
 0x41b   : > { %v2905_v37 = vadd.f32 %v6355_v55, %v2867_v25  ;;  %v2830_v32 = vmul.f32 %v4616_v60, %v2734_v54 }
 0x41d   : > { %v2922_v8 = vpack.c.bf16 %v2905_v37, %v2904_v26  ;;  %v2868_v33 = vmul.f32 %v6342_v41, %v2830_v32 }
 0x41e   : > { %v4618_v49 = vpop.eup %4617 }
 0x41f   : > { %3205 = vmatmul.mubr.bf16.gmra.mrb[104].mxu0 %v2922_v8  ;;  %v2831_v17 = vmul.f32 %v4618_v49, %v2735_v4  ;;  %v2906_v50 = vadd.f32 %v6355_v55, %v2868_v33 }
 0x420   : > { %3214 = vmatprep.mubr.bf16.mxu0 %v7060_v1 }
 0x421   : > { %v2869_v53 = vmul.f32 %v6342_v41, %v2831_v17 }
 0x423   : > { %v2907_v35 = vadd.f32 %v6355_v55, %v2869_v53 }
 0x425   : > { %v2923_v42 = vpack.c.bf16 %v2907_v35, %v2906_v50 }
 0x427   : > { %3215 = vmatmul.mubr.bf16.gmra.mrb[108].mxu0 %v2923_v42 }
 0x482   : > { %v3066_v1 = vpop.f32.mrb[48].mxu0 }
 0x483   : > { %v3067_v41 = vadd.f32 %v3066_v1, %v6596_v45  ;;  %v3068_v34 = vpop.f32.mrb[49].mxu0 }
 0x484   : > { %v3069_v55 = vadd.f32 %v3068_v34, %v6598_v3  ;;  %v3070_v7 = vpop.f32.mrb[50].mxu0 }
 0x485   : > { %v3289_v28 = vmul.f32 0.70710677, %v3067_v41  ;;  %v3071_v21 = vadd.f32 %v3070_v7, %v6596_v45  ;;  %v3072_v29 = vpop.f32.mrb[51].mxu0 }
 0x486   : > { %v3290_v12 = vmul.f32 0.70710677, %v3069_v55  ;;  %v3073_v39 = vadd.f32 %v3072_v29, %v6598_v3 }
 0x487   : > { %4619 = verf.f32 %v3289_v28  ;;  %v3291_v25 = vmul.f32 0.70710677, %v3071_v21  ;;  %v3225_v28 = vmul.f32 0.5, %v3067_v41  ;;  %v3227_v29 = vmul.f32 0.5, %v3071_v21 }
 0x488   : > { %4621 = verf.f32 %v3290_v12  ;;  %v3292_v54 = vmul.f32 0.70710677, %v3073_v39 }
 0x489   : > { %4623 = verf.f32 %v3291_v25 }
 0x48a   : > { %4625 = verf.f32 %v3292_v54  ;;  %v3076_v60 = vpop.f32.mrb[52].mxu0 }
 0x48b   : > { %v3077_v26 = vadd.f32 %v3076_v60, %v6596_v45  ;;  %v3078_v37 = vpop.f32.mrb[53].mxu0  ;;  %v3226_v60 = vmul.f32 0.5, %v3069_v55 }
 0x48c   : > { %v3079_v32 = vadd.f32 %v3078_v37, %v6598_v3  ;;  %v3080_v4 = vpop.f32.mrb[54].mxu0  ;;  %v3228_v37 = vmul.f32 0.5, %v3073_v39 }
 0x48d   : > { %v3293_v8 = vmul.f32 0.70710677, %v3077_v26  ;;  %v3081_v49 = vadd.f32 %v3080_v4, %v6596_v45  ;;  %v3082_v17 = vpop.f32.mrb[55].mxu0 }
 0x48e   : > { %v3294_v33 = vmul.f32 0.70710677, %v3079_v32  ;;  %v3083_v53 = vadd.f32 %v3082_v17, %v6598_v3 }
 0x48f   : > { %4627 = verf.f32 %v3293_v8  ;;  %v3295_v50 = vmul.f32 0.70710677, %v3081_v49 }
 0x490   : > { %4629 = verf.f32 %v3294_v33  ;;  %v3296_v35 = vmul.f32 0.70710677, %v3083_v53 }
 0x491   : > { %v4620_v42 = vpop.eup %4619  ;;  %4631 = verf.f32 %v3295_v50 }
 0x492   : > { %v4622_v27 = vpop.eup %4621  ;;  %v3417_v2 = vadd.f32 1.0, %v4620_v42  ;;  %4633 = verf.f32 %v3296_v35  ;;  %v3086_v11 = vpop.f32.mrb[56].mxu0 }
 0x493   : > { %v4624_v62 = vpop.eup %4623  ;;  %v3418_v56 = vadd.f32 1.0, %v4622_v27  ;;  %v6609_v1 = vadd.f32 %v3086_v11, %v6596_v45  ;;  %v3088_v34 = vpop.f32.mrb[57].mxu0 }
 0x494   : > { %v4626_v7 = vpop.eup %4625  ;;  %v3419_v12 = vadd.f32 1.0, %v4624_v62  ;;  %v6612_v25 = vadd.f32 %v3088_v34, %v6598_v3  ;;  %v3090_v54 = vpop.f32.mrb[58].mxu0  ;;  %v3481_v33 = vmul.f32 %v3417_v2, %v3225_v28 }
 0x495   : > { %v3420_v4 = vadd.f32 1.0, %v4626_v7  ;;  %v3297_v8 = vmul.f32 0.70710677, %v6609_v1  ;;  %v3092_v17 = vpop.f32.mrb[59].mxu0  ;;  %v3091_v42 = vadd.f32 %v3090_v54, %v6596_v45  ;;  %v3482_v27 = vmul.f32 %v3418_v56, %v3226_v60 }
 0x496   : > { %v3483_v50 = vmul.f32 %v3419_v12, %v3227_v29  ;;  %v3298_v35 = vmul.f32 0.70710677, %v6612_v25  ;;  %v3093_v21 = vadd.f32 %v3092_v17, %v6598_v3  ;;  %v3229_v60 = vmul.f32 0.5, %v3077_v26 }
 0x497   : > { %v3484_v41 = vmul.f32 %v3420_v4, %v3228_v37  ;;  %4635 = verf.f32 %v3297_v8  ;;  %v3299_v62 = vmul.f32 0.70710677, %v3091_v42  ;;  %v3231_v37 = vmul.f32 0.5, %v3081_v49 }
 0x498   : > { %v3545_v11 = vpack.c.bf16 %v3483_v50, %v3481_v33  ;;  %4637 = verf.f32 %v3298_v35  ;;  %v3300_v39 = vmul.f32 0.70710677, %v3093_v21  ;;  %v3230_v33 = vmul.f32 0.5, %v3079_v32 }
 0x499   : > { %v4628_v55 = vpop.eup %4627  ;;  %v3546_v34 = vpack.c.bf16 %v3484_v41, %v3482_v27  ;;  %4639 = verf.f32 %v3299_v62  ;;  %v3232_v50 = vmul.f32 0.5, %v3083_v53 }
 0x49a   : > { %v4630_v7 = vpop.eup %4629  ;;  %v3421_v5 = vadd.f32 1.0, %v4628_v55  ;;  %v3096_v2 = vpop.f32.mrb[60].mxu0  ;;  %4641 = verf.f32 %v3300_v39 }
 0x49b   : > { %v4632_v28 = vpop.eup %4631  ;;  %v3422_v29 = vadd.f32 1.0, %v4630_v7  ;;  %v6619_v12 = vadd.f32 %v3096_v2, %v6596_v45  ;;  %v3098_v56 = vpop.f32.mrb[61].mxu0  ;;  %3744 = vmatprep.mubr.bf16.mxu1 %v3546_v34 }
 0x49c   : > { %v4634_v54 = vpop.eup %4633  ;;  %v3423_v4 = vadd.f32 1.0, %v4632_v28  ;;  %v6622_v8 = vadd.f32 %v3098_v56, %v6598_v3  ;;  %v3100_v17 = vpop.f32.mrb[62].mxu0  ;;  %3745 = vmatmul.mubr.bf16.vlgmr.msra.gmra.mrb[48].mxu1 %v3545_v11  ;;  %v3485_v62 = vmul.f32 %v3421_v5, %v3229_v60 }
 0x49d   : > { %v3424_v35 = vadd.f32 1.0, %v4634_v54  ;;  %v3301_v27 = vmul.f32 0.70710677, %v6619_v12  ;;  %v3102_v41 = vpop.f32.mrb[63].mxu0  ;;  %v3101_v34 = vadd.f32 %v3100_v17, %v6596_v45  ;;  %v3486_v26 = vmul.f32 %v3422_v29, %v3230_v33 }
 0x49e   : > { %v3487_v55 = vmul.f32 %v3423_v4, %v3231_v37  ;;  %v3302_v39 = vmul.f32 0.70710677, %v6622_v8  ;;  %v3103_v7 = vadd.f32 %v3102_v41, %v6598_v3  ;;  %v3233_v4 = vmul.f32 0.5, %v6609_v1 }
 0x49f   : > { %v3488_v49 = vmul.f32 %v3424_v35, %v3232_v50  ;;  %4643 = verf.f32 %v3301_v27  ;;  %v3303_v2 = vmul.f32 0.70710677, %v3101_v34  ;;  %v3234_v27 = vmul.f32 0.5, %v6612_v25 }
 0x4a0   : > { %4645 = verf.f32 %v3302_v39  ;;  %v3547_v11 = vpack.c.bf16 %v3487_v55, %v3485_v62  ;;  %v3304_v53 = vmul.f32 0.70710677, %v3103_v7  ;;  %v3235_v41 = vmul.f32 0.5, %v3091_v42 }
 0x4a1   : > { %v4636_v32 = vpop.eup %4635  ;;  %v3548_v28 = vpack.c.bf16 %v3488_v49, %v3486_v26  ;;  %4647 = verf.f32 %v3303_v2  ;;  %v3236_v26 = vmul.f32 0.5, %v3093_v21 }
 0x4a2   : > { %v4638_v56 = vpop.eup %4637  ;;  %v3106_v54 = vpop.f32.mrb[64].mxu0  ;;  %v3425_v5 = vadd.f32 1.0, %v4636_v32  ;;  %4649 = verf.f32 %v3304_v53 }
 0x4a3   : > { %v6629_v60 = vadd.f32 %v3106_v54, %v6596_v45  ;;  %v3108_v37 = vpop.f32.mrb[65].mxu0  ;;  %3752 = vmatprep.mubr.bf16.mxu1 %v3548_v28  ;;  %v4640_v29 = vpop.eup %4639  ;;  %v3426_v17 = vadd.f32 1.0, %v4638_v56 }
 0x4a4   : > { %v6633_v33 = vadd.f32 %v3108_v37, %v6598_v3  ;;  %v3110_v50 = vpop.f32.mrb[66].mxu0  ;;  %3753 = vmatmul.mubr.bf16.gmra.mrb[52].mxu1 %v3547_v11  ;;  %v4642_v35 = vpop.eup %4641  ;;  %v3427_v62 = vadd.f32 1.0, %v4640_v29  ;;  %v3489_v32 = vmul.f32 %v3425_v5, %v3233_v4 }
 0x4a5   : > { %v3305_v55 = vmul.f32 0.70710677, %v6629_v60  ;;  %v3112_v39 = vpop.f32.mrb[67].mxu0  ;;  %v3428_v49 = vadd.f32 1.0, %v4642_v35  ;;  %v6639_v1 = vadd.f32 %v3110_v50, %v6596_v45  ;;  %v3490_v28 = vmul.f32 %v3426_v17, %v3234_v27 }
 0x4a6   : > { %v3306_v2 = vmul.f32 0.70710677, %v6633_v33  ;;  %v3491_v53 = vmul.f32 %v3427_v62, %v3235_v41  ;;  %v6642_v11 = vadd.f32 %v3112_v39, %v6598_v3  ;;  %v3237_v17 = vmul.f32 0.5, %v6619_v12 }
 0x4a7   : > { %4651 = verf.f32 %v3305_v55  ;;  %v3492_v25 = vmul.f32 %v3428_v49, %v3236_v26  ;;  %v3307_v42 = vmul.f32 0.70710677, %v6639_v1  ;;  %v3238_v26 = vmul.f32 0.5, %v6622_v8 }
 0x4a8   : > { %4653 = verf.f32 %v3306_v2  ;;  %v3308_v21 = vmul.f32 0.70710677, %v6642_v11  ;;  %v3549_v54 = vpack.c.bf16 %v3491_v53, %v3489_v32  ;;  %v3239_v49 = vmul.f32 0.5, %v3101_v34 }
 0x4a9   : > { %v4644_v56 = vpop.eup %4643  ;;  %4655 = verf.f32 %v3307_v42  ;;  %v3550_v50 = vpack.c.bf16 %v3492_v25, %v3490_v28  ;;  %v3240_v28 = vmul.f32 0.5, %v3103_v7 }
 0x4aa   : > { %v4646_v37 = vpop.eup %4645  ;;  %v3116_v29 = vpop.f32.mrb[68].mxu0  ;;  %v3429_v35 = vadd.f32 1.0, %v4644_v56  ;;  %4657 = verf.f32 %v3308_v21 }
 0x4ab   : > { %v6647_v5 = vadd.f32 %v3116_v29, %v6596_v45  ;;  %v3118_v4 = vpop.f32.mrb[69].mxu0  ;;  %v4648_v41 = vpop.eup %4647  ;;  %v3430_v27 = vadd.f32 1.0, %v4646_v37  ;;  %3760 = vmatprep.mubr.bf16.mxu1 %v3550_v50 }
 0x4ac   : > { %v6651_v62 = vadd.f32 %v3118_v4, %v6598_v3  ;;  %v3120_v55 = vpop.f32.mrb[70].mxu0  ;;  %v4650_v39 = vpop.eup %4649  ;;  %v3431_v2 = vadd.f32 1.0, %v4648_v41  ;;  %3761 = vmatmul.mubr.bf16.gmra.mrb[56].mxu1 %v3549_v54  ;;  %v3493_v56 = vmul.f32 %v3429_v35, %v3237_v17 }
 0x4ad   : > { %v3309_v32 = vmul.f32 0.70710677, %v6647_v5  ;;  %v3122_v53 = vpop.f32.mrb[71].mxu0  ;;  %v3432_v25 = vadd.f32 1.0, %v4650_v39  ;;  %v6657_v12 = vadd.f32 %v3120_v55, %v6596_v45  ;;  %v3494_v8 = vmul.f32 %v3430_v27, %v3238_v26 }
 0x4ae   : > { %v3310_v42 = vmul.f32 0.70710677, %v6651_v62  ;;  %v3495_v21 = vmul.f32 %v3431_v2, %v3239_v49  ;;  %v6660_v37 = vadd.f32 %v3122_v53, %v6598_v3  ;;  %v3241_v27 = vmul.f32 0.5, %v6629_v60 }
 0x4af   : > { %4659 = verf.f32 %v3309_v32  ;;  %v3496_v34 = vmul.f32 %v3432_v25, %v3240_v28  ;;  %v3311_v29 = vmul.f32 0.70710677, %v6657_v12  ;;  %v3242_v28 = vmul.f32 0.5, %v6633_v33 }
 0x4b0   : > { %4661 = verf.f32 %v3310_v42  ;;  %v3312_v7 = vmul.f32 0.70710677, %v6660_v37  ;;  %v3551_v50 = vpack.c.bf16 %v3495_v21, %v3493_v56  ;;  %v3243_v25 = vmul.f32 0.5, %v6639_v1 }
 0x4b1   : > { %v4652_v54 = vpop.eup %4651  ;;  %4663 = verf.f32 %v3311_v29  ;;  %v3552_v55 = vpack.c.bf16 %v3496_v34, %v3494_v8  ;;  %v3244_v8 = vmul.f32 0.5, %v6642_v11 }
 0x4b2   : > { %v4654_v4 = vpop.eup %4653  ;;  %v3126_v41 = vpop.f32.mrb[72].mxu0  ;;  %v3433_v39 = vadd.f32 1.0, %v4652_v54  ;;  %4665 = verf.f32 %v3312_v7 }
 0x4b3   : > { %v6665_v35 = vadd.f32 %v3126_v41, %v6596_v45  ;;  %v3128_v17 = vpop.f32.mrb[73].mxu0  ;;  %v4656_v49 = vpop.eup %4655  ;;  %v3434_v26 = vadd.f32 1.0, %v4654_v4  ;;  %3768 = vmatprep.mubr.bf16.mxu1 %v3552_v55 }
 0x4b4   : > { %v6669_v2 = vadd.f32 %v3128_v17, %v6598_v3  ;;  %v3130_v32 = vpop.f32.mrb[74].mxu0  ;;  %v4658_v53 = vpop.eup %4657  ;;  %v3435_v42 = vadd.f32 1.0, %v4656_v49  ;;  %3769 = vmatmul.mubr.bf16.gmra.mrb[60].mxu1 %v3551_v50  ;;  %v3497_v54 = vmul.f32 %v3433_v39, %v3241_v27 }
 0x4b5   : > { %v3313_v56 = vmul.f32 0.70710677, %v6665_v35  ;;  %v3132_v21 = vpop.f32.mrb[75].mxu0  ;;  %v3436_v34 = vadd.f32 1.0, %v4658_v53  ;;  %v6677_v29 = vadd.f32 %v3130_v32, %v6596_v45  ;;  %v3498_v1 = vmul.f32 %v3434_v26, %v3242_v28 }
 0x4b6   : > { %v3314_v60 = vmul.f32 0.70710677, %v6669_v2  ;;  %v3499_v7 = vmul.f32 %v3435_v42, %v3243_v25  ;;  %v6680_v33 = vadd.f32 %v3132_v21, %v6598_v3  ;;  %v3245_v26 = vmul.f32 0.5, %v6647_v5 }
 0x4b7   : > { %4667 = verf.f32 %v3313_v56  ;;  %v3500_v4 = vmul.f32 %v3436_v34, %v3244_v8  ;;  %v3315_v50 = vmul.f32 0.70710677, %v6677_v29  ;;  %v3246_v8 = vmul.f32 0.5, %v6651_v62 }
 0x4b8   : > { %4669 = verf.f32 %v3314_v60  ;;  %v3316_v11 = vmul.f32 0.70710677, %v6680_v33  ;;  %v3553_v55 = vpack.c.bf16 %v3499_v7, %v3497_v54  ;;  %v3247_v34 = vmul.f32 0.5, %v6657_v12 }
 0x4b9   : > { %v4660_v41 = vpop.eup %4659  ;;  %4671 = verf.f32 %v3315_v50  ;;  %v3554_v32 = vpack.c.bf16 %v3500_v4, %v3498_v1  ;;  %v3248_v1 = vmul.f32 0.5, %v6660_v37 }
 0x4ba   : > { %v4662_v17 = vpop.eup %4661  ;;  %v3136_v49 = vpop.f32.mrb[76].mxu0  ;;  %v3437_v53 = vadd.f32 1.0, %v4660_v41  ;;  %4673 = verf.f32 %v3316_v11 }
 0x4bb   : > { %v6685_v39 = vadd.f32 %v3136_v49, %v6596_v45  ;;  %v3138_v27 = vpop.f32.mrb[77].mxu0  ;;  %v4664_v25 = vpop.eup %4663  ;;  %v3438_v28 = vadd.f32 1.0, %v4662_v17  ;;  %3776 = vmatprep.mubr.bf16.mxu1 %v3554_v32 }
 0x4bc   : > { %v6689_v42 = vadd.f32 %v3138_v27, %v6598_v3  ;;  %v3140_v56 = vpop.f32.mrb[78].mxu0  ;;  %v4666_v21 = vpop.eup %4665  ;;  %v3439_v60 = vadd.f32 1.0, %v4664_v25  ;;  %3777 = vmatmul.mubr.bf16.gmra.mrb[64].mxu1 %v3553_v55  ;;  %v3501_v41 = vmul.f32 %v3437_v53, %v3245_v26 }
 0x4bd   : > { %v3317_v54 = vmul.f32 0.70710677, %v6685_v39  ;;  %v3142_v7 = vpop.f32.mrb[79].mxu0  ;;  %v3440_v4 = vadd.f32 1.0, %v4666_v21  ;;  %v6697_v50 = vadd.f32 %v3140_v56, %v6596_v45  ;;  %v3502_v12 = vmul.f32 %v3438_v28, %v3246_v8 }
 0x4be   : > { %v3318_v5 = vmul.f32 0.70710677, %v6689_v42  ;;  %v3503_v11 = vmul.f32 %v3439_v60, %v3247_v34  ;;  %v6700_v62 = vadd.f32 %v3142_v7, %v6598_v3  ;;  %v3249_v28 = vmul.f32 0.5, %v6665_v35 }
 0x4bf   : > { %4675 = verf.f32 %v3317_v54  ;;  %v3504_v17 = vmul.f32 %v3440_v4, %v3248_v1  ;;  %v3319_v55 = vmul.f32 0.70710677, %v6697_v50  ;;  %v3250_v1 = vmul.f32 0.5, %v6669_v2 }
 0x4c0   : > { %4677 = verf.f32 %v3318_v5  ;;  %v3320_v37 = vmul.f32 0.70710677, %v6700_v62  ;;  %v3555_v32 = vpack.c.bf16 %v3503_v11, %v3501_v41  ;;  %v3251_v4 = vmul.f32 0.5, %v6677_v29 }
 0x4c1   : > { %v4668_v49 = vpop.eup %4667  ;;  %4679 = verf.f32 %v3319_v55  ;;  %v3556_v56 = vpack.c.bf16 %v3504_v17, %v3502_v12  ;;  %v3252_v12 = vmul.f32 0.5, %v6680_v33 }
 0x4c2   : > { %v4670_v27 = vpop.eup %4669  ;;  %v3146_v25 = vpop.f32.mrb[80].mxu0  ;;  %v3441_v21 = vadd.f32 1.0, %v4668_v49  ;;  %4681 = verf.f32 %v3320_v37 }
 0x4c3   : > { %v6705_v53 = vadd.f32 %v3146_v25, %v6596_v45  ;;  %v3148_v26 = vpop.f32.mrb[81].mxu0  ;;  %v4672_v34 = vpop.eup %4671  ;;  %v3442_v8 = vadd.f32 1.0, %v4670_v27  ;;  %3784 = vmatprep.mubr.bf16.mxu1 %v3556_v56 }
 0x4c4   : > { %v6709_v60 = vadd.f32 %v3148_v26, %v6598_v3  ;;  %v3150_v54 = vpop.f32.mrb[82].mxu0  ;;  %v4674_v7 = vpop.eup %4673  ;;  %v3443_v5 = vadd.f32 1.0, %v4672_v34  ;;  %3785 = vmatmul.mubr.bf16.gmra.mrb[68].mxu1 %v3555_v32  ;;  %v3505_v49 = vmul.f32 %v3441_v21, %v3249_v28 }
 0x4c5   : > { %v3321_v41 = vmul.f32 0.70710677, %v6705_v53  ;;  %v3152_v11 = vpop.f32.mrb[83].mxu0  ;;  %v3444_v17 = vadd.f32 1.0, %v4674_v7  ;;  %v6717_v55 = vadd.f32 %v3150_v54, %v6596_v45  ;;  %v3506_v29 = vmul.f32 %v3442_v8, %v3250_v1 }
 0x4c6   : > { %v3322_v35 = vmul.f32 0.70710677, %v6709_v60  ;;  %v3507_v37 = vmul.f32 %v3443_v5, %v3251_v4  ;;  %v6720_v2 = vadd.f32 %v3152_v11, %v6598_v3  ;;  %v3253_v8 = vmul.f32 0.5, %v6685_v39 }
 0x4c7   : > { %4683 = verf.f32 %v3321_v41  ;;  %v3508_v27 = vmul.f32 %v3444_v17, %v3252_v12  ;;  %v3323_v32 = vmul.f32 0.70710677, %v6717_v55  ;;  %v3254_v12 = vmul.f32 0.5, %v6689_v42 }
 0x4c8   : > { %4685 = verf.f32 %v3322_v35  ;;  %v3324_v33 = vmul.f32 0.70710677, %v6720_v2  ;;  %v3557_v56 = vpack.c.bf16 %v3507_v37, %v3505_v49  ;;  %v3255_v17 = vmul.f32 0.5, %v6697_v50 }
 0x4c9   : > { %v4676_v25 = vpop.eup %4675  ;;  %4687 = verf.f32 %v3323_v32  ;;  %v3558_v54 = vpack.c.bf16 %v3508_v27, %v3506_v29  ;;  %v3256_v29 = vmul.f32 0.5, %v6700_v62 }
 0x4ca   : > { %v4678_v26 = vpop.eup %4677  ;;  %v3156_v34 = vpop.f32.mrb[84].mxu0  ;;  %v3445_v7 = vadd.f32 1.0, %v4676_v25  ;;  %4689 = verf.f32 %v3324_v33 }
 0x4cb   : > { %v6725_v21 = vadd.f32 %v3156_v34, %v6596_v45  ;;  %v3158_v28 = vpop.f32.mrb[85].mxu0  ;;  %v4680_v4 = vpop.eup %4679  ;;  %v3446_v1 = vadd.f32 1.0, %v4678_v26  ;;  %3792 = vmatprep.mubr.bf16.mxu1 %v3558_v54 }
 0x4cc   : > { %v6729_v5 = vadd.f32 %v3158_v28, %v6598_v3  ;;  %v3160_v41 = vpop.f32.mrb[86].mxu0  ;;  %v4682_v11 = vpop.eup %4681  ;;  %v3447_v35 = vadd.f32 1.0, %v4680_v4  ;;  %3793 = vmatmul.mubr.bf16.gmra.mrb[72].mxu1 %v3557_v56  ;;  %v3509_v25 = vmul.f32 %v3445_v7, %v3253_v8 }
 0x4cd   : > { %v3325_v49 = vmul.f32 0.70710677, %v6725_v21  ;;  %v3162_v37 = vpop.f32.mrb[87].mxu0  ;;  %v3448_v27 = vadd.f32 1.0, %v4682_v11  ;;  %v6737_v32 = vadd.f32 %v3160_v41, %v6596_v45  ;;  %v3510_v50 = vmul.f32 %v3446_v1, %v3254_v12 }
 0x4ce   : > { %v3326_v39 = vmul.f32 0.70710677, %v6729_v5  ;;  %v3511_v33 = vmul.f32 %v3447_v35, %v3255_v17  ;;  %v6740_v42 = vadd.f32 %v3162_v37, %v6598_v3  ;;  %v3257_v1 = vmul.f32 0.5, %v6705_v53 }
 0x4cf   : > { %4691 = verf.f32 %v3325_v49  ;;  %v3512_v26 = vmul.f32 %v3448_v27, %v3256_v29  ;;  %v3327_v56 = vmul.f32 0.70710677, %v6737_v32  ;;  %v3258_v29 = vmul.f32 0.5, %v6709_v60 }
 0x4d0   : > { %4693 = verf.f32 %v3326_v39  ;;  %v3328_v62 = vmul.f32 0.70710677, %v6740_v42  ;;  %v3559_v54 = vpack.c.bf16 %v3511_v33, %v3509_v25  ;;  %v3259_v27 = vmul.f32 0.5, %v6717_v55 }
 0x4d1   : > { %v4684_v34 = vpop.eup %4683  ;;  %4695 = verf.f32 %v3327_v56  ;;  %v3560_v41 = vpack.c.bf16 %v3512_v26, %v3510_v50  ;;  %v3260_v50 = vmul.f32 0.5, %v6720_v2 }
 0x4d2   : > { %v4686_v28 = vpop.eup %4685  ;;  %v3166_v4 = vpop.f32.mrb[88].mxu0  ;;  %v3449_v11 = vadd.f32 1.0, %v4684_v34  ;;  %4697 = verf.f32 %v3328_v62 }
 0x4d3   : > { %v6745_v7 = vadd.f32 %v3166_v4, %v6596_v45  ;;  %v3168_v8 = vpop.f32.mrb[89].mxu0  ;;  %v4688_v17 = vpop.eup %4687  ;;  %v3450_v12 = vadd.f32 1.0, %v4686_v28  ;;  %3800 = vmatprep.mubr.bf16.mxu1 %v3560_v41 }
 0x4d4   : > { %v6749_v35 = vadd.f32 %v3168_v8, %v6598_v3  ;;  %v3170_v49 = vpop.f32.mrb[90].mxu0  ;;  %v4690_v37 = vpop.eup %4689  ;;  %v3451_v39 = vadd.f32 1.0, %v4688_v17  ;;  %3801 = vmatmul.mubr.bf16.gmra.mrb[76].mxu1 %v3559_v54  ;;  %v3513_v34 = vmul.f32 %v3449_v11, %v3257_v1 }
 0x4d5   : > { %v3329_v25 = vmul.f32 0.70710677, %v6745_v7  ;;  %v3172_v33 = vpop.f32.mrb[91].mxu0  ;;  %v3452_v26 = vadd.f32 1.0, %v4690_v37  ;;  %v6757_v56 = vadd.f32 %v3170_v49, %v6596_v45  ;;  %v3514_v55 = vmul.f32 %v3450_v12, %v3258_v29 }
 0x4d6   : > { %v3330_v53 = vmul.f32 0.70710677, %v6749_v35  ;;  %v3515_v62 = vmul.f32 %v3451_v39, %v3259_v27  ;;  %v6760_v60 = vadd.f32 %v3172_v33, %v6598_v3  ;;  %v3261_v12 = vmul.f32 0.5, %v6725_v21 }
 0x4d7   : > { %4699 = verf.f32 %v3329_v25  ;;  %v3516_v28 = vmul.f32 %v3452_v26, %v3260_v50  ;;  %v3331_v54 = vmul.f32 0.70710677, %v6757_v56  ;;  %v3262_v50 = vmul.f32 0.5, %v6729_v5 }
 0x4d8   : > { %4701 = verf.f32 %v3330_v53  ;;  %v3332_v2 = vmul.f32 0.70710677, %v6760_v60  ;;  %v3561_v41 = vpack.c.bf16 %v3515_v62, %v3513_v34  ;;  %v3263_v26 = vmul.f32 0.5, %v6737_v32 }
 0x4d9   : > { %v4692_v4 = vpop.eup %4691  ;;  %4703 = verf.f32 %v3331_v54  ;;  %v3562_v49 = vpack.c.bf16 %v3516_v28, %v3514_v55  ;;  %v3264_v55 = vmul.f32 0.5, %v6740_v42 }
 0x4da   : > { %v4694_v8 = vpop.eup %4693  ;;  %v3176_v17 = vpop.f32.mrb[92].mxu0  ;;  %v3453_v37 = vadd.f32 1.0, %v4692_v4  ;;  %4705 = verf.f32 %v3332_v2 }
 0x4db   : > { %v6765_v11 = vadd.f32 %v3176_v17, %v6596_v45  ;;  %v3178_v1 = vpop.f32.mrb[93].mxu0  ;;  %v4696_v27 = vpop.eup %4695  ;;  %v3454_v29 = vadd.f32 1.0, %v4694_v8  ;;  %3808 = vmatprep.mubr.bf16.mxu1 %v3562_v49 }
 0x4dc   : > { %v6769_v39 = vadd.f32 %v3178_v1, %v6598_v3  ;;  %v3180_v25 = vpop.f32.mrb[94].mxu0  ;;  %v4698_v33 = vpop.eup %4697  ;;  %v3455_v53 = vadd.f32 1.0, %v4696_v27  ;;  %3809 = vmatmul.mubr.bf16.gmra.mrb[80].mxu1 %v3561_v41  ;;  %v3517_v4 = vmul.f32 %v3453_v37, %v3261_v12 }
 0x4dd   : > { %v3333_v34 = vmul.f32 0.70710677, %v6765_v11  ;;  %v3182_v62 = vpop.f32.mrb[95].mxu0  ;;  %v3456_v28 = vadd.f32 1.0, %v4698_v33  ;;  %v6777_v54 = vadd.f32 %v3180_v25, %v6596_v45  ;;  %v3518_v32 = vmul.f32 %v3454_v29, %v3262_v50 }
 0x4de   : > { %v3334_v21 = vmul.f32 0.70710677, %v6769_v39  ;;  %v3519_v2 = vmul.f32 %v3455_v53, %v3263_v26  ;;  %v6780_v5 = vadd.f32 %v3182_v62, %v6598_v3  ;;  %v3265_v29 = vmul.f32 0.5, %v6745_v7 }
 0x4df   : > { %4707 = verf.f32 %v3333_v34  ;;  %v3520_v8 = vmul.f32 %v3456_v28, %v3264_v55  ;;  %v3335_v41 = vmul.f32 0.70710677, %v6777_v54  ;;  %v3266_v55 = vmul.f32 0.5, %v6749_v35 }
 0x4e0   : > { %4709 = verf.f32 %v3334_v21  ;;  %v3336_v42 = vmul.f32 0.70710677, %v6780_v5  ;;  %v3563_v49 = vpack.c.bf16 %v3519_v2, %v3517_v4  ;;  %v3267_v28 = vmul.f32 0.5, %v6757_v56 }
 0x4e1   : > { %v4700_v17 = vpop.eup %4699  ;;  %4711 = verf.f32 %v3335_v41  ;;  %v3564_v25 = vpack.c.bf16 %v3520_v8, %v3518_v32  ;;  %v3268_v32 = vmul.f32 0.5, %v6760_v60 }
 0x4e2   : > { %v4702_v1 = vpop.eup %4701  ;;  %v3186_v27 = vpop.f32.mrb[96].mxu0  ;;  %v3457_v33 = vadd.f32 1.0, %v4700_v17  ;;  %4713 = verf.f32 %v3336_v42 }
 0x4e3   : > { %v6785_v37 = vadd.f32 %v3186_v27, %v6596_v45  ;;  %v3188_v12 = vpop.f32.mrb[97].mxu0  ;;  %v4704_v26 = vpop.eup %4703  ;;  %v3458_v50 = vadd.f32 1.0, %v4702_v1  ;;  %3816 = vmatprep.mubr.bf16.mxu1 %v3564_v25 }
 0x4e4   : > { %v6789_v53 = vadd.f32 %v3188_v12, %v6598_v3  ;;  %v3190_v34 = vpop.f32.mrb[98].mxu0  ;;  %v4706_v62 = vpop.eup %4705  ;;  %v3459_v21 = vadd.f32 1.0, %v4704_v26  ;;  %3817 = vmatmul.mubr.bf16.gmra.mrb[84].mxu1 %v3563_v49  ;;  %v3521_v17 = vmul.f32 %v3457_v33, %v3265_v29 }
 0x4e5   : > { %v3337_v4 = vmul.f32 0.70710677, %v6785_v37  ;;  %v3192_v2 = vpop.f32.mrb[99].mxu0  ;;  %v3460_v8 = vadd.f32 1.0, %v4706_v62  ;;  %v6797_v41 = vadd.f32 %v3190_v34, %v6596_v45  ;;  %v3522_v56 = vmul.f32 %v3458_v50, %v3266_v55 }
 0x4e6   : > { %v3338_v7 = vmul.f32 0.70710677, %v6789_v53  ;;  %v3523_v42 = vmul.f32 %v3459_v21, %v3267_v28  ;;  %v6800_v35 = vadd.f32 %v3192_v2, %v6598_v3  ;;  %v3269_v50 = vmul.f32 0.5, %v6765_v11 }
 0x4e7   : > { %4715 = verf.f32 %v3337_v4  ;;  %v3524_v1 = vmul.f32 %v3460_v8, %v3268_v32  ;;  %v3339_v49 = vmul.f32 0.70710677, %v6797_v41  ;;  %v3270_v32 = vmul.f32 0.5, %v6769_v39 }
 0x4e8   : > { %4717 = verf.f32 %v3338_v7  ;;  %v3340_v60 = vmul.f32 0.70710677, %v6800_v35  ;;  %v3565_v25 = vpack.c.bf16 %v3523_v42, %v3521_v17  ;;  %v3271_v8 = vmul.f32 0.5, %v6777_v54 }
 0x4e9   : > { %v4708_v27 = vpop.eup %4707  ;;  %4719 = verf.f32 %v3339_v49  ;;  %v3566_v34 = vpack.c.bf16 %v3524_v1, %v3522_v56  ;;  %v3272_v56 = vmul.f32 0.5, %v6780_v5 }
 0x4ea   : > { %v4710_v12 = vpop.eup %4709  ;;  %v3196_v26 = vpop.f32.mrb[100].mxu0  ;;  %v3461_v62 = vadd.f32 1.0, %v4708_v27  ;;  %4721 = verf.f32 %v3340_v60 }
 0x4eb   : > { %v6805_v33 = vadd.f32 %v3196_v26, %v6596_v45  ;;  %v3198_v29 = vpop.f32.mrb[101].mxu0  ;;  %v4712_v28 = vpop.eup %4711  ;;  %v3462_v55 = vadd.f32 1.0, %v4710_v12  ;;  %3824 = vmatprep.mubr.bf16.mxu1 %v3566_v34 }
 0x4ec   : > { %v6809_v21 = vadd.f32 %v3198_v29, %v6598_v3  ;;  %v3200_v4 = vpop.f32.mrb[102].mxu0  ;;  %v4714_v2 = vpop.eup %4713  ;;  %v3463_v7 = vadd.f32 1.0, %v4712_v28  ;;  %3825 = vmatmul.mubr.bf16.gmra.mrb[88].mxu1 %v3565_v25  ;;  %v3525_v27 = vmul.f32 %v3461_v62, %v3269_v50 }
 0x4ed   : > { %v3341_v17 = vmul.f32 0.70710677, %v6805_v33  ;;  %v3202_v42 = vpop.f32.mrb[103].mxu0  ;;  %v3464_v1 = vadd.f32 1.0, %v4714_v2  ;;  %v6817_v49 = vadd.f32 %v3200_v4, %v6596_v45  ;;  %v3526_v54 = vmul.f32 %v3462_v55, %v3270_v32 }
 0x4ee   : > { %v3342_v11 = vmul.f32 0.70710677, %v6809_v21  ;;  %v3527_v60 = vmul.f32 %v3463_v7, %v3271_v8  ;;  %v6820_v39 = vadd.f32 %v3202_v42, %v6598_v3  ;;  %v3273_v55 = vmul.f32 0.5, %v6785_v37 }
 0x4ef   : > { %4723 = verf.f32 %v3341_v17  ;;  %v3528_v12 = vmul.f32 %v3464_v1, %v3272_v56  ;;  %v3343_v25 = vmul.f32 0.70710677, %v6817_v49  ;;  %v3274_v56 = vmul.f32 0.5, %v6789_v53 }
 0x4f0   : > { %4725 = verf.f32 %v3342_v11  ;;  %v3344_v5 = vmul.f32 0.70710677, %v6820_v39  ;;  %v3567_v34 = vpack.c.bf16 %v3527_v60, %v3525_v27  ;;  %v3275_v1 = vmul.f32 0.5, %v6797_v41 }
 0x4f1   : > { %v4716_v26 = vpop.eup %4715  ;;  %4727 = verf.f32 %v3343_v25  ;;  %v3568_v4 = vpack.c.bf16 %v3528_v12, %v3526_v54  ;;  %v3276_v54 = vmul.f32 0.5, %v6800_v35 }
 0x4f2   : > { %v4718_v29 = vpop.eup %4717  ;;  %v3206_v28 = vpop.f32.mrb[104].mxu0  ;;  %v3465_v2 = vadd.f32 1.0, %v4716_v26  ;;  %4729 = verf.f32 %v3344_v5 }
 0x4f3   : > { %v6825_v62 = vadd.f32 %v3206_v28, %v6596_v45  ;;  %v3208_v50 = vpop.f32.mrb[105].mxu0  ;;  %v4720_v8 = vpop.eup %4719  ;;  %v3466_v32 = vadd.f32 1.0, %v4718_v29  ;;  %3832 = vmatprep.mubr.bf16.mxu1 %v3568_v4 }
 0x4f4   : > { %v6829_v7 = vadd.f32 %v3208_v50, %v6598_v3  ;;  %v3210_v17 = vpop.f32.mrb[106].mxu0  ;;  %v4722_v42 = vpop.eup %4721  ;;  %v3467_v11 = vadd.f32 1.0, %v4720_v8  ;;  %3833 = vmatmul.mubr.bf16.gmra.mrb[92].mxu1 %v3567_v34  ;;  %v3529_v26 = vmul.f32 %v3465_v2, %v3273_v55 }
 0x4f5   : > { %v3345_v27 = vmul.f32 0.70710677, %v6825_v62  ;;  %v3212_v60 = vpop.f32.mrb[107].mxu0  ;;  %v3468_v12 = vadd.f32 1.0, %v4722_v42  ;;  %v3211_v25 = vadd.f32 %v3210_v17, %v6596_v45  ;;  %v3530_v53 = vmul.f32 %v3466_v32, %v3274_v56 }
 0x4f6   : > { %v3346_v37 = vmul.f32 0.70710677, %v6829_v7  ;;  %v3531_v5 = vmul.f32 %v3467_v11, %v3275_v1  ;;  %v3213_v29 = vadd.f32 %v3212_v60, %v6598_v3  ;;  %v3277_v1 = vmul.f32 0.5, %v6805_v33 }
 0x4f7   : > { %4731 = verf.f32 %v3345_v27  ;;  %v3532_v28 = vmul.f32 %v3468_v12, %v3276_v54  ;;  %v3347_v41 = vmul.f32 0.70710677, %v3211_v25  ;;  %v3278_v60 = vmul.f32 0.5, %v6809_v21 }
 0x4f8   : > { %4733 = verf.f32 %v3346_v37  ;;  %v3348_v50 = vmul.f32 0.70710677, %v3213_v29  ;;  %v3569_v34 = vpack.c.bf16 %v3531_v5, %v3529_v26  ;;  %v3279_v54 = vmul.f32 0.5, %v6817_v49 }
 0x4f9   : > { %v4724_v4 = vpop.eup %4723  ;;  %4735 = verf.f32 %v3347_v41  ;;  %v3570_v42 = vpack.c.bf16 %v3532_v28, %v3530_v53  ;;  %v3280_v5 = vmul.f32 0.5, %v6820_v39 }
 0x4fa   : > { %v4726_v8 = vpop.eup %4725  ;;  %v3216_v35 = vpop.f32.mrb[108].mxu0  ;;  %v3469_v36 = vadd.f32 1.0, %v4724_v4  ;;  %4737 = verf.f32 %v3348_v50 }
 0x4fb   : > { %v3217_v17 = vadd.f32 %v3216_v35, %v6596_v45  ;;  %v3218_v2 = vpop.f32.mrb[109].mxu0  ;;  %v4728_v55 = vpop.eup %4727  ;;  %v3470_v11 = vadd.f32 1.0, %v4726_v8  ;;  %3840 = vmatprep.mubr.bf16.mxu1 %v3570_v42 }
 0x4fc   : > { %v3219_v32 = vadd.f32 %v3218_v2, %v6598_v3  ;;  %v3220_v56 = vpop.f32.mrb[110].mxu0  ;;  %v4730_v27 = vpop.eup %4729  ;;  %v3471_v12 = vadd.f32 1.0, %v4728_v55  ;;  %3841 = vmatmul.mubr.bf16.gmra.mrb[96].mxu1 %v3569_v34  ;;  %v3533_v41 = vmul.f32 %v3469_v36, %v3277_v1  ;;  %v3283_v1 = vmul.f32 0.5, %v3211_v25 }
 0x4fd   : > { %v3349_v37 = vmul.f32 0.70710677, %v3217_v17  ;;  %v3222_v26 = vpop.f32.mrb[111].mxu0  ;;  %v3472_v53 = vadd.f32 1.0, %v4730_v27  ;;  %v3221_v33 = vadd.f32 %v3220_v56, %v6596_v45  ;;  %v3534_v8 = vmul.f32 %v3470_v11, %v3278_v60 }
 0x4fe   : > { %v3350_v28 = vmul.f32 0.70710677, %v3219_v32  ;;  %v3535_v4 = vmul.f32 %v3471_v12, %v3279_v54  ;;  %v3223_v50 = vadd.f32 %v3222_v26, %v6598_v3  ;;  %v3281_v45 = vmul.f32 0.5, %v6825_v62 }
 0x4ff   : > { %4739 = verf.f32 %v3349_v37  ;;  %v3536_v35 = vmul.f32 %v3472_v53, %v3280_v5  ;;  %v3351_v21 = vmul.f32 0.70710677, %v3221_v33  ;;  %v3282_v11 = vmul.f32 0.5, %v6829_v7 }
 0x500   : > { %4741 = verf.f32 %v3350_v28  ;;  %v3352_v42 = vmul.f32 0.70710677, %v3223_v50  ;;  %v3571_v2 = vpack.c.bf16 %v3535_v4, %v3533_v41  ;;  %v3284_v56 = vmul.f32 0.5, %v3213_v29 }
 0x501   : > { %v4732_v49 = vpop.eup %4731  ;;  %4743 = verf.f32 %v3351_v21  ;;  %v3572_v55 = vpack.c.bf16 %v3536_v35, %v3534_v8  ;;  %v3285_v25 = vmul.f32 0.5, %v3217_v17  ;;  %v3287_v21 = vmul.f32 0.5, %v3221_v33  ;;  %v6851_v17 = vld [vmem:[%s7071_s30] ss:$0 sm:$0xff] }
 0x502   : > { %v4734_v34 = vpop.eup %4733  ;;  %v3473_v39 = vadd.f32 1.0, %v4732_v49  ;;  %4745 = verf.f32 %v3352_v42  ;;  %v3286_v7 = vmul.f32 0.5, %v3219_v32  ;;  %v3288_v29 = vmul.f32 0.5, %v3223_v50 }
 0x503   : > { %v4736_v27 = vpop.eup %4735  ;;  %v3474_v13 = vadd.f32 1.0, %v4734_v34  ;;  %3848 = vmatprep.mubr.bf16.mxu1 %v3572_v55 }
 0x504   : > { %v4738_v36 = vpop.eup %4737  ;;  %v3475_v3 = vadd.f32 1.0, %v4736_v27  ;;  %3849 = vmatmul.mubr.bf16.gmra.mrb[100].mxu1 %v3571_v2  ;;  %v3537_v54 = vmul.f32 %v3473_v39, %v3281_v45 }
 0x505   : > { %v3476_v60 = vadd.f32 1.0, %v4738_v36  ;;  %v3538_v37 = vmul.f32 %v3474_v13, %v3282_v11 }
 0x506   : > { %v3539_v12 = vmul.f32 %v3475_v3, %v3283_v1 }
 0x507   : > { %v3540_v26 = vmul.f32 %v3476_v60, %v3284_v56 }
 0x508   : > { %v3573_v53 = vpack.c.bf16 %v3539_v12, %v3537_v54 }
 0x509   : > { %v4740_v5 = vpop.eup %4739  ;;  %v3574_v41 = vpack.c.bf16 %v3540_v26, %v3538_v37 }
 0x50a   : > { %v4742_v28 = vpop.eup %4741  ;;  %v3477_v4 = vadd.f32 1.0, %v4740_v5 }
 0x50b   : > { %v4744_v8 = vpop.eup %4743  ;;  %v3478_v35 = vadd.f32 1.0, %v4742_v28  ;;  %3856 = vmatprep.mubr.bf16.mxu1 %v3574_v41 }
 0x50c   : > { %v4746_v62 = vpop.eup %4745  ;;  %v3479_v49 = vadd.f32 1.0, %v4744_v8  ;;  %3857 = vmatmul.mubr.bf16.gmra.mrb[104].mxu1 %v3573_v53  ;;  %v3541_v2 = vmul.f32 %v3477_v4, %v3285_v25 }
 0x50d   : > { %v3480_v42 = vadd.f32 1.0, %v4746_v62  ;;  %v3542_v13 = vmul.f32 %v3478_v35, %v3286_v7 }
 0x50e   : > { %v3543_v34 = vmul.f32 %v3479_v49, %v3287_v21 }
 0x50f   : > { %v3544_v55 = vmul.f32 %v3480_v42, %v3288_v29 }
 0x510   : > { %v3575_v39 = vpack.c.bf16 %v3543_v34, %v3541_v2 }
 0x511   : > { %v3576_v27 = vpack.c.bf16 %v3544_v55, %v3542_v13 }
 0x513   : > { %3864 = vmatprep.mubr.bf16.mxu1 %v3576_v27 }
 0x514   : > { %3865 = vmatmul.mubr.bf16.gmra.mrb[108].mxu1 %v3575_v39 }
 0x56f   : > { %v4148_v36 = vpop.f32.mrb[48].mxu1 }
 0x570   : > { %v4149_v33 = vpop.f32.mrb[49].mxu1 }
 0x571   : > { %v4150_v45 = vadd.f32 %v4149_v33, %v4148_v36  ;;  %v4151_v32 = vpop.f32.mrb[50].mxu1 }
 0x572   : > { %v4152_v50 = vpop.f32.mrb[51].mxu1 }
 0x573   : > { %v3747_v1 = vadd.f32 %v4150_v45, %v6851_v17  ;;  %v4153_v3 = vadd.f32 %v4152_v50, %v4151_v32 }
 0x575   : > { %v3873_v11 = vadd.f32 %v3747_v1, %v6100_v59  ;;  %v3750_v56 = vadd.f32 %v4153_v3, %v6851_v17 }
 0x577   : > { %3905 = vst [vmem:[%s6858_s14] sm:$0xff] %v3873_v11  ;;  %v3874_v60 = vadd.f32 %v3750_v56, %v6105_v63  ;;  %v4154_v54 = vpop.f32.mrb[52].mxu1 }
 0x578   : > { %v4155_v12 = vpop.f32.mrb[53].mxu1 }
 0x579   : > { %3906 = vst [vmem:[%s6858_s14 + $0x8] sm:$0xff] %v3874_v60  ;;  %v4156_v37 = vadd.f32 %v4155_v12, %v4154_v54  ;;  %v4157_v26 = vpop.f32.mrb[54].mxu1 }
 0x57a   : > { %v4158_v5 = vpop.f32.mrb[55].mxu1 }
 0x57b   : > { %v3755_v59 = vadd.f32 %v4156_v37, %v6851_v17  ;;  %v4159_v53 = vadd.f32 %v4158_v5, %v4157_v26 }
 0x57d   : > { %v3875_v28 = vadd.f32 %v3755_v59, %v6112_v31  ;;  %v3758_v41 = vadd.f32 %v4159_v53, %v6851_v17 }
 0x57f   : > { %3907 = vst [vmem:[%s6858_s14 + $0x10] sm:$0xff] %v3875_v28  ;;  %v3876_v4 = vadd.f32 %v3758_v41, %v6121_v16  ;;  %v4160_v8 = vpop.f32.mrb[56].mxu1 }
 0x580   : > { %v4161_v63 = vpop.f32.mrb[57].mxu1 }
 0x581   : > { %3908 = vst [vmem:[%s6858_s14 + $0x18] sm:$0xff] %v3876_v4  ;;  %v4162_v35 = vadd.f32 %v4161_v63, %v4160_v8  ;;  %v4163_v62 = vpop.f32.mrb[58].mxu1 }
 0x582   : > { %v4164_v25 = vpop.f32.mrb[59].mxu1 }
 0x583   : > { %v3763_v21 = vadd.f32 %v4162_v35, %v6851_v17  ;;  %v4165_v49 = vadd.f32 %v4164_v25, %v4163_v62 }
 0x585   : > { %v3877_v7 = vadd.f32 %v3763_v21, %v6128_v0  ;;  %v3766_v31 = vadd.f32 %v4165_v49, %v6851_v17 }
 0x587   : > { %3909 = vst [vmem:[%s6858_s14 + $0x20] sm:$0xff] %v3877_v7  ;;  %v3878_v29 = vadd.f32 %v3766_v31, %v6133_v44  ;;  %v4166_v42 = vpop.f32.mrb[60].mxu1 }
 0x588   : > { %v4167_v16 = vpop.f32.mrb[61].mxu1 }
 0x589   : > { %3910 = vst [vmem:[%s6858_s14 + $0x28] sm:$0xff] %v3878_v29  ;;  %v4168_v2 = vadd.f32 %v4167_v16, %v4166_v42  ;;  %v4169_v34 = vpop.f32.mrb[62].mxu1 }
 0x58a   : > { %v4170_v13 = vpop.f32.mrb[63].mxu1 }
 0x58b   : > { %v3771_v55 = vadd.f32 %v4168_v2, %v6851_v17  ;;  %v4171_v39 = vadd.f32 %v4170_v13, %v4169_v34 }
 0x58d   : > { %v3879_v27 = vadd.f32 %v3771_v55, %v6143_v57  ;;  %v3774_v0 = vadd.f32 %v4171_v39, %v6851_v17 }
 0x58f   : > { %3911 = vst [vmem:[%s6858_s14 + $0x30] sm:$0xff] %v3879_v27  ;;  %v3880_v36 = vadd.f32 %v3774_v0, %v6147_v43  ;;  %v4172_v33 = vpop.f32.mrb[64].mxu1 }
 0x590   : > { %v4173_v44 = vpop.f32.mrb[65].mxu1 }
 0x591   : > { %3912 = vst [vmem:[%s6858_s14 + $0x38] sm:$0xff] %v3880_v36  ;;  %v4174_v45 = vadd.f32 %v4173_v44, %v4172_v33  ;;  %v4175_v32 = vpop.f32.mrb[66].mxu1 }
 0x592   : > { %v4176_v50 = vpop.f32.mrb[67].mxu1 }
 0x593   : > { %v3779_v1 = vadd.f32 %v4174_v45, %v6851_v17  ;;  %v4177_v3 = vadd.f32 %v4176_v50, %v4175_v32 }
 0x595   : > { %v3881_v11 = vadd.f32 %v3779_v1, %v6156_v30  ;;  %v3782_v57 = vadd.f32 %v4177_v3, %v6851_v17 }
 0x597   : > { %3913 = vst [vmem:[%s6858_s14 + $0x40] sm:$0xff] %v3881_v11  ;;  %v3882_v56 = vadd.f32 %v3782_v57, %v6161_v58  ;;  %v4178_v60 = vpop.f32.mrb[68].mxu1 }
 0x598   : > { %v4179_v43 = vpop.f32.mrb[69].mxu1 }
 0x599   : > { %3914 = vst [vmem:[%s6858_s14 + $0x48] sm:$0xff] %v3882_v56  ;;  %v4180_v54 = vadd.f32 %v4179_v43, %v4178_v60  ;;  %v4181_v12 = vpop.f32.mrb[70].mxu1 }
 0x59a   : > { %v4182_v37 = vpop.f32.mrb[71].mxu1 }
 0x59b   : > { %v3787_v26 = vadd.f32 %v4180_v54, %v6851_v17  ;;  %v4183_v5 = vadd.f32 %v4182_v37, %v4181_v12 }
 0x59d   : > { %v3883_v59 = vadd.f32 %v3787_v26, %v6171_v22  ;;  %v3790_v30 = vadd.f32 %v4183_v5, %v6851_v17 }
 0x59f   : > { %3915 = vst [vmem:[%s6858_s14 + $0x50] sm:$0xff] %v3883_v59  ;;  %v3884_v53 = vadd.f32 %v3790_v30, %v6175_v52  ;;  %v4184_v28 = vpop.f32.mrb[72].mxu1 }
 0x5a0   : > { %v4185_v58 = vpop.f32.mrb[73].mxu1 }
 0x5a1   : > { %3916 = vst [vmem:[%s6858_s14 + $0x58] sm:$0xff] %v3884_v53  ;;  %v4186_v41 = vadd.f32 %v4185_v58, %v4184_v28  ;;  %v4187_v4 = vpop.f32.mrb[74].mxu1 }
 0x5a2   : > { %v4188_v8 = vpop.f32.mrb[75].mxu1 }
 0x5a3   : > { %v3795_v63 = vadd.f32 %v4186_v41, %v6851_v17  ;;  %v4189_v35 = vadd.f32 %v4188_v8, %v4187_v4 }
 0x5a5   : > { %v3885_v62 = vadd.f32 %v3795_v63, %v6184_v61  ;;  %v3798_v22 = vadd.f32 %v4189_v35, %v6851_v17 }
 0x5a7   : > { %3917 = vst [vmem:[%s6858_s14 + $0x60] sm:$0xff] %v3885_v62  ;;  %v3886_v25 = vadd.f32 %v3798_v22, %v6189_v24  ;;  %v4190_v21 = vpop.f32.mrb[76].mxu1 }
 0x5a8   : > { %v4191_v52 = vpop.f32.mrb[77].mxu1 }
 0x5a9   : > { %3918 = vst [vmem:[%s6858_s14 + $0x68] sm:$0xff] %v3886_v25  ;;  %v4192_v49 = vadd.f32 %v4191_v52, %v4190_v21  ;;  %v4193_v7 = vpop.f32.mrb[78].mxu1 }
 0x5aa   : > { %v4194_v31 = vpop.f32.mrb[79].mxu1 }
 0x5ab   : > { %v3803_v29 = vadd.f32 %v4192_v49, %v6851_v17  ;;  %v4195_v42 = vadd.f32 %v4194_v31, %v4193_v7 }
 0x5ad   : > { %v3887_v16 = vadd.f32 %v3803_v29, %v6199_v9  ;;  %v3806_v61 = vadd.f32 %v4195_v42, %v6851_v17 }
 0x5af   : > { %3919 = vst [vmem:[%s6858_s14 + $0x70] sm:$0xff] %v3887_v16  ;;  %v3888_v2 = vadd.f32 %v3806_v61, %v6203_v38  ;;  %v4196_v34 = vpop.f32.mrb[80].mxu1 }
 0x5b0   : > { %v4197_v24 = vpop.f32.mrb[81].mxu1 }
 0x5b1   : > { %3920 = vst [vmem:[%s6858_s14 + $0x78] sm:$0xff] %v3888_v2  ;;  %v4198_v13 = vadd.f32 %v4197_v24, %v4196_v34  ;;  %v4199_v55 = vpop.f32.mrb[82].mxu1 }
 0x5b2   : > { %v4200_v39 = vpop.f32.mrb[83].mxu1 }
 0x5b3   : > { %v3811_v27 = vadd.f32 %v4198_v13, %v6851_v17  ;;  %v4201_v0 = vadd.f32 %v4200_v39, %v4199_v55 }
 0x5b5   : > { %v3889_v36 = vadd.f32 %v3811_v27, %v6212_v51  ;;  %v3814_v9 = vadd.f32 %v4201_v0, %v6851_v17 }
 0x5b7   : > { %3921 = vst [vmem:[%s6858_s14 + $0x80] sm:$0xff] %v3889_v36  ;;  %v3890_v33 = vadd.f32 %v3814_v9, %v6217_v15  ;;  %v4202_v44 = vpop.f32.mrb[84].mxu1  ;;  %v7072_v9 = vld [vmem:[#allocation17_spill] sm:$0xff] }
 0x5b8   : > { %v4203_v38 = vpop.f32.mrb[85].mxu1 }
 0x5b9   : > { %3922 = vst [vmem:[%s6858_s14 + $0x88] sm:$0xff] %v3890_v33  ;;  %v4204_v45 = vadd.f32 %v4203_v38, %v4202_v44  ;;  %v4205_v32 = vpop.f32.mrb[86].mxu1 }
 0x5ba   : > { %v4206_v50 = vpop.f32.mrb[87].mxu1 }
 0x5bb   : > { %v3819_v1 = vadd.f32 %v4204_v45, %v6851_v17  ;;  %v4207_v3 = vadd.f32 %v4206_v50, %v4205_v32 }
 0x5bd   : > { %v3891_v11 = vadd.f32 %v3819_v1, %v6227_v6  ;;  %v3822_v51 = vadd.f32 %v4207_v3, %v6851_v17 }
 0x5bf   : > { %3923 = vst [vmem:[%s6858_s14 + $0x90] sm:$0xff] %v3891_v11  ;;  %v3892_v57 = vadd.f32 %v3822_v51, %v6231_v10  ;;  %v4208_v56 = vpop.f32.mrb[88].mxu1  ;;  %v7075_v51 = vld [vmem:[#allocation21_spill] sm:$0xff] }
 0x5c0   : > { %v4209_v15 = vpop.f32.mrb[89].mxu1 }
 0x5c1   : > { %3924 = vst [vmem:[%s6858_s14 + $0x98] sm:$0xff] %v3892_v57  ;;  %v4210_v60 = vadd.f32 %v4209_v15, %v4208_v56  ;;  %v4211_v43 = vpop.f32.mrb[90].mxu1 }
 0x5c2   : > { %v4212_v54 = vpop.f32.mrb[91].mxu1 }
 0x5c3   : > { %v3827_v12 = vadd.f32 %v4210_v60, %v6851_v17  ;;  %v4213_v37 = vadd.f32 %v4212_v54, %v4211_v43 }
 0x5c5   : > { %v3893_v26 = vadd.f32 %v3827_v12, %v6240_v46  ;;  %v3830_v6 = vadd.f32 %v4213_v37, %v6851_v17 }
 0x5c7   : > { %3925 = vst [vmem:[%s6858_s14 + $0xa0] sm:$0xff] %v3893_v26  ;;  %v3894_v5 = vadd.f32 %v3830_v6, %v6245_v40  ;;  %v4214_v59 = vpop.f32.mrb[92].mxu1 }
 0x5c8   : > { %v4215_v10 = vpop.f32.mrb[93].mxu1 }
 0x5c9   : > { %3926 = vst [vmem:[%s6858_s14 + $0xa8] sm:$0xff] %v3894_v5  ;;  %v4216_v30 = vadd.f32 %v4215_v10, %v4214_v59  ;;  %v4217_v53 = vpop.f32.mrb[94].mxu1 }
 0x5ca   : > { %v4218_v28 = vpop.f32.mrb[95].mxu1 }
 0x5cb   : > { %v3835_v58 = vadd.f32 %v4216_v30, %v6851_v17  ;;  %v4219_v41 = vadd.f32 %v4218_v28, %v4217_v53 }
 0x5cd   : > { %v3895_v4 = vadd.f32 %v3835_v58, %v6255_v48  ;;  %v3838_v46 = vadd.f32 %v4219_v41, %v6851_v17 }
 0x5cf   : > { %3927 = vst [vmem:[%s6858_s14 + $0xb0] sm:$0xff] %v3895_v4  ;;  %v3896_v8 = vadd.f32 %v3838_v46, %v6259_v18  ;;  %v4220_v63 = vpop.f32.mrb[96].mxu1 }
 0x5d0   : > { %v4221_v40 = vpop.f32.mrb[97].mxu1 }
 0x5d1   : > { %3928 = vst [vmem:[%s6858_s14 + $0xb8] sm:$0xff] %v3896_v8  ;;  %v4222_v35 = vadd.f32 %v4221_v40, %v4220_v63  ;;  %v4223_v62 = vpop.f32.mrb[98].mxu1 }
 0x5d2   : > { %v4224_v22 = vpop.f32.mrb[99].mxu1 }
 0x5d3   : > { %v3843_v25 = vadd.f32 %v4222_v35, %v6851_v17  ;;  %v4225_v21 = vadd.f32 %v4224_v22, %v4223_v62 }
 0x5d5   : > { %v3897_v52 = vadd.f32 %v3843_v25, %v6266_v14  ;;  %v3846_v48 = vadd.f32 %v4225_v21, %v6851_v17 }
 0x5d7   : > { %3929 = vst [vmem:[%s6858_s14 + $0xc0] sm:$0xff] %v3897_v52  ;;  %v3898_v49 = vadd.f32 %v3846_v48, %v6273_v19  ;;  %v4226_v7 = vpop.f32.mrb[100].mxu1 }
 0x5d8   : > { %v4227_v18 = vpop.f32.mrb[101].mxu1 }
 0x5d9   : > { %3930 = vst [vmem:[%s6858_s14 + $0xc8] sm:$0xff] %v3898_v49  ;;  %v4228_v31 = vadd.f32 %v4227_v18, %v4226_v7  ;;  %v4229_v29 = vpop.f32.mrb[102].mxu1 }
 0x5da   : > { %v4230_v42 = vpop.f32.mrb[103].mxu1 }
 0x5db   : > { %v3851_v16 = vadd.f32 %v4228_v31, %v6851_v17  ;;  %v4231_v61 = vadd.f32 %v4230_v42, %v4229_v29 }
 0x5dd   : > { %v3899_v2 = vadd.f32 %v3851_v16, %v6283_v47  ;;  %v3854_v14 = vadd.f32 %v4231_v61, %v6851_v17 }
 0x5df   : > { %3931 = vst [vmem:[%s6858_s14 + $0xd0] sm:$0xff] %v3899_v2  ;;  %v3900_v34 = vadd.f32 %v3854_v14, %v6288_v23  ;;  %v4232_v24 = vpop.f32.mrb[104].mxu1 }
 0x5e0   : > { %v4233_v19 = vpop.f32.mrb[105].mxu1 }
 0x5e1   : > { %3932 = vst [vmem:[%s6858_s14 + $0xd8] sm:$0xff] %v3900_v34  ;;  %v4234_v13 = vadd.f32 %v4233_v19, %v4232_v24  ;;  %v4235_v55 = vpop.f32.mrb[106].mxu1 }
 0x5e2   : > { %v4236_v39 = vpop.f32.mrb[107].mxu1 }
 0x5e3   : > { %v3859_v27 = vadd.f32 %v4234_v13, %v6851_v17  ;;  %v4237_v0 = vadd.f32 %v4236_v39, %v4235_v55 }
 0x5e5   : > { %v3901_v36 = vadd.f32 %v3859_v27, %v6294_v20  ;;  %v3862_v47 = vadd.f32 %v4237_v0, %v6851_v17  ;;  %v7073_v20 = vld [vmem:[#allocation16_spill] sm:$0xff] }
 0x5e7   : > { %3933 = vst [vmem:[%s6858_s14 + $0xe0] sm:$0xff] %v3901_v36  ;;  %v3902_v33 = vadd.f32 %v3862_v47, %v7072_v9  ;;  %v4238_v23 = vpop.f32.mrb[108].mxu1 }
 0x5e8   : > { %v4239_v44 = vpop.f32.mrb[109].mxu1 }
 0x5e9   : > { %3934 = vst [vmem:[%s6858_s14 + $0xe8] sm:$0xff] %v3902_v33  ;;  %v4240_v38 = vadd.f32 %v4239_v44, %v4238_v23  ;;  %v4241_v45 = vpop.f32.mrb[110].mxu1 }
 0x5ea   : > { %v4242_v32 = vpop.f32.mrb[111].mxu1 }
 0x5eb   : > { %v3867_v50 = vadd.f32 %v4240_v38, %v6851_v17  ;;  %v4243_v1 = vadd.f32 %v4242_v32, %v4241_v45 }
 0x5ed   : > { %v3903_v3 = vadd.f32 %v3867_v50, %v7073_v20  ;;  %v3870_v11 = vadd.f32 %v4243_v1, %v6851_v17 }
 0x5ef   : > { %3935 = vst [vmem:[%s6858_s14 + $0xf0] sm:$0xff] %v3903_v3  ;;  %v3904_v57 = vadd.f32 %v3870_v11, %v7075_v51 }
 0x5f1   : > { %3936 = vst [vmem:[%s6858_s14 + $0xf8] sm:$0xff] %v3904_v57 }
 0x5f2   : > { %4850 = shalt.err (!%p4847_p7)
}
 0x5f3   : > { %s4851_s30 = scalar_lea.hbm %s6955_s21, 4096  ;;  %s4855_s22 = scalar_lea.hbm %s7074_s24, 16384 }
 0x5f4   : > { %p4852_p9 = scmp.ne.s32.totalorder %s6955_s21, %s4851_s30  ;;  %p4856_p5 = scmp.lt.u32.totalorder %s6955_s21, %s7074_s24 }
 0x5f5   : > { %p4857_p10 = scmp.lt.u32.totalorder %s4855_s22, %s4851_s30  ;;  %p4859_p2 = scmp.lt.u32.totalorder %s4851_s30, %s6955_s21 }
 0x5f6   : > { %p4853_p12 = pnand %p4852_p9, %p5108_p8 }
 0x5f7   : > { %p4858_p1 = por %p4857_p10, %p4856_p5 }
 0x5f8   : > { %p4854_p0 = pneg %p4853_p12 }
 0x5f9   : > { %p4860_p4 = por %p4859_p2, %p4858_p1 }
 0x5fb   : > { %p4861_p6 = pnand %p4860_p4, %p4854_p0 }
 0x5fd   : > { %4864 = shalt.err (!%p4861_p6)
}
 0x5fe   : > { %s4918_s12 = smov 128   ;;  %s4919_s10 = smov 8  }
 0x5ff   : > { %4254 = dma.vmem_to_hbm [thread:$0]  (%p5108_p8), %s6957_s16, 4096, %s6955_s21, %s3938_s29, %s4918_s12, %s4918_s12, %s4919_s10  }
 0x600 PF: > { %s7076_s18 = sld [smem:[#allocation14_spill]]  ;;  %s7077_s14 = sld [smem:[#allocation15_spill]] }
 0x601   : > { %p4276_p11 = scmp.ge.s32.totalorder %s4907_s28, 2 }
 0x606   : > { %s3967_s19 = sand.u32 1, %s7076_s18   ;;  %p7078_p13 = scmp.ne.s32.totalorder %s7077_s14, 0 }
 0x607   : > { %s3968_s30 = scalar_lea.sflag [#allocation6], %s3967_s19 }
 0x608   : > { %p4268_p3 = pnand %p4276_p11, %p7078_p13 }
 0x60a   : > { %4890 = dma.done.wait (!%p4268_p3), %s3968_s30, 4096  }
 0x60b   : > { %4892 = vsyncadd (!%p4268_p3), %s3968_s30, 4294963200  ;;  %p27_p7 = scmp.ge.s32.totalorder %s5095_s15, 6   ;;  %s7079_s25 = smov %s4899_s26 }
 0x60c   : > { %s7080_s26 = smov %s4903_s27  ;;  %s7081_s27 = smov %s5104_s17 }
 0x60d   : > { %s7082_s28 = smov %s5095_s15  ;;  %29 = sbr.rel (!%p27_p7) target bundleno = 10 (0xa), region = 125 }
 0x614   :  { %3973 = vsyncpa [#allocation5], 1 }
 0x615   :  { %3975 = vsyncpa [#allocation5 + $0x1], 1 }
 0x616   :  { %3976 = vsyncpa [#allocation8], 1 }
 0x617   :  { %3977 = vsyncpa [#allocation6], 1 }
 0x618   :  { %3979 = vsyncpa [#allocation6 + $0x1], 1 }

</bundles_post_ra>
